<compile_context>
chip_gen: v7x
topology: tpu7x:2x2x1
jax: 0.10.0
libtpu: 0.0.40
codegen_flags: <defaults>
</compile_context>

<pallas_src>
import functools

import jax
import jax.numpy as jnp
from jax import lax
from jax.experimental import pallas as pl
from jax.experimental.pallas import tpu as pltpu


def _round_up(x, m):
    return ((x + m - 1) // m) * m


def _compiler_params(dimension_semantics, vmem_bytes_est=0):
    kwargs = dict(dimension_semantics=dimension_semantics)
    # Raise the scoped VMEM limit only when the double-buffered working set
    # needs it (scoped defaults: 16 MiB v5e, 32 MiB v6e/v7x).
    if vmem_bytes_est > 14 * 1024 * 1024:
        kwargs["vmem_limit_bytes"] = min(56 * 1024 * 1024,
                                         int(vmem_bytes_est) + (16 << 20))
    return pltpu.CompilerParams(**kwargs)


# ----------------------------------------------------------------------------
# Pallas kernel: fused (im2col-patches @ weights) + bias (+ relu)
# ----------------------------------------------------------------------------
def _matmul_bias_act_kernel(x_ref, w_ref, b_ref, o_ref, *, relu):
    # x_ref: (TM, K) bf16   w_ref: (K, Cp) bf16   b_ref: (1, Cp) f32
    acc = jnp.dot(x_ref[...], w_ref[...], preferred_element_type=jnp.float32)
    out = acc + b_ref[...]
    if relu:
        out = jnp.maximum(out, 0.0)
    o_ref[...] = out.astype(o_ref.dtype)


def _pick_tm(M, bytes_per_row):
    """Largest M-tile (multiple of 8, divisor of M) within a ~24 MiB streamed
    VMEM budget, preferring >= 2 grid steps so both v7x TensorCores work."""
    budget = 24 * 1024 * 1024
    cap = max(8, min(4096, budget // max(bytes_per_row, 1)))
    if M < 16:
        return M
    limit = max(8, min(cap, M // 2))
    t = (limit // 8) * 8
    while t >= 8:
        if M % t == 0:
            return t
        t -= 8
    return M  # fallback: single full-extent block (always legal)


def conv3x3(x_nhwc, w, b, relu=False, out_dtype=jnp.float32, trim_out=True):
    """3x3 / stride 1 / pad 1 conv as a single MXU matmul. x_nhwc: (N,H,W,Cin)."""
    N, H, W, Cin = x_nhwc.shape
    Cout = w.shape[-1]
    M = N * H * W
    K = 9 * Cin
    Cp = _round_up(Cout, 128)  # lane-dense output (unmasked vst)
    # TODO(synk): on v6e/v7x with Cout > 128, pad Cout to multiples of 256 to
    # fill the 256-wide MXU (Cout is 64 / 4 in this model, so 128 is used).

    # Wrapper-side im2col: pad + 9 shifted taps -> (M, 9*Cin).  K is NOT padded
    # in HBM (full-K block is legal), avoiding the 128/36 DMA blow-up at Cin=4.
    xp = jnp.pad(x_nhwc, ((0, 0), (1, 1), (1, 1), (0, 0)))
    taps = [xp[:, kh:kh + H, kw:kw + W, :]
            for kh in range(3) for kw in range(3)]
    patches = jnp.concatenate(taps, axis=-1).reshape(M, K).astype(jnp.bfloat16)

    w2 = w.reshape(K, Cout)                       # (kh,kw,Cin) row-major
    w2 = jnp.pad(w2, ((0, 0), (0, Cp - Cout))).astype(jnp.bfloat16)
    b2 = jnp.pad(b, (0, Cp - Cout)).reshape(1, Cp).astype(jnp.float32)

    out_bytes = jnp.dtype(out_dtype).itemsize
    bytes_per_row = 2 * (K * 2) + 2 * (Cp * out_bytes)  # double-buffered stream
    TM = _pick_tm(M, bytes_per_row)
    vmem_est = TM * bytes_per_row + 2 * K * Cp * 2 + 2 * Cp * 4

    out = pl.pallas_call(
        functools.partial(_matmul_bias_act_kernel, relu=relu),
        out_shape=jax.ShapeDtypeStruct((M, Cp), out_dtype),
        grid=(M // TM,),
        in_specs=[
            pl.BlockSpec((TM, K), lambda i: (i, 0)),    # streamed patches
            pl.BlockSpec((K, Cp), lambda i: (0, 0)),    # weights stay resident
            pl.BlockSpec((1, Cp), lambda i: (0, 0)),    # 2D lane-aligned bias
        ],
        out_specs=pl.BlockSpec((TM, Cp), lambda i: (i, 0)),
        compiler_params=_compiler_params(("parallel",), vmem_est),
    )(patches, w2, b2)

    out = out.reshape(N, H, W, Cp)
    if trim_out:
        out = out[..., :Cout]
    return out


# ----------------------------------------------------------------------------
# Pallas kernel: vector quantizer (K-blocked distances, resident accumulators)
# ----------------------------------------------------------------------------
def _vq_kernel(z_ref, cbT_ref, hi_ref, mid_ref, lo_ref, cbsq_ref,
               zq_ref, loss_ref, usage_ref, *, kc):
    i = pl.program_id(1)

    @pl.when(i == 0)
    def _init():
        loss_ref[...] = jnp.zeros_like(loss_ref)
        usage_ref[...] = jnp.zeros_like(usage_ref)

    z = z_ref[...]                               # (T, Dp) f32
    z_bf = z.astype(jnp.bfloat16)
    T, Dp = z.shape
    K = cbsq_ref.shape[-1]
    n_chunks = K // kc

    best_min = jnp.full((T, 1), jnp.inf, jnp.float32)
    best_idx = jnp.zeros((T, 1), jnp.int32)
    zq = jnp.zeros((T, Dp), jnp.float32)

    # K-blocked nearest-code search: live slabs stay (T, kc) / (T, Dp).
    for kb in range(n_chunks):
        sl = pl.ds(kb * kc, kc)
        # distances up to the per-row constant ||z||^2 (argmin-invariant)
        d = cbsq_ref[:, sl] - 2.0 * jnp.dot(
            z_bf, cbT_ref[:, sl], preferred_element_type=jnp.float32)  # (T, kc)
        cmin = jnp.min(d, axis=1, keepdims=True)
        carg = jnp.argmin(d, axis=1, keepdims=True).astype(jnp.int32)
        oh = (carg == lax.broadcasted_iota(jnp.int32, (T, kc), 1)
              ).astype(jnp.bfloat16)                                   # (T, kc)
        # Exact-row gather: 3-way bf16 split of the f32 codebook, f32 accum.
        cand = (jnp.dot(oh, hi_ref[sl, :], preferred_element_type=jnp.float32)
                + jnp.dot(oh, mid_ref[sl, :], preferred_element_type=jnp.float32)
                + jnp.dot(oh, lo_ref[sl, :], preferred_element_type=jnp.float32))
        better = cmin < best_min                  # strict: keeps first-min idx
        zq = jnp.where(better, cand, zq)
        best_idx = jnp.where(better, carg + kb * kc, best_idx)
        best_min = jnp.minimum(best_min, cmin)

    zq_ref[...] = zq

    diff = zq - z
    loss_ref[...] = loss_ref[...] + jnp.sum(diff * diff)   # lane-dense block

    for kb in range(n_chunks):
        sl = pl.ds(kb * kc, kc)
        iota_k = lax.broadcasted_iota(jnp.int32, (T, kc), 1) + kb * kc
        part = jnp.sum((best_idx == iota_k).astype(jnp.float32),
                       axis=0, keepdims=True)               # (1, kc)
        usage_ref[:, :, sl] = usage_ref[:, :, sl] + part.reshape(1, 1, kc)


def vector_quantize(z_nhwc, codebook, beta):
    """z_nhwc may carry zero-padded channels beyond the codebook dim D."""
    N, H, W, C = z_nhwc.shape
    K, D = codebook.shape
    Nv = N * H * W
    Dp = _round_up(max(C, D, 128), 128)

    zf = z_nhwc.reshape(Nv, C).astype(jnp.float32)
    if C < Dp:
        zf = jnp.pad(zf, ((0, 0), (0, Dp - C)))

    cb = jnp.pad(codebook.astype(jnp.float32), ((0, 0), (0, Dp - D)))  # (K, Dp)
    # 3-way bf16 split so the one-hot MXU gather reproduces f32 rows exactly.
    hi = cb.astype(jnp.bfloat16)
    r1 = cb - hi.astype(jnp.float32)
    mid = r1.astype(jnp.bfloat16)
    lo = (r1 - mid.astype(jnp.float32)).astype(jnp.bfloat16)
    cb_t = cb.T.astype(jnp.bfloat16)                                   # (Dp, K)
    cb_sq = jnp.sum(cb * cb, axis=1).reshape(1, K)                     # ||e||^2

    # 2-way Nv split on a "parallel" axis keeps both v7x TCs busy; within each
    # half, tile Nv at ~128 rows so per-chunk slabs stay around (128, 128).
    NP = 2 if (Nv % 16 == 0) else 1
    rows = Nv // NP
    TNv = rows
    for cand in (128, 64, 32, 16, 8):
        if rows % cand == 0:
            TNv = cand
            break
    steps = rows // TNv
    kc = 128 if K % 128 == 0 else K

    zq, loss, usage = pl.pallas_call(
        functools.partial(_vq_kernel, kc=kc),
        out_shape=(
            jax.ShapeDtypeStruct((Nv, Dp), jnp.float32),
            jax.ShapeDtypeStruct((NP, 1, 128), jnp.float32),   # per-core loss
            jax.ShapeDtypeStruct((NP, 1, K), jnp.float32),     # per-core usage
        ),
        grid=(NP, steps),
        in_specs=[
            pl.BlockSpec((TNv, Dp), lambda p, i: (p * steps + i, 0)),
            pl.BlockSpec((Dp, K), lambda p, i: (0, 0)),   # codebook^T resident
            pl.BlockSpec((K, Dp), lambda p, i: (0, 0)),   # hi split resident
            pl.BlockSpec((K, Dp), lambda p, i: (0, 0)),   # mid split resident
            pl.BlockSpec((K, Dp), lambda p, i: (0, 0)),   # lo split resident
            pl.BlockSpec((1, K), lambda p, i: (0, 0)),    # ||e||^2 resident
        ],
        out_specs=(
            pl.BlockSpec((TNv, Dp), lambda p, i: (p * steps + i, 0)),
            pl.BlockSpec((1, 1, 128), lambda p, i: (p, 0, 0)),  # accumulator
            pl.BlockSpec((1, 1, K), lambda p, i: (p, 0, 0)),    # accumulator
        ),
        compiler_params=_compiler_params(("parallel", "arbitrary")),
    )(zf, cb_t, hi, mid, lo, cb_sq)

    # forward value of ||sg(zq)-z||^2 + beta*||zq-sg(z)||^2, per-code fractions
    vq_loss = jnp.sum(loss[:, 0, 0]) * ((1.0 + beta) / float(Nv * D))
    usages = jnp.sum(usage[:, 0, :], axis=0) / float(Nv)
    z_hat = zq[:, :D].reshape(N, H, W, D)
    return z_hat, vq_loss, usages


# ----------------------------------------------------------------------------
# VQVAE forward (parameters held in a dict)
# ----------------------------------------------------------------------------
def init_params(key, in_ch, z_ch, vocab_size):
    ks = jax.random.split(key, 16)

    def conv_w(k, cin, cout):
        scale = 1.0 / jnp.sqrt(9.0 * cin)
        return jax.random.uniform(k, (3, 3, cin, cout), jnp.float32,
                                  -scale, scale)

    def conv_b(k, cout):
        return jax.random.uniform(k, (cout,), jnp.float32, -0.01, 0.01)

    return {
        "enc_w1": conv_w(ks[0], in_ch, z_ch), "enc_b1": conv_b(ks[1], z_ch),
        "enc_w2": conv_w(ks[2], z_ch, z_ch),  "enc_b2": conv_b(ks[3], z_ch),
        "quant_w": conv_w(ks[4], z_ch, z_ch), "quant_b": conv_b(ks[5], z_ch),
        "post_w": conv_w(ks[6], z_ch, z_ch),  "post_b": conv_b(ks[7], z_ch),
        "dec_w1": conv_w(ks[8], z_ch, z_ch),  "dec_b1": conv_b(ks[9], z_ch),
        "dec_w2": conv_w(ks[10], z_ch, in_ch), "dec_b2": conv_b(ks[11], in_ch),
        "codebook": jax.random.uniform(ks[12], (vocab_size, z_ch), jnp.float32,
                                       -1.0 / vocab_size, 1.0 / vocab_size),
    }


def vqvae_forward(params, x_nchw, beta=0.25):
    # NCHW -> NHWC (kernel layout)
    x = jnp.transpose(x_nchw, (0, 2, 3, 1)).astype(jnp.float32)

    # --- Encoder: conv+relu -> 2x avg-pool -> conv (bf16 on conv->conv edges)
    h = conv3x3(x, params["enc_w1"], params["enc_b1"], relu=True,
                out_dtype=jnp.bfloat16)
    N, H, W, C = h.shape
    h = h.reshape(N, H // 2, 2, W // 2, 2, C).mean(axis=(2, 4))   # avgpool 2x2
    h_enc = conv3x3(h, params["enc_w2"], params["enc_b2"],
                    out_dtype=jnp.bfloat16)

    # --- quant_conv: keep the 128-lane padded channel slab (lane-dense VQ IO),
    #     padded channels are exactly zero (zero-padded weights + bias).
    z = conv3x3(h_enc, params["quant_w"], params["quant_b"],
                out_dtype=jnp.float32, trim_out=False)

    # --- quantize ---
    z_hat, vq_loss, usages = vector_quantize(z, params["codebook"], beta)

    # --- post_quant_conv ---
    z_proj = conv3x3(z_hat, params["post_w"], params["post_b"],
                     out_dtype=jnp.bfloat16)

    # --- Decoder: conv+relu -> nearest upsample x2 -> conv ---
    d = conv3x3(z_proj, params["dec_w1"], params["dec_b1"], relu=True,
                out_dtype=jnp.bfloat16)
    d = jnp.repeat(jnp.repeat(d, 2, axis=1), 2, axis=2)           # nearest x2
    x_rec = conv3x3(d, params["dec_w2"], params["dec_b2"],
                    out_dtype=jnp.float32)

    # NHWC -> NCHW
    x_rec = jnp.transpose(x_rec, (0, 3, 1, 2))
    return x_rec, vq_loss, usages


if __name__ == "__main__":
    batch, in_ch, H, W = 2, 4, 16, 16
    z_channels, vocab_size, beta = 64, 512, 0.25

    key = jax.random.PRNGKey(0)
    k_params, k_x = jax.random.split(key)
    params = init_params(k_params, in_ch, z_channels, vocab_size)
    x = jax.random.normal(k_x, (batch, in_ch, H, W), jnp.float32)

    fwd = jax.jit(functools.partial(vqvae_forward, beta=beta))
    x_rec, vq_loss, usages = fwd(params, x)
    jax.block_until_ready((x_rec, vq_loss, usages))

    assert x_rec.shape == (batch, in_ch, H, W)
    assert vq_loss.shape == ()
    assert usages.shape == (vocab_size,)
    print("KERNEL_OK")
</pallas_src>

<mosaic_0001>
module attributes {stable_mosaic.version = 11 : i64} {
  func.func @_matmul_bias_act_kernel(%arg0: i32, %arg1: memref<256x36xbf16, #tpu.memory_space<vmem>>, %arg2: memref<36x128xbf16, #tpu.memory_space<vmem>>, %arg3: memref<1x128xf32, #tpu.memory_space<vmem>>, %arg4: memref<256x128xbf16, #tpu.memory_space<vmem>>) attributes {dimension_semantics = [#tpu.dimension_semantics<parallel>], iteration_bounds = array<i64: 2>, scalar_prefetch = 0 : i64, scratch_operands = 0 : i64, tpu.core_type = #tpu.core_type<tc>, window_params = [{transform_indices = @transform_0, window_bounds = array<i64: 256, 36>}, {pipeline_mode = #tpu.pipeline_mode<synchronous>, transform_indices = @transform_1, window_bounds = array<i64: 36, 128>}, {pipeline_mode = #tpu.pipeline_mode<synchronous>, transform_indices = @transform_2, window_bounds = array<i64: 1, 128>}, {transform_indices = @transform_3, window_bounds = array<i64: 256, 128>}]} {
    %c0 = arith.constant 0 : index
    %c0_0 = arith.constant 0 : index
    %0 = vector.load %arg1[%c0, %c0_0] : memref<256x36xbf16, #tpu.memory_space<vmem>>, vector<256x36xbf16>
    %c0_1 = arith.constant 0 : index
    %c0_2 = arith.constant 0 : index
    %1 = vector.load %arg2[%c0_1, %c0_2] : memref<36x128xbf16, #tpu.memory_space<vmem>>, vector<36x128xbf16>
    %cst = arith.constant dense<0.000000e+00> : vector<256x128xf32>
    %2 = tpu.matmul %0, %1, %cst {dimension_numbers = #tpu.dot_dimension_numbers<[1], [0], [0], [1], [0, 0, 1, 1], [], []>} : vector<256x36xbf16>, vector<36x128xbf16>, vector<256x128xf32> -> vector<256x128xf32>
    %c0_3 = arith.constant 0 : index
    %c0_4 = arith.constant 0 : index
    %3 = vector.load %arg3[%c0_3, %c0_4] : memref<1x128xf32, #tpu.memory_space<vmem>>, vector<1x128xf32>
    %4 = vector.broadcast %3 : vector<1x128xf32> to vector<256x128xf32>
    %5 = arith.addf %2, %4 : vector<256x128xf32>
    %cst_5 = arith.constant 0.000000e+00 : f32
    %6 = vector.broadcast %cst_5 : f32 to vector<256x128xf32>
    %7 = arith.maximumf %5, %6 : vector<256x128xf32>
    %8 = arith.truncf %7 : vector<256x128xf32> to vector<256x128xbf16>
    %c0_6 = arith.constant 0 : index
    %c0_7 = arith.constant 0 : index
    %9 = vector.load %arg4[%c0_6, %c0_7] : memref<256x128xbf16, #tpu.memory_space<vmem>>, vector<256x128xbf16>
    tpu.vector_store %arg4[%c0_6, %c0_7], %8 {strides = array<i32>} : memref<256x128xbf16, #tpu.memory_space<vmem>>, vector<256x128xbf16>,
    return
  }
  func.func @transform_0(%arg0: i32) -> (i32, i32) {
    %c0_i32 = arith.constant 0 : i32
    %c0_i32_0 = arith.constant 0 : i32
    return %arg0, %c0_i32 : i32, i32
  }
  func.func @transform_1(%arg0: i32) -> (i32, i32) {
    %c0_i32 = arith.constant 0 : i32
    %c0_i32_0 = arith.constant 0 : i32
    %c0_i32_1 = arith.constant 0 : i32
    return %c0_i32, %c0_i32_0 : i32, i32
  }
  func.func @transform_2(%arg0: i32) -> (i32, i32) {
    %c0_i32 = arith.constant 0 : i32
    %c0_i32_0 = arith.constant 0 : i32
    %c0_i32_1 = arith.constant 0 : i32
    return %c0_i32, %c0_i32_0 : i32, i32
  }
  func.func @transform_3(%arg0: i32) -> (i32, i32) {
    %c0_i32 = arith.constant 0 : i32
    %c0_i32_0 = arith.constant 0 : i32
    return %arg0, %c0_i32 : i32, i32
  }
}

module attributes {stable_mosaic.version = 11 : i64} {
  func.func @_matmul_bias_act_kernel(%arg0: i32, %arg1: memref<64x576xbf16, #tpu.memory_space<vmem>>, %arg2: memref<576x128xbf16, #tpu.memory_space<vmem>>, %arg3: memref<1x128xf32, #tpu.memory_space<vmem>>, %arg4: memref<64x128xbf16, #tpu.memory_space<vmem>>) attributes {dimension_semantics = [#tpu.dimension_semantics<parallel>], iteration_bounds = array<i64: 2>, scalar_prefetch = 0 : i64, scratch_operands = 0 : i64, tpu.core_type = #tpu.core_type<tc>, window_params = [{transform_indices = @transform_0, window_bounds = array<i64: 64, 576>}, {pipeline_mode = #tpu.pipeline_mode<synchronous>, transform_indices = @transform_1, window_bounds = array<i64: 576, 128>}, {pipeline_mode = #tpu.pipeline_mode<synchronous>, transform_indices = @transform_2, window_bounds = array<i64: 1, 128>}, {transform_indices = @transform_3, window_bounds = array<i64: 64, 128>}]} {
    %c0 = arith.constant 0 : index
    %c0_0 = arith.constant 0 : index
    %0 = vector.load %arg1[%c0, %c0_0] : memref<64x576xbf16, #tpu.memory_space<vmem>>, vector<64x576xbf16>
    %c0_1 = arith.constant 0 : index
    %c0_2 = arith.constant 0 : index
    %1 = vector.load %arg2[%c0_1, %c0_2] : memref<576x128xbf16, #tpu.memory_space<vmem>>, vector<576x128xbf16>
    %cst = arith.constant dense<0.000000e+00> : vector<64x128xf32>
    %2 = tpu.matmul %0, %1, %cst {dimension_numbers = #tpu.dot_dimension_numbers<[1], [0], [0], [1], [0, 0, 1, 1], [], []>} : vector<64x576xbf16>, vector<576x128xbf16>, vector<64x128xf32> -> vector<64x128xf32>
    %c0_3 = arith.constant 0 : index
    %c0_4 = arith.constant 0 : index
    %3 = vector.load %arg3[%c0_3, %c0_4] : memref<1x128xf32, #tpu.memory_space<vmem>>, vector<1x128xf32>
    %4 = vector.broadcast %3 : vector<1x128xf32> to vector<64x128xf32>
    %5 = arith.addf %2, %4 : vector<64x128xf32>
    %6 = arith.truncf %5 : vector<64x128xf32> to vector<64x128xbf16>
    %c0_5 = arith.constant 0 : index
    %c0_6 = arith.constant 0 : index
    %7 = vector.load %arg4[%c0_5, %c0_6] : memref<64x128xbf16, #tpu.memory_space<vmem>>, vector<64x128xbf16>
    tpu.vector_store %arg4[%c0_5, %c0_6], %6 {strides = array<i32>} : memref<64x128xbf16, #tpu.memory_space<vmem>>, vector<64x128xbf16>,
    return
  }
  func.func @transform_0(%arg0: i32) -> (i32, i32) {
    %c0_i32 = arith.constant 0 : i32
    %c0_i32_0 = arith.constant 0 : i32
    return %arg0, %c0_i32 : i32, i32
  }
  func.func @transform_1(%arg0: i32) -> (i32, i32) {
    %c0_i32 = arith.constant 0 : i32
    %c0_i32_0 = arith.constant 0 : i32
    %c0_i32_1 = arith.constant 0 : i32
    return %c0_i32, %c0_i32_0 : i32, i32
  }
  func.func @transform_2(%arg0: i32) -> (i32, i32) {
    %c0_i32 = arith.constant 0 : i32
    %c0_i32_0 = arith.constant 0 : i32
    %c0_i32_1 = arith.constant 0 : i32
    return %c0_i32, %c0_i32_0 : i32, i32
  }
  func.func @transform_3(%arg0: i32) -> (i32, i32) {
    %c0_i32 = arith.constant 0 : i32
    %c0_i32_0 = arith.constant 0 : i32
    return %arg0, %c0_i32 : i32, i32
  }
}

module attributes {stable_mosaic.version = 11 : i64} {
  func.func @_matmul_bias_act_kernel(%arg0: i32, %arg1: memref<64x576xbf16, #tpu.memory_space<vmem>>, %arg2: memref<576x128xbf16, #tpu.memory_space<vmem>>, %arg3: memref<1x128xf32, #tpu.memory_space<vmem>>, %arg4: memref<64x128xf32, #tpu.memory_space<vmem>>) attributes {dimension_semantics = [#tpu.dimension_semantics<parallel>], iteration_bounds = array<i64: 2>, scalar_prefetch = 0 : i64, scratch_operands = 0 : i64, tpu.core_type = #tpu.core_type<tc>, window_params = [{transform_indices = @transform_0, window_bounds = array<i64: 64, 576>}, {pipeline_mode = #tpu.pipeline_mode<synchronous>, transform_indices = @transform_1, window_bounds = array<i64: 576, 128>}, {pipeline_mode = #tpu.pipeline_mode<synchronous>, transform_indices = @transform_2, window_bounds = array<i64: 1, 128>}, {transform_indices = @transform_3, window_bounds = array<i64: 64, 128>}]} {
    %c0 = arith.constant 0 : index
    %c0_0 = arith.constant 0 : index
    %0 = vector.load %arg1[%c0, %c0_0] : memref<64x576xbf16, #tpu.memory_space<vmem>>, vector<64x576xbf16>
    %c0_1 = arith.constant 0 : index
    %c0_2 = arith.constant 0 : index
    %1 = vector.load %arg2[%c0_1, %c0_2] : memref<576x128xbf16, #tpu.memory_space<vmem>>, vector<576x128xbf16>
    %cst = arith.constant dense<0.000000e+00> : vector<64x128xf32>
    %2 = tpu.matmul %0, %1, %cst {dimension_numbers = #tpu.dot_dimension_numbers<[1], [0], [0], [1], [0, 0, 1, 1], [], []>} : vector<64x576xbf16>, vector<576x128xbf16>, vector<64x128xf32> -> vector<64x128xf32>
    %c0_3 = arith.constant 0 : index
    %c0_4 = arith.constant 0 : index
    %3 = vector.load %arg3[%c0_3, %c0_4] : memref<1x128xf32, #tpu.memory_space<vmem>>, vector<1x128xf32>
    %4 = vector.broadcast %3 : vector<1x128xf32> to vector<64x128xf32>
    %5 = arith.addf %2, %4 : vector<64x128xf32>
    %c0_5 = arith.constant 0 : index
    %c0_6 = arith.constant 0 : index
    %6 = vector.load %arg4[%c0_5, %c0_6] : memref<64x128xf32, #tpu.memory_space<vmem>>, vector<64x128xf32>
    tpu.vector_store %arg4[%c0_5, %c0_6], %5 {strides = array<i32>} : memref<64x128xf32, #tpu.memory_space<vmem>>, vector<64x128xf32>,
    return
  }
  func.func @transform_0(%arg0: i32) -> (i32, i32) {
    %c0_i32 = arith.constant 0 : i32
    %c0_i32_0 = arith.constant 0 : i32
    return %arg0, %c0_i32 : i32, i32
  }
  func.func @transform_1(%arg0: i32) -> (i32, i32) {
    %c0_i32 = arith.constant 0 : i32
    %c0_i32_0 = arith.constant 0 : i32
    %c0_i32_1 = arith.constant 0 : i32
    return %c0_i32, %c0_i32_0 : i32, i32
  }
  func.func @transform_2(%arg0: i32) -> (i32, i32) {
    %c0_i32 = arith.constant 0 : i32
    %c0_i32_0 = arith.constant 0 : i32
    %c0_i32_1 = arith.constant 0 : i32
    return %c0_i32, %c0_i32_0 : i32, i32
  }
  func.func @transform_3(%arg0: i32) -> (i32, i32) {
    %c0_i32 = arith.constant 0 : i32
    %c0_i32_0 = arith.constant 0 : i32
    return %arg0, %c0_i32 : i32, i32
  }
}

module attributes {stable_mosaic.version = 11 : i64} {
  func.func @_vq_kernel(%arg0: i32, %arg1: i32, %arg2: memref<64x128xf32, #tpu.memory_space<vmem>>, %arg3: memref<128x512xbf16, #tpu.memory_space<vmem>>, %arg4: memref<512x128xbf16, #tpu.memory_space<vmem>>, %arg5: memref<512x128xbf16, #tpu.memory_space<vmem>>, %arg6: memref<512x128xbf16, #tpu.memory_space<vmem>>, %arg7: memref<1x512xf32, #tpu.memory_space<vmem>>, %arg8: memref<64x128xf32, #tpu.memory_space<vmem>>, %arg9: memref<1x1x128xf32, #tpu.memory_space<vmem>>, %arg10: memref<1x1x512xf32, #tpu.memory_space<vmem>>) attributes {dimension_semantics = [#tpu.dimension_semantics<parallel>, #tpu.dimension_semantics<arbitrary>], iteration_bounds = array<i64: 2, 1>, scalar_prefetch = 0 : i64, scratch_operands = 0 : i64, tpu.core_type = #tpu.core_type<tc>, window_params = [{transform_indices = @transform_0, window_bounds = array<i64: 64, 128>}, {pipeline_mode = #tpu.pipeline_mode<synchronous>, transform_indices = @transform_1, window_bounds = array<i64: 128, 512>}, {pipeline_mode = #tpu.pipeline_mode<synchronous>, transform_indices = @transform_2, window_bounds = array<i64: 512, 128>}, {pipeline_mode = #tpu.pipeline_mode<synchronous>, transform_indices = @transform_3, window_bounds = array<i64: 512, 128>}, {pipeline_mode = #tpu.pipeline_mode<synchronous>, transform_indices = @transform_4, window_bounds = array<i64: 512, 128>}, {pipeline_mode = #tpu.pipeline_mode<synchronous>, transform_indices = @transform_5, window_bounds = array<i64: 1, 512>}, {transform_indices = @transform_6, window_bounds = array<i64: 64, 128>}, {transform_indices = @transform_7, window_bounds = array<i64: 1, 1, 128>}, {transform_indices = @transform_8, window_bounds = array<i64: 1, 1, 512>}]} {
    %c0_i32 = arith.constant 0 : i32
    %0 = arith.cmpi eq, %arg1, %c0_i32 : i32
    %1 = arith.extui %0 : i1 to i32
    %c0_i32_0 = arith.constant 0 : i32
    %2 = arith.cmpi ne, %1, %c0_i32_0 : i32
    scf.if %2 {
      %cst_107 = arith.constant 0.000000e+00 : f32
      %202 = vector.broadcast %cst_107 : f32 to vector<1x1x128xf32>
      %c0_108 = arith.constant 0 : index
      %c0_109 = arith.constant 0 : index
      %c0_110 = arith.constant 0 : index
      %203 = vector.load %arg9[%c0_108, %c0_109, %c0_110] : memref<1x1x128xf32, #tpu.memory_space<vmem>>, vector<1x1x128xf32>
      tpu.vector_store %arg9[%c0_108, %c0_109, %c0_110], %202 {strides = array<i32>} : memref<1x1x128xf32, #tpu.memory_space<vmem>>, vector<1x1x128xf32>,
      %cst_111 = arith.constant 0.000000e+00 : f32
      %204 = vector.broadcast %cst_111 : f32 to vector<1x1x512xf32>
      %c0_112 = arith.constant 0 : index
      %c0_113 = arith.constant 0 : index
      %c0_114 = arith.constant 0 : index
      %205 = vector.load %arg10[%c0_112, %c0_113, %c0_114] : memref<1x1x512xf32, #tpu.memory_space<vmem>>, vector<1x1x512xf32>
      tpu.vector_store %arg10[%c0_112, %c0_113, %c0_114], %204 {strides = array<i32>} : memref<1x1x512xf32, #tpu.memory_space<vmem>>, vector<1x1x512xf32>,
    } else {
    }
    %c0 = arith.constant 0 : index
    %c0_1 = arith.constant 0 : index
    %3 = vector.load %arg2[%c0, %c0_1] : memref<64x128xf32, #tpu.memory_space<vmem>>, vector<64x128xf32>
    %4 = arith.truncf %3 : vector<64x128xf32> to vector<64x128xbf16>
    %cst = arith.constant 0x7F800000 : f32
    %5 = vector.broadcast %cst : f32 to vector<64x1xf32>
    %c0_i32_2 = arith.constant 0 : i32
    %6 = vector.broadcast %c0_i32_2 : i32 to vector<64x1xi32>
    %cst_3 = arith.constant 0.000000e+00 : f32
    %7 = vector.broadcast %cst_3 : f32 to vector<64x128xf32>
    %c0_4 = arith.constant 0 : index
    %c0_5 = arith.constant 0 : index
    %8 = vector.load %arg7[%c0_4, %c0_5] : memref<1x512xf32, #tpu.memory_space<vmem>>, vector<1x128xf32>
    %c0_6 = arith.constant 0 : index
    %c0_7 = arith.constant 0 : index
    %9 = vector.load %arg3[%c0_6, %c0_7] : memref<128x512xbf16, #tpu.memory_space<vmem>>, vector<128x128xbf16>
    %cst_8 = arith.constant dense<0.000000e+00> : vector<64x128xf32>
    %10 = tpu.matmul %4, %9, %cst_8 {dimension_numbers = #tpu.dot_dimension_numbers<[1], [0], [0], [1], [0, 0, 1, 1], [], []>} : vector<64x128xbf16>, vector<128x128xbf16>, vector<64x128xf32> -> vector<64x128xf32>
    %cst_9 = arith.constant 2.000000e+00 : f32
    %11 = vector.broadcast %cst_9 : f32 to vector<64x128xf32>
    %12 = arith.mulf %11, %10 : vector<64x128xf32>
    %13 = vector.broadcast %8 : vector<1x128xf32> to vector<64x128xf32>
    %14 = arith.subf %13, %12 : vector<64x128xf32>
    %cst_10 = arith.constant dense<0x7F800000> : vector<64xf32>
    %15 = vector.multi_reduction <minimumf>, %14, %cst_10 [1] : vector<64x128xf32> to vector<64xf32>
    %16 = vector.shape_cast %15 : vector<64xf32> to vector<64x1xf32>
    %17 = tpu.reduce_index %14 {axis = 1 : i32, kind = #tpu.reduction_kind<arg_min>} : vector<64x128xf32> -> vector<64xi32>
    %18 = vector.shape_cast %17 : vector<64xi32> to vector<64x1xi32>
    %19 = tpu.iota {dimensions = array<i32: 1>} : vector<64x128xi32>
    %20 = vector.broadcast %18 : vector<64x1xi32> to vector<64x128xi32>
    %21 = arith.cmpi eq, %20, %19 : vector<64x128xi32>
    %22 = arith.extui %21 : vector<64x128xi1> to vector<64x128xi32>
    %23 = arith.sitofp %22 : vector<64x128xi32> to vector<64x128xf32>
    %24 = arith.truncf %23 : vector<64x128xf32> to vector<64x128xbf16>
    %c0_11 = arith.constant 0 : index
    %c0_12 = arith.constant 0 : index
    %25 = vector.load %arg4[%c0_11, %c0_12] : memref<512x128xbf16, #tpu.memory_space<vmem>>, vector<128x128xbf16>
    %cst_13 = arith.constant dense<0.000000e+00> : vector<64x128xf32>
    %26 = tpu.matmul %24, %25, %cst_13 {dimension_numbers = #tpu.dot_dimension_numbers<[1], [0], [0], [1], [0, 0, 1, 1], [], []>} : vector<64x128xbf16>, vector<128x128xbf16>, vector<64x128xf32> -> vector<64x128xf32>
    %c0_14 = arith.constant 0 : index
    %c0_15 = arith.constant 0 : index
    %27 = vector.load %arg5[%c0_14, %c0_15] : memref<512x128xbf16, #tpu.memory_space<vmem>>, vector<128x128xbf16>
    %cst_16 = arith.constant dense<0.000000e+00> : vector<64x128xf32>
    %28 = tpu.matmul %24, %27, %cst_16 {dimension_numbers = #tpu.dot_dimension_numbers<[1], [0], [0], [1], [0, 0, 1, 1], [], []>} : vector<64x128xbf16>, vector<128x128xbf16>, vector<64x128xf32> -> vector<64x128xf32>
    %29 = arith.addf %26, %28 : vector<64x128xf32>
    %c0_17 = arith.constant 0 : index
    %c0_18 = arith.constant 0 : index
    %30 = vector.load %arg6[%c0_17, %c0_18] : memref<512x128xbf16, #tpu.memory_space<vmem>>, vector<128x128xbf16>
    %cst_19 = arith.constant dense<0.000000e+00> : vector<64x128xf32>
    %31 = tpu.matmul %24, %30, %cst_19 {dimension_numbers = #tpu.dot_dimension_numbers<[1], [0], [0], [1], [0, 0, 1, 1], [], []>} : vector<64x128xbf16>, vector<128x128xbf16>, vector<64x128xf32> -> vector<64x128xf32>
    %32 = arith.addf %29, %31 : vector<64x128xf32>
    %33 = arith.cmpf olt, %16, %5 : vector<64x1xf32>
    %34 = vector.shape_cast %33 : vector<64x1xi1> to vector<64x1xi1>
    %35 = vector.broadcast %34 : vector<64x1xi1> to vector<64x128xi1>
    %36 = arith.select %35, %32, %7 : vector<64x128xi1>, vector<64x128xf32>
    %c0_i32_20 = arith.constant 0 : i32
    %37 = vector.broadcast %c0_i32_20 : i32 to vector<64x1xi32>
    %38 = arith.addi %18, %37 : vector<64x1xi32>
    %39 = arith.select %33, %38, %6 : vector<64x1xi1>, vector<64x1xi32>
    %40 = arith.minimumf %5, %16 : vector<64x1xf32>
    %c0_21 = arith.constant 0 : index
    %c128 = arith.constant 128 : index
    %41 = vector.load %arg7[%c0_21, %c128] : memref<1x512xf32, #tpu.memory_space<vmem>>, vector<1x128xf32>
    %c0_22 = arith.constant 0 : index
    %c128_23 = arith.constant 128 : index
    %42 = vector.load %arg3[%c0_22, %c128_23] : memref<128x512xbf16, #tpu.memory_space<vmem>>, vector<128x128xbf16>
    %cst_24 = arith.constant dense<0.000000e+00> : vector<64x128xf32>
    %43 = tpu.matmul %4, %42, %cst_24 {dimension_numbers = #tpu.dot_dimension_numbers<[1], [0], [0], [1], [0, 0, 1, 1], [], []>} : vector<64x128xbf16>, vector<128x128xbf16>, vector<64x128xf32> -> vector<64x128xf32>
    %cst_25 = arith.constant 2.000000e+00 : f32
    %44 = vector.broadcast %cst_25 : f32 to vector<64x128xf32>
    %45 = arith.mulf %44, %43 : vector<64x128xf32>
    %46 = vector.broadcast %41 : vector<1x128xf32> to vector<64x128xf32>
    %47 = arith.subf %46, %45 : vector<64x128xf32>
    %cst_26 = arith.constant dense<0x7F800000> : vector<64xf32>
    %48 = vector.multi_reduction <minimumf>, %47, %cst_26 [1] : vector<64x128xf32> to vector<64xf32>
    %49 = vector.shape_cast %48 : vector<64xf32> to vector<64x1xf32>
    %50 = tpu.reduce_index %47 {axis = 1 : i32, kind = #tpu.reduction_kind<arg_min>} : vector<64x128xf32> -> vector<64xi32>
    %51 = vector.shape_cast %50 : vector<64xi32> to vector<64x1xi32>
    %52 = tpu.iota {dimensions = array<i32: 1>} : vector<64x128xi32>
    %53 = vector.broadcast %51 : vector<64x1xi32> to vector<64x128xi32>
    %54 = arith.cmpi eq, %53, %52 : vector<64x128xi32>
    %55 = arith.extui %54 : vector<64x128xi1> to vector<64x128xi32>
    %56 = arith.sitofp %55 : vector<64x128xi32> to vector<64x128xf32>
    %57 = arith.truncf %56 : vector<64x128xf32> to vector<64x128xbf16>
    %c128_27 = arith.constant 128 : index
    %c0_28 = arith.constant 0 : index
    %58 = vector.load %arg4[%c128_27, %c0_28] : memref<512x128xbf16, #tpu.memory_space<vmem>>, vector<128x128xbf16>
    %cst_29 = arith.constant dense<0.000000e+00> : vector<64x128xf32>
    %59 = tpu.matmul %57, %58, %cst_29 {dimension_numbers = #tpu.dot_dimension_numbers<[1], [0], [0], [1], [0, 0, 1, 1], [], []>} : vector<64x128xbf16>, vector<128x128xbf16>, vector<64x128xf32> -> vector<64x128xf32>
    %c128_30 = arith.constant 128 : index
    %c0_31 = arith.constant 0 : index
    %60 = vector.load %arg5[%c128_30, %c0_31] : memref<512x128xbf16, #tpu.memory_space<vmem>>, vector<128x128xbf16>
    %cst_32 = arith.constant dense<0.000000e+00> : vector<64x128xf32>
    %61 = tpu.matmul %57, %60, %cst_32 {dimension_numbers = #tpu.dot_dimension_numbers<[1], [0], [0], [1], [0, 0, 1, 1], [], []>} : vector<64x128xbf16>, vector<128x128xbf16>, vector<64x128xf32> -> vector<64x128xf32>
    %62 = arith.addf %59, %61 : vector<64x128xf32>
    %c128_33 = arith.constant 128 : index
    %c0_34 = arith.constant 0 : index
    %63 = vector.load %arg6[%c128_33, %c0_34] : memref<512x128xbf16, #tpu.memory_space<vmem>>, vector<128x128xbf16>
    %cst_35 = arith.constant dense<0.000000e+00> : vector<64x128xf32>
    %64 = tpu.matmul %57, %63, %cst_35 {dimension_numbers = #tpu.dot_dimension_numbers<[1], [0], [0], [1], [0, 0, 1, 1], [], []>} : vector<64x128xbf16>, vector<128x128xbf16>, vector<64x128xf32> -> vector<64x128xf32>
    %65 = arith.addf %62, %64 : vector<64x128xf32>
    %66 = arith.cmpf olt, %49, %40 : vector<64x1xf32>
    %67 = vector.shape_cast %66 : vector<64x1xi1> to vector<64x1xi1>
    %68 = vector.broadcast %67 : vector<64x1xi1> to vector<64x128xi1>
    %69 = arith.select %68, %65, %36 : vector<64x128xi1>, vector<64x128xf32>
    %c128_i32 = arith.constant 128 : i32
    %70 = vector.broadcast %c128_i32 : i32 to vector<64x1xi32>
    %71 = arith.addi %51, %70 : vector<64x1xi32>
    %72 = arith.select %66, %71, %39 : vector<64x1xi1>, vector<64x1xi32>
    %73 = arith.minimumf %40, %49 : vector<64x1xf32>
    %c0_36 = arith.constant 0 : index
    %c256 = arith.constant 256 : index
    %74 = vector.load %arg7[%c0_36, %c256] : memref<1x512xf32, #tpu.memory_space<vmem>>, vector<1x128xf32>
    %c0_37 = arith.constant 0 : index
    %c256_38 = arith.constant 256 : index
    %75 = vector.load %arg3[%c0_37, %c256_38] : memref<128x512xbf16, #tpu.memory_space<vmem>>, vector<128x128xbf16>
    %cst_39 = arith.constant dense<0.000000e+00> : vector<64x128xf32>
    %76 = tpu.matmul %4, %75, %cst_39 {dimension_numbers = #tpu.dot_dimension_numbers<[1], [0], [0], [1], [0, 0, 1, 1], [], []>} : vector<64x128xbf16>, vector<128x128xbf16>, vector<64x128xf32> -> vector<64x128xf32>
    %cst_40 = arith.constant 2.000000e+00 : f32
    %77 = vector.broadcast %cst_40 : f32 to vector<64x128xf32>
    %78 = arith.mulf %77, %76 : vector<64x128xf32>
    %79 = vector.broadcast %74 : vector<1x128xf32> to vector<64x128xf32>
    %80 = arith.subf %79, %78 : vector<64x128xf32>
    %cst_41 = arith.constant dense<0x7F800000> : vector<64xf32>
    %81 = vector.multi_reduction <minimumf>, %80, %cst_41 [1] : vector<64x128xf32> to vector<64xf32>
    %82 = vector.shape_cast %81 : vector<64xf32> to vector<64x1xf32>
    %83 = tpu.reduce_index %80 {axis = 1 : i32, kind = #tpu.reduction_kind<arg_min>} : vector<64x128xf32> -> vector<64xi32>
    %84 = vector.shape_cast %83 : vector<64xi32> to vector<64x1xi32>
    %85 = tpu.iota {dimensions = array<i32: 1>} : vector<64x128xi32>
    %86 = vector.broadcast %84 : vector<64x1xi32> to vector<64x128xi32>
    %87 = arith.cmpi eq, %86, %85 : vector<64x128xi32>
    %88 = arith.extui %87 : vector<64x128xi1> to vector<64x128xi32>
    %89 = arith.sitofp %88 : vector<64x128xi32> to vector<64x128xf32>
    %90 = arith.truncf %89 : vector<64x128xf32> to vector<64x128xbf16>
    %c256_42 = arith.constant 256 : index
    %c0_43 = arith.constant 0 : index
    %91 = vector.load %arg4[%c256_42, %c0_43] : memref<512x128xbf16, #tpu.memory_space<vmem>>, vector<128x128xbf16>
    %cst_44 = arith.constant dense<0.000000e+00> : vector<64x128xf32>
    %92 = tpu.matmul %90, %91, %cst_44 {dimension_numbers = #tpu.dot_dimension_numbers<[1], [0], [0], [1], [0, 0, 1, 1], [], []>} : vector<64x128xbf16>, vector<128x128xbf16>, vector<64x128xf32> -> vector<64x128xf32>
    %c256_45 = arith.constant 256 : index
    %c0_46 = arith.constant 0 : index
    %93 = vector.load %arg5[%c256_45, %c0_46] : memref<512x128xbf16, #tpu.memory_space<vmem>>, vector<128x128xbf16>
    %cst_47 = arith.constant dense<0.000000e+00> : vector<64x128xf32>
    %94 = tpu.matmul %90, %93, %cst_47 {dimension_numbers = #tpu.dot_dimension_numbers<[1], [0], [0], [1], [0, 0, 1, 1], [], []>} : vector<64x128xbf16>, vector<128x128xbf16>, vector<64x128xf32> -> vector<64x128xf32>
    %95 = arith.addf %92, %94 : vector<64x128xf32>
    %c256_48 = arith.constant 256 : index
    %c0_49 = arith.constant 0 : index
    %96 = vector.load %arg6[%c256_48, %c0_49] : memref<512x128xbf16, #tpu.memory_space<vmem>>, vector<128x128xbf16>
    %cst_50 = arith.constant dense<0.000000e+00> : vector<64x128xf32>
    %97 = tpu.matmul %90, %96, %cst_50 {dimension_numbers = #tpu.dot_dimension_numbers<[1], [0], [0], [1], [0, 0, 1, 1], [], []>} : vector<64x128xbf16>, vector<128x128xbf16>, vector<64x128xf32> -> vector<64x128xf32>
    %98 = arith.addf %95, %97 : vector<64x128xf32>
    %99 = arith.cmpf olt, %82, %73 : vector<64x1xf32>
    %100 = vector.shape_cast %99 : vector<64x1xi1> to vector<64x1xi1>
    %101 = vector.broadcast %100 : vector<64x1xi1> to vector<64x128xi1>
    %102 = arith.select %101, %98, %69 : vector<64x128xi1>, vector<64x128xf32>
    %c256_i32 = arith.constant 256 : i32
    %103 = vector.broadcast %c256_i32 : i32 to vector<64x1xi32>
    %104 = arith.addi %84, %103 : vector<64x1xi32>
    %105 = arith.select %99, %104, %72 : vector<64x1xi1>, vector<64x1xi32>
    %106 = arith.minimumf %73, %82 : vector<64x1xf32>
    %c0_51 = arith.constant 0 : index
    %c384 = arith.constant 384 : index
    %107 = vector.load %arg7[%c0_51, %c384] : memref<1x512xf32, #tpu.memory_space<vmem>>, vector<1x128xf32>
    %c0_52 = arith.constant 0 : index
    %c384_53 = arith.constant 384 : index
    %108 = vector.load %arg3[%c0_52, %c384_53] : memref<128x512xbf16, #tpu.memory_space<vmem>>, vector<128x128xbf16>
    %cst_54 = arith.constant dense<0.000000e+00> : vector<64x128xf32>
    %109 = tpu.matmul %4, %108, %cst_54 {dimension_numbers = #tpu.dot_dimension_numbers<[1], [0], [0], [1], [0, 0, 1, 1], [], []>} : vector<64x128xbf16>, vector<128x128xbf16>, vector<64x128xf32> -> vector<64x128xf32>
    %cst_55 = arith.constant 2.000000e+00 : f32
    %110 = vector.broadcast %cst_55 : f32 to vector<64x128xf32>
    %111 = arith.mulf %110, %109 : vector<64x128xf32>
    %112 = vector.broadcast %107 : vector<1x128xf32> to vector<64x128xf32>
    %113 = arith.subf %112, %111 : vector<64x128xf32>
    %cst_56 = arith.constant dense<0x7F800000> : vector<64xf32>
    %114 = vector.multi_reduction <minimumf>, %113, %cst_56 [1] : vector<64x128xf32> to vector<64xf32>
    %115 = vector.shape_cast %114 : vector<64xf32> to vector<64x1xf32>
    %116 = tpu.reduce_index %113 {axis = 1 : i32, kind = #tpu.reduction_kind<arg_min>} : vector<64x128xf32> -> vector<64xi32>
    %117 = vector.shape_cast %116 : vector<64xi32> to vector<64x1xi32>
    %118 = tpu.iota {dimensions = array<i32: 1>} : vector<64x128xi32>
    %119 = vector.broadcast %117 : vector<64x1xi32> to vector<64x128xi32>
    %120 = arith.cmpi eq, %119, %118 : vector<64x128xi32>
    %121 = arith.extui %120 : vector<64x128xi1> to vector<64x128xi32>
    %122 = arith.sitofp %121 : vector<64x128xi32> to vector<64x128xf32>
    %123 = arith.truncf %122 : vector<64x128xf32> to vector<64x128xbf16>
    %c384_57 = arith.constant 384 : index
    %c0_58 = arith.constant 0 : index
    %124 = vector.load %arg4[%c384_57, %c0_58] : memref<512x128xbf16, #tpu.memory_space<vmem>>, vector<128x128xbf16>
    %cst_59 = arith.constant dense<0.000000e+00> : vector<64x128xf32>
    %125 = tpu.matmul %123, %124, %cst_59 {dimension_numbers = #tpu.dot_dimension_numbers<[1], [0], [0], [1], [0, 0, 1, 1], [], []>} : vector<64x128xbf16>, vector<128x128xbf16>, vector<64x128xf32> -> vector<64x128xf32>
    %c384_60 = arith.constant 384 : index
    %c0_61 = arith.constant 0 : index
    %126 = vector.load %arg5[%c384_60, %c0_61] : memref<512x128xbf16, #tpu.memory_space<vmem>>, vector<128x128xbf16>
    %cst_62 = arith.constant dense<0.000000e+00> : vector<64x128xf32>
    %127 = tpu.matmul %123, %126, %cst_62 {dimension_numbers = #tpu.dot_dimension_numbers<[1], [0], [0], [1], [0, 0, 1, 1], [], []>} : vector<64x128xbf16>, vector<128x128xbf16>, vector<64x128xf32> -> vector<64x128xf32>
    %128 = arith.addf %125, %127 : vector<64x128xf32>
    %c384_63 = arith.constant 384 : index
    %c0_64 = arith.constant 0 : index
    %129 = vector.load %arg6[%c384_63, %c0_64] : memref<512x128xbf16, #tpu.memory_space<vmem>>, vector<128x128xbf16>
    %cst_65 = arith.constant dense<0.000000e+00> : vector<64x128xf32>
    %130 = tpu.matmul %123, %129, %cst_65 {dimension_numbers = #tpu.dot_dimension_numbers<[1], [0], [0], [1], [0, 0, 1, 1], [], []>} : vector<64x128xbf16>, vector<128x128xbf16>, vector<64x128xf32> -> vector<64x128xf32>
    %131 = arith.addf %128, %130 : vector<64x128xf32>
    %132 = arith.cmpf olt, %115, %106 : vector<64x1xf32>
    %133 = vector.shape_cast %132 : vector<64x1xi1> to vector<64x1xi1>
    %134 = vector.broadcast %133 : vector<64x1xi1> to vector<64x128xi1>
    %135 = arith.select %134, %131, %102 : vector<64x128xi1>, vector<64x128xf32>
    %c384_i32 = arith.constant 384 : i32
    %136 = vector.broadcast %c384_i32 : i32 to vector<64x1xi32>
    %137 = arith.addi %117, %136 : vector<64x1xi32>
    %138 = arith.select %132, %137, %105 : vector<64x1xi1>, vector<64x1xi32>
    %c0_66 = arith.constant 0 : index
    %c0_67 = arith.constant 0 : index
    %139 = vector.load %arg8[%c0_66, %c0_67] : memref<64x128xf32, #tpu.memory_space<vmem>>, vector<64x128xf32>
    tpu.vector_store %arg8[%c0_66, %c0_67], %135 {strides = array<i32>} : memref<64x128xf32, #tpu.memory_space<vmem>>, vector<64x128xf32>,
    %140 = arith.subf %135, %3 : vector<64x128xf32>
    %c0_68 = arith.constant 0 : index
    %c0_69 = arith.constant 0 : index
    %c0_70 = arith.constant 0 : index
    %141 = vector.load %arg9[%c0_68, %c0_69, %c0_70] : memref<1x1x128xf32, #tpu.memory_space<vmem>>, vector<1x1x128xf32>
    %142 = arith.mulf %140, %140 : vector<64x128xf32>
    %143 = vector.shape_cast %142 : vector<64x128xf32> to vector<1x64x128xf32>
    %cst_71 = arith.constant dense<0.000000e+00> : vector<1xf32>
    %144 = vector.multi_reduction <add>, %143, %cst_71 [1, 2] : vector<1x64x128xf32> to vector<1xf32>
    %145 = vector.shape_cast %144 : vector<1xf32> to vector<1x1x1xf32>
    %146 = vector.extract %145[0, 0, 0] : f32 from vector<1x1x1xf32>
    %147 = vector.broadcast %146 : f32 to vector<1x1x128xf32>
    %148 = arith.addf %141, %147 : vector<1x1x128xf32>
    %c0_72 = arith.constant 0 : index
    %c0_73 = arith.constant 0 : index
    %c0_74 = arith.constant 0 : index
    %149 = vector.load %arg9[%c0_72, %c0_73, %c0_74] : memref<1x1x128xf32, #tpu.memory_space<vmem>>, vector<1x1x128xf32>
    tpu.vector_store %arg9[%c0_72, %c0_73, %c0_74], %148 {strides = array<i32>} : memref<1x1x128xf32, #tpu.memory_space<vmem>>, vector<1x1x128xf32>,
    %150 = tpu.iota {dimensions = array<i32: 1>} : vector<64x128xi32>
    %c0_i32_75 = arith.constant 0 : i32
    %151 = vector.broadcast %c0_i32_75 : i32 to vector<64x128xi32>
    %152 = arith.addi %150, %151 : vector<64x128xi32>
    %153 = vector.broadcast %138 : vector<64x1xi32> to vector<64x128xi32>
    %154 = arith.cmpi eq, %153, %152 : vector<64x128xi32>
    %155 = arith.extui %154 : vector<64x128xi1> to vector<64x128xi32>
    %156 = arith.sitofp %155 : vector<64x128xi32> to vector<64x128xf32>
    %cst_76 = arith.constant dense<0.000000e+00> : vector<128xf32>
    %157 = vector.multi_reduction <add>, %156, %cst_76 [0] : vector<64x128xf32> to vector<128xf32>
    %158 = vector.shape_cast %157 : vector<128xf32> to vector<1x128xf32>
    %c0_77 = arith.constant 0 : index
    %c0_78 = arith.constant 0 : index
    %c0_79 = arith.constant 0 : index
    %159 = vector.load %arg10[%c0_77, %c0_78, %c0_79] : memref<1x1x512xf32, #tpu.memory_space<vmem>>, vector<1x1x128xf32>
    %160 = vector.shape_cast %158 : vector<1x128xf32> to vector<1x1x128xf32>
    %161 = arith.addf %159, %160 : vector<1x1x128xf32>
    %c0_80 = arith.constant 0 : index
    %c0_81 = arith.constant 0 : index
    %c0_82 = arith.constant 0 : index
    %162 = vector.load %arg10[%c0_80, %c0_81, %c0_82] : memref<1x1x512xf32, #tpu.memory_space<vmem>>, vector<1x1x128xf32>
    tpu.vector_store %arg10[%c0_80, %c0_81, %c0_82], %161 {strides = array<i32>} : memref<1x1x512xf32, #tpu.memory_space<vmem>>, vector<1x1x128xf32>,
    %163 = tpu.iota {dimensions = array<i32: 1>} : vector<64x128xi32>
    %c128_i32_83 = arith.constant 128 : i32
    %164 = vector.broadcast %c128_i32_83 : i32 to vector<64x128xi32>
    %165 = arith.addi %163, %164 : vector<64x128xi32>
    %166 = vector.broadcast %138 : vector<64x1xi32> to vector<64x128xi32>
    %167 = arith.cmpi eq, %166, %165 : vector<64x128xi32>
    %168 = arith.extui %167 : vector<64x128xi1> to vector<64x128xi32>
    %169 = arith.sitofp %168 : vector<64x128xi32> to vector<64x128xf32>
    %cst_84 = arith.constant dense<0.000000e+00> : vector<128xf32>
    %170 = vector.multi_reduction <add>, %169, %cst_84 [0] : vector<64x128xf32> to vector<128xf32>
    %171 = vector.shape_cast %170 : vector<128xf32> to vector<1x128xf32>
    %c0_85 = arith.constant 0 : index
    %c0_86 = arith.constant 0 : index
    %c128_87 = arith.constant 128 : index
    %172 = vector.load %arg10[%c0_85, %c0_86, %c128_87] : memref<1x1x512xf32, #tpu.memory_space<vmem>>, vector<1x1x128xf32>
    %173 = vector.shape_cast %171 : vector<1x128xf32> to vector<1x1x128xf32>
    %174 = arith.addf %172, %173 : vector<1x1x128xf32>
    %c0_88 = arith.constant 0 : index
    %c0_89 = arith.constant 0 : index
    %c128_90 = arith.constant 128 : index
    %175 = vector.load %arg10[%c0_88, %c0_89, %c128_90] : memref<1x1x512xf32, #tpu.memory_space<vmem>>, vector<1x1x128xf32>
    tpu.vector_store %arg10[%c0_88, %c0_89, %c128_90], %174 {strides = array<i32>} : memref<1x1x512xf32, #tpu.memory_space<vmem>>, vector<1x1x128xf32>,
    %176 = tpu.iota {dimensions = array<i32: 1>} : vector<64x128xi32>
    %c256_i32_91 = arith.constant 256 : i32
    %177 = vector.broadcast %c256_i32_91 : i32 to vector<64x128xi32>
    %178 = arith.addi %176, %177 : vector<64x128xi32>
    %179 = vector.broadcast %138 : vector<64x1xi32> to vector<64x128xi32>
    %180 = arith.cmpi eq, %179, %178 : vector<64x128xi32>
    %181 = arith.extui %180 : vector<64x128xi1> to vector<64x128xi32>
    %182 = arith.sitofp %181 : vector<64x128xi32> to vector<64x128xf32>
    %cst_92 = arith.constant dense<0.000000e+00> : vector<128xf32>
    %183 = vector.multi_reduction <add>, %182, %cst_92 [0] : vector<64x128xf32> to vector<128xf32>
    %184 = vector.shape_cast %183 : vector<128xf32> to vector<1x128xf32>
    %c0_93 = arith.constant 0 : index
    %c0_94 = arith.constant 0 : index
    %c256_95 = arith.constant 256 : index
    %185 = vector.load %arg10[%c0_93, %c0_94, %c256_95] : memref<1x1x512xf32, #tpu.memory_space<vmem>>, vector<1x1x128xf32>
    %186 = vector.shape_cast %184 : vector<1x128xf32> to vector<1x1x128xf32>
    %187 = arith.addf %185, %186 : vector<1x1x128xf32>
    %c0_96 = arith.constant 0 : index
    %c0_97 = arith.constant 0 : index
    %c256_98 = arith.constant 256 : index
    %188 = vector.load %arg10[%c0_96, %c0_97, %c256_98] : memref<1x1x512xf32, #tpu.memory_space<vmem>>, vector<1x1x128xf32>
    tpu.vector_store %arg10[%c0_96, %c0_97, %c256_98], %187 {strides = array<i32>} : memref<1x1x512xf32, #tpu.memory_space<vmem>>, vector<1x1x128xf32>,
    %189 = tpu.iota {dimensions = array<i32: 1>} : vector<64x128xi32>
    %c384_i32_99 = arith.constant 384 : i32
    %190 = vector.broadcast %c384_i32_99 : i32 to vector<64x128xi32>
    %191 = arith.addi %189, %190 : vector<64x128xi32>
    %192 = vector.broadcast %138 : vector<64x1xi32> to vector<64x128xi32>
    %193 = arith.cmpi eq, %192, %191 : vector<64x128xi32>
    %194 = arith.extui %193 : vector<64x128xi1> to vector<64x128xi32>
    %195 = arith.sitofp %194 : vector<64x128xi32> to vector<64x128xf32>
    %cst_100 = arith.constant dense<0.000000e+00> : vector<128xf32>
    %196 = vector.multi_reduction <add>, %195, %cst_100 [0] : vector<64x128xf32> to vector<128xf32>
    %197 = vector.shape_cast %196 : vector<128xf32> to vector<1x128xf32>
    %c0_101 = arith.constant 0 : index
    %c0_102 = arith.constant 0 : index
    %c384_103 = arith.constant 384 : index
    %198 = vector.load %arg10[%c0_101, %c0_102, %c384_103] : memref<1x1x512xf32, #tpu.memory_space<vmem>>, vector<1x1x128xf32>
    %199 = vector.shape_cast %197 : vector<1x128xf32> to vector<1x1x128xf32>
    %200 = arith.addf %198, %199 : vector<1x1x128xf32>
    %c0_104 = arith.constant 0 : index
    %c0_105 = arith.constant 0 : index
    %c384_106 = arith.constant 384 : index
    %201 = vector.load %arg10[%c0_104, %c0_105, %c384_106] : memref<1x1x512xf32, #tpu.memory_space<vmem>>, vector<1x1x128xf32>
    tpu.vector_store %arg10[%c0_104, %c0_105, %c384_106], %200 {strides = array<i32>} : memref<1x1x512xf32, #tpu.memory_space<vmem>>, vector<1x1x128xf32>,
    return
  }
  func.func @transform_0(%arg0: i32, %arg1: i32) -> (i32, i32) {
    %c1_i32 = arith.constant 1 : i32
    %0 = arith.muli %arg0, %c1_i32 : i32
    %1 = arith.addi %0, %arg1 : i32
    %c0_i32 = arith.constant 0 : i32
    %c0_i32_0 = arith.constant 0 : i32
    return %1, %c0_i32 : i32, i32
  }
  func.func @transform_1(%arg0: i32, %arg1: i32) -> (i32, i32) {
    %c0_i32 = arith.constant 0 : i32
    %c0_i32_0 = arith.constant 0 : i32
    %c0_i32_1 = arith.constant 0 : i32
    return %c0_i32, %c0_i32_0 : i32, i32
  }
  func.func @transform_2(%arg0: i32, %arg1: i32) -> (i32, i32) {
    %c0_i32 = arith.constant 0 : i32
    %c0_i32_0 = arith.constant 0 : i32
    %c0_i32_1 = arith.constant 0 : i32
    return %c0_i32, %c0_i32_0 : i32, i32
  }
  func.func @transform_3(%arg0: i32, %arg1: i32) -> (i32, i32) {
    %c0_i32 = arith.constant 0 : i32
    %c0_i32_0 = arith.constant 0 : i32
    %c0_i32_1 = arith.constant 0 : i32
    return %c0_i32, %c0_i32_0 : i32, i32
  }
  func.func @transform_4(%arg0: i32, %arg1: i32) -> (i32, i32) {
    %c0_i32 = arith.constant 0 : i32
    %c0_i32_0 = arith.constant 0 : i32
    %c0_i32_1 = arith.constant 0 : i32
    return %c0_i32, %c0_i32_0 : i32, i32
  }
  func.func @transform_5(%arg0: i32, %arg1: i32) -> (i32, i32) {
    %c0_i32 = arith.constant 0 : i32
    %c0_i32_0 = arith.constant 0 : i32
    %c0_i32_1 = arith.constant 0 : i32
    return %c0_i32, %c0_i32_0 : i32, i32
  }
  func.func @transform_6(%arg0: i32, %arg1: i32) -> (i32, i32) {
    %c1_i32 = arith.constant 1 : i32
    %0 = arith.muli %arg0, %c1_i32 : i32
    %1 = arith.addi %0, %arg1 : i32
    %c0_i32 = arith.constant 0 : i32
    %c0_i32_0 = arith.constant 0 : i32
    return %1, %c0_i32 : i32, i32
  }
  func.func @transform_7(%arg0: i32, %arg1: i32) -> (i32, i32, i32) {
    %c0_i32 = arith.constant 0 : i32
    %c0_i32_0 = arith.constant 0 : i32
    %c0_i32_1 = arith.constant 0 : i32
    return %arg0, %c0_i32, %c0_i32_0 : i32, i32, i32
  }
  func.func @transform_8(%arg0: i32, %arg1: i32) -> (i32, i32, i32) {
    %c0_i32 = arith.constant 0 : i32
    %c0_i32_0 = arith.constant 0 : i32
    %c0_i32_1 = arith.constant 0 : i32
    return %arg0, %c0_i32, %c0_i32_0 : i32, i32, i32
  }
}

module attributes {stable_mosaic.version = 11 : i64} {
  func.func @_matmul_bias_act_kernel(%arg0: i32, %arg1: memref<64x576xbf16, #tpu.memory_space<vmem>>, %arg2: memref<576x128xbf16, #tpu.memory_space<vmem>>, %arg3: memref<1x128xf32, #tpu.memory_space<vmem>>, %arg4: memref<64x128xbf16, #tpu.memory_space<vmem>>) attributes {dimension_semantics = [#tpu.dimension_semantics<parallel>], iteration_bounds = array<i64: 2>, scalar_prefetch = 0 : i64, scratch_operands = 0 : i64, tpu.core_type = #tpu.core_type<tc>, window_params = [{transform_indices = @transform_0, window_bounds = array<i64: 64, 576>}, {pipeline_mode = #tpu.pipeline_mode<synchronous>, transform_indices = @transform_1, window_bounds = array<i64: 576, 128>}, {pipeline_mode = #tpu.pipeline_mode<synchronous>, transform_indices = @transform_2, window_bounds = array<i64: 1, 128>}, {transform_indices = @transform_3, window_bounds = array<i64: 64, 128>}]} {
    %c0 = arith.constant 0 : index
    %c0_0 = arith.constant 0 : index
    %0 = vector.load %arg1[%c0, %c0_0] : memref<64x576xbf16, #tpu.memory_space<vmem>>, vector<64x576xbf16>
    %c0_1 = arith.constant 0 : index
    %c0_2 = arith.constant 0 : index
    %1 = vector.load %arg2[%c0_1, %c0_2] : memref<576x128xbf16, #tpu.memory_space<vmem>>, vector<576x128xbf16>
    %cst = arith.constant dense<0.000000e+00> : vector<64x128xf32>
    %2 = tpu.matmul %0, %1, %cst {dimension_numbers = #tpu.dot_dimension_numbers<[1], [0], [0], [1], [0, 0, 1, 1], [], []>} : vector<64x576xbf16>, vector<576x128xbf16>, vector<64x128xf32> -> vector<64x128xf32>
    %c0_3 = arith.constant 0 : index
    %c0_4 = arith.constant 0 : index
    %3 = vector.load %arg3[%c0_3, %c0_4] : memref<1x128xf32, #tpu.memory_space<vmem>>, vector<1x128xf32>
    %4 = vector.broadcast %3 : vector<1x128xf32> to vector<64x128xf32>
    %5 = arith.addf %2, %4 : vector<64x128xf32>
    %cst_5 = arith.constant 0.000000e+00 : f32
    %6 = vector.broadcast %cst_5 : f32 to vector<64x128xf32>
    %7 = arith.maximumf %5, %6 : vector<64x128xf32>
    %8 = arith.truncf %7 : vector<64x128xf32> to vector<64x128xbf16>
    %c0_6 = arith.constant 0 : index
    %c0_7 = arith.constant 0 : index
    %9 = vector.load %arg4[%c0_6, %c0_7] : memref<64x128xbf16, #tpu.memory_space<vmem>>, vector<64x128xbf16>
    tpu.vector_store %arg4[%c0_6, %c0_7], %8 {strides = array<i32>} : memref<64x128xbf16, #tpu.memory_space<vmem>>, vector<64x128xbf16>,
    return
  }
  func.func @transform_0(%arg0: i32) -> (i32, i32) {
    %c0_i32 = arith.constant 0 : i32
    %c0_i32_0 = arith.constant 0 : i32
    return %arg0, %c0_i32 : i32, i32
  }
  func.func @transform_1(%arg0: i32) -> (i32, i32) {
    %c0_i32 = arith.constant 0 : i32
    %c0_i32_0 = arith.constant 0 : i32
    %c0_i32_1 = arith.constant 0 : i32
    return %c0_i32, %c0_i32_0 : i32, i32
  }
  func.func @transform_2(%arg0: i32) -> (i32, i32) {
    %c0_i32 = arith.constant 0 : i32
    %c0_i32_0 = arith.constant 0 : i32
    %c0_i32_1 = arith.constant 0 : i32
    return %c0_i32, %c0_i32_0 : i32, i32
  }
  func.func @transform_3(%arg0: i32) -> (i32, i32) {
    %c0_i32 = arith.constant 0 : i32
    %c0_i32_0 = arith.constant 0 : i32
    return %arg0, %c0_i32 : i32, i32
  }
}

module attributes {stable_mosaic.version = 11 : i64} {
  func.func @_matmul_bias_act_kernel(%arg0: i32, %arg1: memref<256x576xbf16, #tpu.memory_space<vmem>>, %arg2: memref<576x128xbf16, #tpu.memory_space<vmem>>, %arg3: memref<1x128xf32, #tpu.memory_space<vmem>>, %arg4: memref<256x128xf32, #tpu.memory_space<vmem>>) attributes {dimension_semantics = [#tpu.dimension_semantics<parallel>], iteration_bounds = array<i64: 2>, scalar_prefetch = 0 : i64, scratch_operands = 0 : i64, tpu.core_type = #tpu.core_type<tc>, window_params = [{transform_indices = @transform_0, window_bounds = array<i64: 256, 576>}, {pipeline_mode = #tpu.pipeline_mode<synchronous>, transform_indices = @transform_1, window_bounds = array<i64: 576, 128>}, {pipeline_mode = #tpu.pipeline_mode<synchronous>, transform_indices = @transform_2, window_bounds = array<i64: 1, 128>}, {transform_indices = @transform_3, window_bounds = array<i64: 256, 128>}]} {
    %c0 = arith.constant 0 : index
    %c0_0 = arith.constant 0 : index
    %0 = vector.load %arg1[%c0, %c0_0] : memref<256x576xbf16, #tpu.memory_space<vmem>>, vector<256x576xbf16>
    %c0_1 = arith.constant 0 : index
    %c0_2 = arith.constant 0 : index
    %1 = vector.load %arg2[%c0_1, %c0_2] : memref<576x128xbf16, #tpu.memory_space<vmem>>, vector<576x128xbf16>
    %cst = arith.constant dense<0.000000e+00> : vector<256x128xf32>
    %2 = tpu.matmul %0, %1, %cst {dimension_numbers = #tpu.dot_dimension_numbers<[1], [0], [0], [1], [0, 0, 1, 1], [], []>} : vector<256x576xbf16>, vector<576x128xbf16>, vector<256x128xf32> -> vector<256x128xf32>
    %c0_3 = arith.constant 0 : index
    %c0_4 = arith.constant 0 : index
    %3 = vector.load %arg3[%c0_3, %c0_4] : memref<1x128xf32, #tpu.memory_space<vmem>>, vector<1x128xf32>
    %4 = vector.broadcast %3 : vector<1x128xf32> to vector<256x128xf32>
    %5 = arith.addf %2, %4 : vector<256x128xf32>
    %c0_5 = arith.constant 0 : index
    %c0_6 = arith.constant 0 : index
    %6 = vector.load %arg4[%c0_5, %c0_6] : memref<256x128xf32, #tpu.memory_space<vmem>>, vector<256x128xf32>
    tpu.vector_store %arg4[%c0_5, %c0_6], %5 {strides = array<i32>} : memref<256x128xf32, #tpu.memory_space<vmem>>, vector<256x128xf32>,
    return
  }
  func.func @transform_0(%arg0: i32) -> (i32, i32) {
    %c0_i32 = arith.constant 0 : i32
    %c0_i32_0 = arith.constant 0 : i32
    return %arg0, %c0_i32 : i32, i32
  }
  func.func @transform_1(%arg0: i32) -> (i32, i32) {
    %c0_i32 = arith.constant 0 : i32
    %c0_i32_0 = arith.constant 0 : i32
    %c0_i32_1 = arith.constant 0 : i32
    return %c0_i32, %c0_i32_0 : i32, i32
  }
  func.func @transform_2(%arg0: i32) -> (i32, i32) {
    %c0_i32 = arith.constant 0 : i32
    %c0_i32_0 = arith.constant 0 : i32
    %c0_i32_1 = arith.constant 0 : i32
    return %c0_i32, %c0_i32_0 : i32, i32
  }
  func.func @transform_3(%arg0: i32) -> (i32, i32) {
    %c0_i32 = arith.constant 0 : i32
    %c0_i32_0 = arith.constant 0 : i32
    return %arg0, %c0_i32 : i32, i32
  }
}

</mosaic_0001>

<bundles_post_ra>
// kernel: vqvae_forward.7
= control target key start
LH: loop header
LB: loop body
LE: loop exit
PB: predicated region body
PF: predicated region fallthrough
CT: control target
= control target key end

     0   :  { %s1102_s12 = smov 0   ;;  %s1224_s0 = inlined_call_operand.vmem [shape: bf16[512,36], index: 0, kind: input, shape index: {}]   ;;  %s1225_s1 = inlined_call_operand.vmem [shape: bf16[36,128], index: 1, kind: input, shape index: {}]   ;;  %s1226_s2 = inlined_call_operand.vmem [shape: f32[1,128], index: 2, kind: input, shape index: {}]   ;;  %s1227_s3 = inlined_call_operand.vmem [shape: bf16[512,128], index: 3, kind: output, shape index: {}]  }
   0x1 LB: > { %s776_s13 = sadd.s32 4294967295, %s1080_s12   ;;  %p780_p0 = scmp.ge.s32.totalorder %s1080_s12, 1  ;;  %s1080_s12 = sphi %s1102_s12, %s13_s12  }
   0x2   : > { %p138_p1 = scmp.lt.s32.totalorder %s1080_s12, 3 }
   0x4   : > { %p139_p2 = pnand %p780_p0, %p138_p1 }
   0x5   : > { %v1055_v0 = vld [vmem:[%s1225_s1] sm:$0xff] (!%p139_p2)   ;;  %v1056_v1 = vld [vmem:[%s1225_s1 + $0x8] sm:$0xff] (!%p139_p2)   ;;  %s781_s18 = sshll.u32 (!%p139_p2), %s776_s13, 5  ;;  %v1057_v2 = vld [vmem:[%s1225_s1 + $0x10] ss:$0 sps:$4 sm:$0x33] (!%p139_p2)  }
   0x6   : > { %142 = sbr.rel (%p139_p2) target bundleno = 265 (0x109), region = 32  ;;  %1001 = vmatprep.subr.bf16.mxu0 (!%p139_p2), %v1055_v0  ;;  %1039 = vmatprep.subr.bf16.mxu1 (!%p139_p2), %v1055_v0  ;;  %p163_p3 = scmp.lt.s32.totalorder (!%p139_p2), %s781_s18, 63  ;;  %vm363_vm0 = vcmask (!%p139_p2), 1041408   ;;  %vm314_vm1 = vcmask (!%p139_p2), 293888   ;;  %v1164_v20 = vld [vmem:[%s1226_s2] ss:$0 sm:$0xff] (!%p139_p2) }
   0x7   : > { %1002 = vmatpush3.bf16.msra.mxu0 (!%p139_p2), %v1055_v0  ;;  %1042 = vmatpush3.bf16.msra.mxu1 (!%p139_p2), %v1055_v0  ;;  %v365_v3 = vsel (!%p139_p2), %vm363_vm0, %v1057_v2, 0 }
   0x8   : > { %1003 = vmatprep.subr.bf16.mxu0 (!%p139_p2), %v1056_v1  ;;  %1040 = vmatprep.subr.bf16.mxu1 (!%p139_p2), %v1056_v1 }
   0xb   : > { %1004 = vmatpush3.bf16.msra.mxu0 (!%p139_p2), %v1056_v1  ;;  %1043 = vmatpush3.bf16.msra.mxu1 (!%p139_p2), %v1056_v1 }
   0xc   : > { %1045 = vmatprep.subr.msk.bf16.mxu0 (!%p139_p2), %vm363_vm0, %v1057_v2  ;;  %1046 = vmatprep.subr.msk.bf16.mxu1 (!%p139_p2), %vm363_vm0, %v1057_v2 }
   0xd   : > { %s1229_s18 = smov (!%p163_p3, %s781_s18), 63 }
   0xe   : > { %s782_s21 = sshll.u32 %s1229_s18, 2 }
   0xf   : > { %s1127_s24 = scalar_lea.vmem %s1224_s0, %s782_s21  ;;  %1006 = vmatpush3.bf16.msra.mxu0 %v365_v3  ;;  %1044 = vmatpush3.bf16.msra.mxu1 %v365_v3  ;;  %s1179_s29 = scalar_lea.vmem %s1227_s3, %s782_s21 }
  0x10   : > { %v1058_v4 = vld [vmem:[%s1127_s24] sm:$0xff]   ;;  %v1060_v6 = vld [vmem:[%s1127_s24 + $0x8] sm:$0xff]   ;;  %v1062_v8 = vld [vmem:[%s1127_s24 + $0x10] sm:$0xff]  }
  0x11   : > { %v1059_v5 = vld [vmem:[%s1127_s24 + $0x40] sm:$0xff]   ;;  %1007 = vmatprep.mubr.msk.bf16.mxu0 %vm314_vm1, %v1058_v4  ;;  %v1061_v7 = vld [vmem:[%s1127_s24 + $0x48] sm:$0xff]   ;;  %v1063_v9 = vld [vmem:[%s1127_s24 + $0x50] sm:$0xff]  }
  0x12   : > { %1023 = vmatprep.mubr.msk.bf16.mxu1 %vm314_vm1, %v1059_v5  ;;  %1008 = vmatmul.mubr.msk.bf16.vlgmr.msra.gmra.mrb[0].mxu0 %vm314_vm1, %v1060_v6  ;;  %v1064_v10 = vld [vmem:[%s1127_s24 + $0x18] sm:$0xff]   ;;  %v1066_v12 = vld [vmem:[%s1127_s24 + $0x20] sm:$0xff]   ;;  %v1068_v14 = vld [vmem:[%s1127_s24 + $0x28] sm:$0xff]  }
  0x13   : > { %1024 = vmatmul.mubr.msk.bf16.vlgmr.msra.gmra.mrb[0].mxu1 %vm314_vm1, %v1061_v7  ;;  %1011 = vmatprep.mubr.msk.bf16.mxu0 %vm314_vm1, %v1062_v8  ;;  %v1065_v11 = vld [vmem:[%s1127_s24 + $0x58] sm:$0xff]   ;;  %v1067_v13 = vld [vmem:[%s1127_s24 + $0x60] sm:$0xff]   ;;  %v1069_v15 = vld [vmem:[%s1127_s24 + $0x68] sm:$0xff]  }
  0x14   : > { %1027 = vmatprep.mubr.msk.bf16.mxu1 %vm314_vm1, %v1063_v9  ;;  %v1070_v16 = vld [vmem:[%s1127_s24 + $0x30] sm:$0xff]   ;;  %v1072_v18 = vld [vmem:[%s1127_s24 + $0x38] sm:$0xff]  }
  0x15   : > { %v1071_v17 = vld [vmem:[%s1127_s24 + $0x70] sm:$0xff]   ;;  %v1073_v19 = vld [vmem:[%s1127_s24 + $0x78] sm:$0xff]  }
  0x1a   : > { %1012 = vmatmul.mubr.msk.bf16.gmra.mrb[4].mxu0 %vm314_vm1, %v1064_v10 }
  0x1b   : > { %1028 = vmatmul.mubr.msk.bf16.gmra.mrb[4].mxu1 %vm314_vm1, %v1065_v11  ;;  %1015 = vmatprep.mubr.msk.bf16.mxu0 %vm314_vm1, %v1066_v12 }
  0x1c   : > { %1031 = vmatprep.mubr.msk.bf16.mxu1 %vm314_vm1, %v1067_v13 }
  0x22   : > { %1016 = vmatmul.mubr.msk.bf16.gmra.mrb[8].mxu0 %vm314_vm1, %v1068_v14 }
  0x23   : > { %1032 = vmatmul.mubr.msk.bf16.gmra.mrb[8].mxu1 %vm314_vm1, %v1069_v15  ;;  %1019 = vmatprep.mubr.msk.bf16.mxu0 %vm314_vm1, %v1070_v16 }
  0x24   : > { %1035 = vmatprep.mubr.msk.bf16.mxu1 %vm314_vm1, %v1071_v17 }
  0x2a   : > { %1020 = vmatmul.mubr.msk.bf16.gmra.mrb[12].mxu0 %vm314_vm1, %v1072_v18 }
  0x2b   : > { %1036 = vmatmul.mubr.msk.bf16.gmra.mrb[12].mxu1 %vm314_vm1, %v1073_v19 }
  0xe5   : > { %v1009_v21 = vpop.f32.mrb[0].mxu0 }
  0xe6   : > { %v1025_v22 = vpop.f32.mrb[0].mxu1  ;;  %v410_v23 = vadd.f32 %v1009_v21, %v1164_v20  ;;  %v401_v25 = vpop.f32.mrb[1].mxu0 }
  0xe7   : > { %v474_v24 = vadd.f32 %v1025_v22, %v1164_v20  ;;  %v465_v26 = vpop.f32.mrb[1].mxu1  ;;  %v402_v27 = vadd.f32 %v1164_v20, %v401_v25  ;;  %v1010_v29 = vpop.f32.mrb[2].mxu0 }
  0xe8   : > { %v466_v28 = vadd.f32 %v1164_v20, %v465_v26  ;;  %v1026_v30 = vpop.f32.mrb[2].mxu1  ;;  %v413_v31 = vadd.f32 %v1010_v29, %v1164_v20  ;;  %v404_v33 = vpop.f32.mrb[3].mxu0  ;;  %v530_v37 = vmax.f32 %v410_v23, 0.0 }
  0xe9   : > { %v477_v32 = vadd.f32 %v1026_v30, %v1164_v20  ;;  %v468_v34 = vpop.f32.mrb[3].mxu1  ;;  %v405_v35 = vadd.f32 %v1164_v20, %v404_v33  ;;  %v546_v38 = vmax.f32 %v474_v24, 0.0  ;;  %v528_v41 = vmax.f32 %v402_v27, 0.0 }
  0xea   : > { %v469_v36 = vadd.f32 %v1164_v20, %v468_v34  ;;  %v531_v39 = vmax.f32 %v413_v31, 0.0  ;;  %v544_v42 = vmax.f32 %v466_v28, 0.0 }
  0xeb   : > { %v547_v40 = vmax.f32 %v477_v32, 0.0  ;;  %v529_v43 = vmax.f32 %v405_v35, 0.0 }
  0xec   : > { %v545_v44 = vmax.f32 %v469_v36, 0.0  ;;  %v895_v45 = vpack.c.bf16 %v531_v39, %v530_v37 }
  0xed   : > { %v935_v46 = vpack.c.bf16 %v547_v40, %v546_v38  ;;  %v890_v47 = vpack.c.bf16 %v529_v43, %v528_v41  ;;  %v1013_v49 = vpop.f32.mrb[4].mxu0 }
  0xee   : > { %v930_v48 = vpack.c.bf16 %v545_v44, %v544_v42  ;;  %v1029_v50 = vpop.f32.mrb[4].mxu1  ;;  %967 = vst [vmem:[%s1179_s29 + $0x8] sm:$0xff] %v895_v45   ;;  %v426_v51 = vadd.f32 %v1013_v49, %v1164_v20  ;;  %v417_v53 = vpop.f32.mrb[5].mxu0 }
  0xef   : > { %975 = vst [vmem:[%s1179_s29 + $0x48] sm:$0xff] %v935_v46   ;;  %v490_v52 = vadd.f32 %v1029_v50, %v1164_v20  ;;  %v481_v54 = vpop.f32.mrb[5].mxu1  ;;  %891 = vst [vmem:[%s1179_s29] sm:$0xff] %v890_v47   ;;  %v418_v55 = vadd.f32 %v1164_v20, %v417_v53  ;;  %v1014_v57 = vpop.f32.mrb[6].mxu0 }
  0xf0   : > { %974 = vst [vmem:[%s1179_s29 + $0x40] sm:$0xff] %v930_v48   ;;  %v482_v56 = vadd.f32 %v1164_v20, %v481_v54  ;;  %v1030_v58 = vpop.f32.mrb[6].mxu1  ;;  %v429_v59 = vadd.f32 %v1014_v57, %v1164_v20  ;;  %v420_v61 = vpop.f32.mrb[7].mxu0  ;;  %v534_v1 = vmax.f32 %v426_v51, 0.0 }
  0xf1   : > { %v493_v60 = vadd.f32 %v1030_v58, %v1164_v20  ;;  %v484_v62 = vpop.f32.mrb[7].mxu1  ;;  %v421_v63 = vadd.f32 %v1164_v20, %v420_v61  ;;  %v550_v2 = vmax.f32 %v490_v52, 0.0  ;;  %v532_v5 = vmax.f32 %v418_v55, 0.0 }
  0xf2   : > { %v485_v0 = vadd.f32 %v1164_v20, %v484_v62  ;;  %v535_v3 = vmax.f32 %v429_v59, 0.0  ;;  %v548_v6 = vmax.f32 %v482_v56, 0.0 }
  0xf3   : > { %v551_v4 = vmax.f32 %v493_v60, 0.0  ;;  %v533_v7 = vmax.f32 %v421_v63, 0.0 }
  0xf4   : > { %v549_v8 = vmax.f32 %v485_v0, 0.0  ;;  %v905_v9 = vpack.c.bf16 %v535_v3, %v534_v1 }
  0xf5   : > { %v945_v10 = vpack.c.bf16 %v551_v4, %v550_v2  ;;  %v900_v11 = vpack.c.bf16 %v533_v7, %v532_v5  ;;  %v1017_v13 = vpop.f32.mrb[8].mxu0 }
  0xf6   : > { %v940_v12 = vpack.c.bf16 %v549_v8, %v548_v6  ;;  %v1033_v14 = vpop.f32.mrb[8].mxu1  ;;  %969 = vst [vmem:[%s1179_s29 + $0x18] sm:$0xff] %v905_v9   ;;  %v442_v15 = vadd.f32 %v1017_v13, %v1164_v20  ;;  %v433_v17 = vpop.f32.mrb[9].mxu0 }
  0xf7   : > { %977 = vst [vmem:[%s1179_s29 + $0x58] sm:$0xff] %v945_v10   ;;  %v506_v16 = vadd.f32 %v1033_v14, %v1164_v20  ;;  %v497_v18 = vpop.f32.mrb[9].mxu1  ;;  %968 = vst [vmem:[%s1179_s29 + $0x10] sm:$0xff] %v900_v11   ;;  %v434_v19 = vadd.f32 %v1164_v20, %v433_v17  ;;  %v1018_v22 = vpop.f32.mrb[10].mxu0 }
  0xf8   : > { %976 = vst [vmem:[%s1179_s29 + $0x50] sm:$0xff] %v940_v12   ;;  %v498_v21 = vadd.f32 %v1164_v20, %v497_v18  ;;  %v1034_v23 = vpop.f32.mrb[10].mxu1  ;;  %v445_v24 = vadd.f32 %v1018_v22, %v1164_v20  ;;  %v436_v26 = vpop.f32.mrb[11].mxu0  ;;  %v538_v30 = vmax.f32 %v442_v15, 0.0 }
  0xf9   : > { %v509_v25 = vadd.f32 %v1034_v23, %v1164_v20  ;;  %v500_v27 = vpop.f32.mrb[11].mxu1  ;;  %v437_v28 = vadd.f32 %v1164_v20, %v436_v26  ;;  %v554_v31 = vmax.f32 %v506_v16, 0.0  ;;  %v536_v34 = vmax.f32 %v434_v19, 0.0 }
  0xfa   : > { %v501_v29 = vadd.f32 %v1164_v20, %v500_v27  ;;  %v539_v32 = vmax.f32 %v445_v24, 0.0  ;;  %v552_v35 = vmax.f32 %v498_v21, 0.0 }
  0xfb   : > { %v555_v33 = vmax.f32 %v509_v25, 0.0  ;;  %v537_v36 = vmax.f32 %v437_v28, 0.0 }
  0xfc   : > { %v553_v37 = vmax.f32 %v501_v29, 0.0  ;;  %v915_v38 = vpack.c.bf16 %v539_v32, %v538_v30 }
  0xfd   : > { %v955_v39 = vpack.c.bf16 %v555_v33, %v554_v31  ;;  %v910_v40 = vpack.c.bf16 %v537_v36, %v536_v34  ;;  %v1021_v42 = vpop.f32.mrb[12].mxu0 }
  0xfe   : > { %v950_v41 = vpack.c.bf16 %v553_v37, %v552_v35  ;;  %v1037_v43 = vpop.f32.mrb[12].mxu1  ;;  %971 = vst [vmem:[%s1179_s29 + $0x28] sm:$0xff] %v915_v38   ;;  %v458_v44 = vadd.f32 %v1021_v42, %v1164_v20  ;;  %v449_v46 = vpop.f32.mrb[13].mxu0 }
  0xff   : > { %979 = vst [vmem:[%s1179_s29 + $0x68] sm:$0xff] %v955_v39   ;;  %v522_v45 = vadd.f32 %v1037_v43, %v1164_v20  ;;  %v513_v47 = vpop.f32.mrb[13].mxu1  ;;  %970 = vst [vmem:[%s1179_s29 + $0x20] sm:$0xff] %v910_v40   ;;  %v450_v48 = vadd.f32 %v1164_v20, %v449_v46  ;;  %v1022_v50 = vpop.f32.mrb[14].mxu0 }
 0x100   : > { %978 = vst [vmem:[%s1179_s29 + $0x60] sm:$0xff] %v950_v41   ;;  %v514_v49 = vadd.f32 %v1164_v20, %v513_v47  ;;  %v1038_v51 = vpop.f32.mrb[14].mxu1  ;;  %v461_v52 = vadd.f32 %v1022_v50, %v1164_v20  ;;  %v452_v54 = vpop.f32.mrb[15].mxu0  ;;  %v542_v58 = vmax.f32 %v458_v44, 0.0 }
 0x101   : > { %v525_v53 = vadd.f32 %v1038_v51, %v1164_v20  ;;  %v516_v55 = vpop.f32.mrb[15].mxu1  ;;  %v453_v56 = vadd.f32 %v1164_v20, %v452_v54  ;;  %v558_v59 = vmax.f32 %v522_v45, 0.0  ;;  %v540_v62 = vmax.f32 %v450_v48, 0.0 }
 0x102   : > { %v517_v57 = vadd.f32 %v1164_v20, %v516_v55  ;;  %v543_v60 = vmax.f32 %v461_v52, 0.0  ;;  %v556_v63 = vmax.f32 %v514_v49, 0.0 }
 0x103   : > { %v559_v61 = vmax.f32 %v525_v53, 0.0  ;;  %v541_v0 = vmax.f32 %v453_v56, 0.0 }
 0x104   : > { %v557_v1 = vmax.f32 %v517_v57, 0.0  ;;  %v925_v2 = vpack.c.bf16 %v543_v60, %v542_v58 }
 0x105   : > { %v965_v3 = vpack.c.bf16 %v559_v61, %v558_v59  ;;  %v920_v4 = vpack.c.bf16 %v541_v0, %v540_v62 }
 0x106   : > { %v960_v5 = vpack.c.bf16 %v557_v1, %v556_v63  ;;  %973 = vst [vmem:[%s1179_s29 + $0x38] sm:$0xff] %v925_v2  }
 0x107   : > { %981 = vst [vmem:[%s1179_s29 + $0x78] sm:$0xff] %v965_v3   ;;  %972 = vst [vmem:[%s1179_s29 + $0x30] sm:$0xff] %v920_v4  }
 0x108   : > { %980 = vst [vmem:[%s1179_s29 + $0x70] sm:$0xff] %v960_v5  }
 0x109 PF: > { %s13_s12 = sadd.s32 1, %s1080_s12  }
 0x10a   : > { %p10_p4 = scmp.ge.s32.totalorder %s13_s12, 4  }
 0x10c   :  { %12 = sbr.rel (!%p10_p4) target bundleno = 1 (0x1), region = 62 }

// kernel: vqvae_forward.8
= control target key start
LH: loop header
LB: loop body
LE: loop exit
PB: predicated region body
PF: predicated region fallthrough
CT: control target
= control target key end

     0   :  { %s1225_s12 = smov 0   ;;  %s1384_s0 = inlined_call_operand.vmem [shape: bf16[128,576], index: 0, kind: input, shape index: {}]   ;;  %s1385_s1 = inlined_call_operand.vmem [shape: bf16[576,128], index: 1, kind: input, shape index: {}]   ;;  %s1386_s2 = inlined_call_operand.vmem [shape: f32[1,128], index: 2, kind: input, shape index: {}]   ;;  %s1387_s3 = inlined_call_operand.vmem [shape: bf16[128,128], index: 3, kind: output, shape index: {}]  }
   0x1 LB: > { %s901_s13 = sadd.s32 4294967295, %s1203_s12   ;;  %p905_p0 = scmp.ge.s32.totalorder %s1203_s12, 1  ;;  %s1203_s12 = sphi %s1225_s12, %s13_s12  }
   0x2   : > { %p139_p1 = scmp.lt.s32.totalorder %s1203_s12, 3 }
   0x4   : > { %p140_p2 = pnand %p905_p0, %p139_p1 }
   0x5   : > { %v1133_v0 = vld [vmem:[%s1385_s1 + $0x40] sm:$0xff] (!%p140_p2)   ;;  %v1137_v4 = vld [vmem:[%s1385_s1 + $0x48] sm:$0xff] (!%p140_p2)   ;;  %v1141_v8 = vld [vmem:[%s1385_s1 + $0x50] sm:$0xff] (!%p140_p2)   ;;  %s906_s19 = sshll.u32 (!%p140_p2), %s901_s13, 3  ;;  %vm597_vm0 = vcmask (!%p140_p2), 523264  }
   0x6   : > { %143 = sbr.rel (%p140_p2) target bundleno = 292 (0x124), region = 32  ;;  %v1134_v1 = vld [vmem:[%s1385_s1 + $0xc0] sm:$0xff] (!%p140_p2)   ;;  %1012 = vmatprep.subr.bf16.mxu0 (!%p140_p2), %v1133_v0  ;;  %v1138_v5 = vld [vmem:[%s1385_s1 + $0xc8] sm:$0xff] (!%p140_p2)   ;;  %v1142_v9 = vld [vmem:[%s1385_s1 + $0xd0] sm:$0xff] (!%p140_p2)   ;;  %p165_p3 = scmp.lt.s32.totalorder (!%p140_p2), %s906_s19, 15 }
   0x7   : > { %v1135_v2 = vld [vmem:[%s1385_s1] sm:$0xff] (!%p140_p2)   ;;  %1052 = vmatprep.subr.bf16.mxu1 (!%p140_p2), %v1134_v1  ;;  %v1139_v6 = vld [vmem:[%s1385_s1 + $0x8] sm:$0xff] (!%p140_p2)   ;;  %v1143_v10 = vld [vmem:[%s1385_s1 + $0x10] sm:$0xff] (!%p140_p2)  }
   0x8   : > { %v1136_v3 = vld [vmem:[%s1385_s1 + $0x80] sm:$0xff] (!%p140_p2)   ;;  %1013 = vmatpush3.bf16.msra.mxu0 (!%p140_p2), %v1135_v2  ;;  %v1140_v7 = vld [vmem:[%s1385_s1 + $0x88] sm:$0xff] (!%p140_p2)   ;;  %v1144_v11 = vld [vmem:[%s1385_s1 + $0x90] sm:$0xff] (!%p140_p2)  }
   0x9   : > { %1053 = vmatpush3.bf16.msra.mxu1 (!%p140_p2), %v1136_v3  ;;  %1014 = vmatprep.subr.bf16.mxu0 (!%p140_p2), %v1137_v4  ;;  %v1145_v12 = vld [vmem:[%s1385_s1 + $0x58] sm:$0xff] (!%p140_p2)   ;;  %v1149_v16 = vld [vmem:[%s1385_s1 + $0x60] sm:$0xff] (!%p140_p2)   ;;  %v1153_v20 = vld [vmem:[%s1385_s1 + $0x68] sm:$0xff] (!%p140_p2)  }
   0xa   : > { %1054 = vmatprep.subr.bf16.mxu1 (!%p140_p2), %v1138_v5  ;;  %v1146_v13 = vld [vmem:[%s1385_s1 + $0xd8] sm:$0xff] (!%p140_p2)   ;;  %v1150_v17 = vld [vmem:[%s1385_s1 + $0xe0] sm:$0xff] (!%p140_p2)   ;;  %v1154_v21 = vld [vmem:[%s1385_s1 + $0xe8] sm:$0xff] (!%p140_p2)  }
   0xb   : > { %v1147_v14 = vld [vmem:[%s1385_s1 + $0x18] sm:$0xff] (!%p140_p2)   ;;  %v1151_v18 = vld [vmem:[%s1385_s1 + $0x20] sm:$0xff] (!%p140_p2)   ;;  %v1155_v22 = vld [vmem:[%s1385_s1 + $0x28] sm:$0xff] (!%p140_p2)  }
   0xc   : > { %1015 = vmatpush3.bf16.msra.mxu0 (!%p140_p2), %v1139_v6  ;;  %v1148_v15 = vld [vmem:[%s1385_s1 + $0x98] sm:$0xff] (!%p140_p2)   ;;  %v1152_v19 = vld [vmem:[%s1385_s1 + $0xa0] sm:$0xff] (!%p140_p2)   ;;  %v1156_v23 = vld [vmem:[%s1385_s1 + $0xa8] sm:$0xff] (!%p140_p2)  }
   0xd   : > { %1055 = vmatpush3.bf16.msra.mxu1 %v1140_v7  ;;  %1016 = vmatprep.subr.bf16.mxu0 %v1141_v8  ;;  %s1389_s19 = smov (!%p165_p3, %s906_s19), 15  ;;  %v1157_v24 = vld [vmem:[%s1385_s1 + $0x70] sm:$0xff]   ;;  %v1161_v28 = vld [vmem:[%s1385_s1 + $0x78] sm:$0xff]   ;;  %v1171_v36 = vld [vmem:[%s1385_s1 + $0x100] sm:$0xff]  }
   0xe   : > { %1056 = vmatprep.subr.bf16.mxu1 %v1142_v9  ;;  %v1158_v25 = vld [vmem:[%s1385_s1 + $0xf0] sm:$0xff]   ;;  %s1124_s16 = smul.u32 20, %s1389_s19  ;;  %v1162_v29 = vld [vmem:[%s1385_s1 + $0xf8] sm:$0xff]   ;;  %v1178_v39 = vld [vmem:[%s1385_s1 + $0x108] sm:$0xff]   ;;  %s909_s17 = sshll.u32 %s1389_s19, 2 }
   0xf   : > { %v1159_v26 = vld [vmem:[%s1385_s1 + $0x30] sm:$0xff]   ;;  %v1163_v30 = vld [vmem:[%s1385_s1 + $0x38] sm:$0xff]   ;;  %v910_v58 = vld [vmem:[%s1386_s2] ss:$0 sm:$0xff]  ;;  %s175_s21 = scalar_lea.vmem %s1387_s3, %s909_s17 }
  0x10   : > { %1017 = vmatpush3.bf16.msra.mxu0 %v1143_v10  ;;  %v1160_v27 = vld [vmem:[%s1385_s1 + $0xb0] sm:$0xff]   ;;  %s1331_s13 = scalar_lea.vmem %s1384_s0, %s1124_s16  ;;  %v1164_v31 = vld [vmem:[%s1385_s1 + $0xb8] sm:$0xff]  }
  0x11   : > { %1057 = vmatpush3.bf16.msra.mxu1 %v1144_v11  ;;  %1018 = vmatprep.subr.bf16.mxu0 %v1145_v12  ;;  %v1165_v32 = vld [vmem:[%s1331_s13] ss:$20 sps:$4 sm:$0xff]   ;;  %v1167_v33 = vld [vmem:[%s1331_s13 + $0x4] ss:$20 sps:$4 sm:$0xff]   ;;  %v1168_v34 = vld [vmem:[%s1331_s13 + $0x8] ss:$20 sps:$4 sm:$0xff]  }
  0x12   : > { %1058 = vmatprep.subr.bf16.mxu1 %v1146_v13  ;;  %v1170_v35 = vld [vmem:[%s1331_s13 + $0xc] ss:$20 sps:$4 sm:$0xff]   ;;  %642 = vmatprep.mubr.bf16.mxu0 %v1167_v33  ;;  %v1174_v38 = vld [vmem:[%s1331_s13 + $0x34] ss:$20 sps:$4 sm:$0xff]   ;;  %v1177_v41 = vld [vmem:[%s1331_s13 + $0x30] ss:$20 sps:$4 sm:$0xff]  }
  0x13   : > { %707 = vmatprep.mubr.bf16.mxu1 %v1170_v35  ;;  %v1172_v37 = vld [vmem:[%s1331_s13 + $0x2c] ss:$20 sps:$4 sm:$0xff]   ;;  %v1176_v40 = vld [vmem:[%s1331_s13 + $0x28] ss:$20 sps:$4 sm:$0xff]   ;;  %v1185_v44 = vld [vmem:[%s1385_s1 + $0x110] sm:$0xff]  }
  0x14   : > { %1019 = vmatpush3.bf16.msra.mxu0 %v1147_v14  ;;  %v1179_v42 = vld [vmem:[%s1331_s13 + $0x54] ss:$20 sps:$4 sm:$0xff]   ;;  %v1181_v43 = vld [vmem:[%s1331_s13 + $0x5c] ss:$20 sps:$4 sm:$0xff]   ;;  %v1184_v47 = vld [vmem:[%s1331_s13 + $0x58] ss:$20 sps:$4 sm:$0xff]  }
  0x15   : > { %1059 = vmatpush3.bf16.msra.mxu1 %v1148_v15  ;;  %1020 = vmatprep.subr.bf16.mxu0 %v1149_v16  ;;  %v1192_v45 = vld [vmem:[%s1385_s1 + $0x118] sm:$0xff]   ;;  %v1183_v46 = vld [vmem:[%s1331_s13 + $0x50] ss:$20 sps:$4 sm:$0xff]   ;;  %v1191_v51 = vld [vmem:[%s1331_s13 + $0x80] ss:$20 sps:$4 sm:$0xff]  }
  0x16   : > { %1060 = vmatprep.subr.bf16.mxu1 %v1150_v17  ;;  %v1186_v48 = vld [vmem:[%s1331_s13 + $0x7c] ss:$20 sps:$4 sm:$0xff]   ;;  %v1188_v49 = vld [vmem:[%s1331_s13 + $0x84] ss:$20 sps:$4 sm:$0xff]   ;;  %v1194_v53 = vld [vmem:[%s1331_s13 + $0x60] ss:$20 sps:$4 sm:$0xff]  }
  0x17   : > { %v1190_v50 = vld [vmem:[%s1331_s13 + $0x78] ss:$20 sps:$4 sm:$0xff]   ;;  %v1193_v52 = vld [vmem:[%s1331_s13 + $0x10] ss:$20 sps:$4 sm:$0xff]   ;;  %v1196_v55 = vld [vmem:[%s1331_s13 + $0x88] ss:$20 sps:$4 sm:$0xff]  }
  0x18   : > { %1021 = vmatpush3.bf16.msra.mxu0 %v1151_v18  ;;  %v1195_v54 = vld [vmem:[%s1331_s13 + $0x38] ss:$20 sps:$4 sm:$0xff]  }
  0x19   : > { %1061 = vmatpush3.bf16.msra.mxu1 %v1152_v19  ;;  %1022 = vmatprep.subr.bf16.mxu0 %v1153_v20 }
  0x1a   : > { %1062 = vmatprep.subr.bf16.mxu1 %v1154_v21 }
  0x1c   : > { %1023 = vmatpush3.bf16.msra.mxu0 %v1155_v22 }
  0x1d   : > { %1063 = vmatpush3.bf16.msra.mxu1 %v1156_v23  ;;  %1024 = vmatprep.subr.bf16.mxu0 %v1157_v24 }
  0x1e   : > { %1064 = vmatprep.subr.bf16.mxu1 %v1158_v25 }
  0x20   : > { %1025 = vmatpush3.bf16.msra.mxu0 %v1159_v26 }
  0x21   : > { %1065 = vmatpush3.bf16.msra.mxu1 %v1160_v27  ;;  %1026 = vmatprep.subr.bf16.mxu0 %v1161_v28 }
  0x22   : > { %1066 = vmatprep.subr.bf16.mxu1 %v1162_v29 }
  0x24   : > { %1027 = vmatpush3.bf16.msra.mxu0 %v1163_v30 }
  0x25   : > { %1067 = vmatpush3.bf16.msra.mxu1 %v1164_v31  ;;  %1100 = vmatprep.subr.bf16.mxu0 %v1171_v36 }
  0x26   : > { %1116 = vmatprep.subr.bf16.mxu1 %v1171_v36 }
  0x27   : > { %643 = vmatmul.mubr.bf16.vlgmr.msra.gmra.mrb[0].mxu0 %v1165_v32 }
  0x28   : > { %708 = vmatmul.mubr.bf16.vlgmr.msra.gmra.mrb[0].mxu1 %v1168_v34  ;;  %1101 = vmatpush3.bf16.msra.mxu0 %v1171_v36 }
  0x29   : > { %1120 = vmatpush3.bf16.msra.mxu1 %v1171_v36  ;;  %650 = vmatprep.mubr.bf16.mxu0 %v1172_v37 }
  0x2a   : > { %715 = vmatprep.mubr.bf16.mxu1 %v1174_v38  ;;  %1102 = vmatprep.subr.bf16.mxu0 %v1178_v39 }
  0x2b   : > { %1117 = vmatprep.subr.bf16.mxu1 %v1178_v39 }
  0x2c   : > { %1103 = vmatpush3.bf16.msra.mxu0 %v1178_v39 }
  0x2d   : > { %1121 = vmatpush3.bf16.msra.mxu1 %v1178_v39  ;;  %1104 = vmatprep.subr.bf16.mxu0 %v1185_v44 }
  0x2e   : > { %1118 = vmatprep.subr.bf16.mxu1 %v1185_v44 }
  0x2f   : > { %651 = vmatmul.mubr.bf16.gmra.mrb[4].mxu0 %v1176_v40 }
  0x30   : > { %716 = vmatmul.mubr.bf16.gmra.mrb[4].mxu1 %v1177_v41  ;;  %658 = vmatprep.mubr.bf16.mxu0 %v1179_v42 }
  0x31   : > { %723 = vmatprep.mubr.bf16.mxu1 %v1181_v43  ;;  %1105 = vmatpush3.bf16.msra.mxu0 %v1185_v44 }
  0x32   : > { %1122 = vmatpush3.bf16.msra.mxu1 %v1185_v44  ;;  %1106 = vmatprep.subr.bf16.mxu0 %v1192_v45 }
  0x33   : > { %1119 = vmatprep.subr.bf16.mxu1 %v1192_v45 }
  0x35   : > { %1107 = vmatpush3.bf16.msra.mxu0 %v1192_v45 }
  0x36   : > { %1123 = vmatpush3.bf16.msra.mxu1 %v1192_v45 }
  0x37   : > { %659 = vmatmul.mubr.bf16.gmra.mrb[8].mxu0 %v1183_v46 }
  0x38   : > { %724 = vmatmul.mubr.bf16.gmra.mrb[8].mxu1 %v1184_v47  ;;  %666 = vmatprep.mubr.bf16.mxu0 %v1186_v48 }
  0x39   : > { %731 = vmatprep.mubr.bf16.mxu1 %v1188_v49 }
  0x3f   : > { %667 = vmatmul.mubr.bf16.gmra.mrb[12].mxu0 %v1190_v50 }
  0x40   : > { %732 = vmatmul.mubr.bf16.gmra.mrb[12].mxu1 %v1191_v51  ;;  %1108 = vmatprep.mubr.msk.bf16.mxu0 %vm597_vm0, %v1193_v52 }
  0x41   : > { %1112 = vmatprep.mubr.msk.bf16.mxu1 %vm597_vm0, %v1194_v53 }
  0x47   : > { %1109 = vmatmul.mubr.msk.bf16.vlgmr.msra.gmra.mrb[16].mxu0 %vm597_vm0, %v1195_v54 }
  0x48   : > { %1113 = vmatmul.mubr.msk.bf16.vlgmr.msra.gmra.mrb[16].mxu1 %vm597_vm0, %v1196_v55 }
  0xfa   : > { %v1028_v56 = vpop.f32.mrb[0].mxu0 }
  0xfb   : > { %v1068_v57 = vpop.f32.mrb[0].mxu1  ;;  %v1029_v59 = vpop.f32.mrb[1].mxu0 }
  0xfc   : > { %v1030_v60 = vadd.f32 %v1029_v59, %v1028_v56  ;;  %v1069_v61 = vpop.f32.mrb[1].mxu1  ;;  %v1031_v62 = vpop.f32.mrb[2].mxu0 }
  0xfd   : > { %v1070_v63 = vadd.f32 %v1069_v61, %v1068_v57  ;;  %v1071_v0 = vpop.f32.mrb[2].mxu1  ;;  %v1032_v1 = vpop.f32.mrb[3].mxu0 }
  0xfe   : > { %v645_v2 = vadd.f32 %v1030_v60, %v910_v58  ;;  %v1033_v3 = vadd.f32 %v1032_v1, %v1031_v62  ;;  %v1072_v4 = vpop.f32.mrb[3].mxu1 }
  0xff   : > { %v1073_v5 = vadd.f32 %v1072_v4, %v1071_v0 }
 0x100   : > { %v648_v6 = vadd.f32 %v1033_v3, %v910_v58  ;;  %v710_v7 = vadd.f32 %v1070_v63, %v645_v2 }
 0x102   : > { %v1034_v8 = vpop.f32.mrb[4].mxu0  ;;  %v1374_v9 = vadd.f32 %v1073_v5, %v648_v6 }
 0x103   : > { %v1074_v10 = vpop.f32.mrb[4].mxu1  ;;  %v1035_v11 = vpop.f32.mrb[5].mxu0 }
 0x104   : > { %v1036_v12 = vadd.f32 %v1035_v11, %v1034_v8  ;;  %v1075_v13 = vpop.f32.mrb[5].mxu1  ;;  %v1037_v14 = vpop.f32.mrb[6].mxu0 }
 0x105   : > { %v1076_v15 = vadd.f32 %v1075_v13, %v1074_v10  ;;  %v1077_v16 = vpop.f32.mrb[6].mxu1  ;;  %v1038_v17 = vpop.f32.mrb[7].mxu0 }
 0x106   : > { %v653_v18 = vadd.f32 %v1036_v12, %v910_v58  ;;  %v1039_v19 = vadd.f32 %v1038_v17, %v1037_v14  ;;  %v1078_v20 = vpop.f32.mrb[7].mxu1 }
 0x107   : > { %v1079_v21 = vadd.f32 %v1078_v20, %v1077_v16 }
 0x108   : > { %v656_v22 = vadd.f32 %v1039_v19, %v910_v58  ;;  %v718_v23 = vadd.f32 %v1076_v15, %v653_v18 }
 0x10a   : > { %v1040_v24 = vpop.f32.mrb[8].mxu0  ;;  %v721_v25 = vadd.f32 %v1079_v21, %v656_v22 }
 0x10b   : > { %v1080_v26 = vpop.f32.mrb[8].mxu1  ;;  %v1041_v27 = vpop.f32.mrb[9].mxu0 }
 0x10c   : > { %v1042_v28 = vadd.f32 %v1041_v27, %v1040_v24  ;;  %v1081_v29 = vpop.f32.mrb[9].mxu1  ;;  %v1043_v30 = vpop.f32.mrb[10].mxu0 }
 0x10d   : > { %v1082_v31 = vadd.f32 %v1081_v29, %v1080_v26  ;;  %v1083_v32 = vpop.f32.mrb[10].mxu1  ;;  %v1044_v33 = vpop.f32.mrb[11].mxu0 }
 0x10e   : > { %v661_v34 = vadd.f32 %v1042_v28, %v910_v58  ;;  %v1045_v35 = vadd.f32 %v1044_v33, %v1043_v30  ;;  %v1084_v36 = vpop.f32.mrb[11].mxu1 }
 0x10f   : > { %v1085_v37 = vadd.f32 %v1084_v36, %v1083_v32 }
 0x110   : > { %v664_v38 = vadd.f32 %v1045_v35, %v910_v58  ;;  %v726_v39 = vadd.f32 %v1082_v31, %v661_v34 }
 0x112   : > { %v1046_v40 = vpop.f32.mrb[12].mxu0  ;;  %v729_v41 = vadd.f32 %v1085_v37, %v664_v38 }
 0x113   : > { %v1086_v42 = vpop.f32.mrb[12].mxu1  ;;  %v1047_v43 = vpop.f32.mrb[13].mxu0 }
 0x114   : > { %v1048_v44 = vadd.f32 %v1047_v43, %v1046_v40  ;;  %v1087_v45 = vpop.f32.mrb[13].mxu1  ;;  %v1049_v46 = vpop.f32.mrb[14].mxu0 }
 0x115   : > { %v1088_v47 = vadd.f32 %v1087_v45, %v1086_v42  ;;  %v1089_v48 = vpop.f32.mrb[14].mxu1  ;;  %v1050_v49 = vpop.f32.mrb[15].mxu0 }
 0x116   : > { %v669_v50 = vadd.f32 %v1048_v44, %v910_v58  ;;  %v1051_v51 = vadd.f32 %v1050_v49, %v1049_v46  ;;  %v1090_v52 = vpop.f32.mrb[15].mxu1 }
 0x117   : > { %v1091_v53 = vadd.f32 %v1090_v52, %v1089_v48 }
 0x118   : > { %v672_v54 = vadd.f32 %v1051_v51, %v910_v58  ;;  %v734_v55 = vadd.f32 %v1088_v47, %v669_v50 }
 0x11a   : > { %v1110_v56 = vpop.f32.mrb[16].mxu0  ;;  %v737_v57 = vadd.f32 %v1091_v53, %v672_v54 }
 0x11b   : > { %v783_v59 = vadd.f32 %v1110_v56, %v718_v23  ;;  %v1114_v60 = vpop.f32.mrb[16].mxu1  ;;  %v774_v61 = vpop.f32.mrb[17].mxu0 }
 0x11c   : > { %v799_v62 = vadd.f32 %v1114_v60, %v734_v55  ;;  %v775_v63 = vadd.f32 %v774_v61, %v710_v7  ;;  %v790_v0 = vpop.f32.mrb[17].mxu1  ;;  %v1111_v1 = vpop.f32.mrb[18].mxu0 }
 0x11d   : > { %v791_v2 = vadd.f32 %v790_v0, %v726_v39  ;;  %v786_v3 = vadd.f32 %v1111_v1, %v721_v25  ;;  %v1115_v4 = vpop.f32.mrb[18].mxu1  ;;  %v777_v5 = vpop.f32.mrb[19].mxu0 }
 0x11e   : > { %v802_v58 = vadd.f32 %v1115_v4, %v737_v57  ;;  %v778_v6 = vadd.f32 %v777_v5, %v1374_v9  ;;  %v793_v8 = vpop.f32.mrb[19].mxu1 }
 0x11f   : > { %v997_v10 = vpack.c.bf16 %v786_v3, %v783_v59  ;;  %v794_v11 = vadd.f32 %v793_v8, %v729_v41 }
 0x120   : > { %v1007_v12 = vpack.c.bf16 %v802_v58, %v799_v62  ;;  %v992_v13 = vpack.c.bf16 %v778_v6, %v775_v63 }
 0x121   : > { %1009 = vst [vmem:[%s175_s21 + $0x8] sm:$0xff] %v997_v10   ;;  %v1002_v7 = vpack.c.bf16 %v794_v11, %v791_v2 }
 0x122   : > { %1011 = vst [vmem:[%s175_s21 + $0x18] sm:$0xff] %v1007_v12   ;;  %993 = vst [vmem:[%s175_s21] sm:$0xff] %v992_v13  }
 0x123   : > { %1010 = vst [vmem:[%s175_s21 + $0x10] sm:$0xff] %v1002_v7  }
 0x124 PF: > { %s13_s12 = sadd.s32 1, %s1203_s12  }
 0x125   : > { %p10_p4 = scmp.ge.s32.totalorder %s13_s12, 4  }
 0x127   :  { %12 = sbr.rel (!%p10_p4) target bundleno = 1 (0x1), region = 62 }

// kernel: vqvae_forward.9
= control target key start
LH: loop header
LB: loop body
LE: loop exit
PB: predicated region body
PF: predicated region fallthrough
CT: control target
= control target key end

     0   :  { %s1154_s12 = smov 0   ;;  %s1313_s0 = inlined_call_operand.vmem [shape: bf16[128,576], index: 0, kind: input, shape index: {}]   ;;  %s1314_s1 = inlined_call_operand.vmem [shape: bf16[576,128], index: 1, kind: input, shape index: {}]   ;;  %s1315_s2 = inlined_call_operand.vmem [shape: f32[1,128], index: 2, kind: input, shape index: {}]   ;;  %s1316_s3 = inlined_call_operand.vmem [shape: f32[128,128], index: 3, kind: output, shape index: {}]  }
   0x1 LB: > { %s869_s13 = sadd.s32 4294967295, %s1132_s12   ;;  %p873_p0 = scmp.ge.s32.totalorder %s1132_s12, 1  ;;  %s1132_s12 = sphi %s1154_s12, %s13_s12  }
   0x2   : > { %p139_p1 = scmp.lt.s32.totalorder %s1132_s12, 3 }
   0x4   : > { %p140_p2 = pnand %p873_p0, %p139_p1 }
   0x5   : > { %v1062_v0 = vld [vmem:[%s1314_s1 + $0x40] sm:$0xff] (!%p140_p2)   ;;  %v1066_v4 = vld [vmem:[%s1314_s1 + $0x48] sm:$0xff] (!%p140_p2)   ;;  %v1070_v8 = vld [vmem:[%s1314_s1 + $0x50] sm:$0xff] (!%p140_p2)   ;;  %s874_s19 = sshll.u32 (!%p140_p2), %s869_s13, 3  ;;  %vm597_vm0 = vcmask (!%p140_p2), 523264  }
   0x6   : > { %143 = sbr.rel (%p140_p2) target bundleno = 290 (0x122), region = 32  ;;  %v1063_v1 = vld [vmem:[%s1314_s1 + $0xc0] sm:$0xff] (!%p140_p2)   ;;  %941 = vmatprep.subr.bf16.mxu0 (!%p140_p2), %v1062_v0  ;;  %v1067_v5 = vld [vmem:[%s1314_s1 + $0xc8] sm:$0xff] (!%p140_p2)   ;;  %v1071_v9 = vld [vmem:[%s1314_s1 + $0xd0] sm:$0xff] (!%p140_p2)   ;;  %p165_p3 = scmp.lt.s32.totalorder (!%p140_p2), %s874_s19, 15 }
   0x7   : > { %v1064_v2 = vld [vmem:[%s1314_s1] sm:$0xff] (!%p140_p2)   ;;  %981 = vmatprep.subr.bf16.mxu1 (!%p140_p2), %v1063_v1  ;;  %v1068_v6 = vld [vmem:[%s1314_s1 + $0x8] sm:$0xff] (!%p140_p2)   ;;  %v1072_v10 = vld [vmem:[%s1314_s1 + $0x10] sm:$0xff] (!%p140_p2)  }
   0x8   : > { %v1065_v3 = vld [vmem:[%s1314_s1 + $0x80] sm:$0xff] (!%p140_p2)   ;;  %942 = vmatpush3.bf16.msra.mxu0 (!%p140_p2), %v1064_v2  ;;  %v1069_v7 = vld [vmem:[%s1314_s1 + $0x88] sm:$0xff] (!%p140_p2)   ;;  %v1073_v11 = vld [vmem:[%s1314_s1 + $0x90] sm:$0xff] (!%p140_p2)  }
   0x9   : > { %982 = vmatpush3.bf16.msra.mxu1 (!%p140_p2), %v1065_v3  ;;  %943 = vmatprep.subr.bf16.mxu0 (!%p140_p2), %v1066_v4  ;;  %v1074_v12 = vld [vmem:[%s1314_s1 + $0x58] sm:$0xff] (!%p140_p2)   ;;  %v1078_v16 = vld [vmem:[%s1314_s1 + $0x60] sm:$0xff] (!%p140_p2)   ;;  %v1082_v20 = vld [vmem:[%s1314_s1 + $0x68] sm:$0xff] (!%p140_p2)  }
   0xa   : > { %983 = vmatprep.subr.bf16.mxu1 (!%p140_p2), %v1067_v5  ;;  %v1075_v13 = vld [vmem:[%s1314_s1 + $0xd8] sm:$0xff] (!%p140_p2)   ;;  %v1079_v17 = vld [vmem:[%s1314_s1 + $0xe0] sm:$0xff] (!%p140_p2)   ;;  %v1083_v21 = vld [vmem:[%s1314_s1 + $0xe8] sm:$0xff] (!%p140_p2)  }
   0xb   : > { %v1076_v14 = vld [vmem:[%s1314_s1 + $0x18] sm:$0xff] (!%p140_p2)   ;;  %v1080_v18 = vld [vmem:[%s1314_s1 + $0x20] sm:$0xff] (!%p140_p2)   ;;  %v1084_v22 = vld [vmem:[%s1314_s1 + $0x28] sm:$0xff] (!%p140_p2)  }
   0xc   : > { %944 = vmatpush3.bf16.msra.mxu0 (!%p140_p2), %v1068_v6  ;;  %v1077_v15 = vld [vmem:[%s1314_s1 + $0x98] sm:$0xff] (!%p140_p2)   ;;  %v1081_v19 = vld [vmem:[%s1314_s1 + $0xa0] sm:$0xff] (!%p140_p2)   ;;  %v1085_v23 = vld [vmem:[%s1314_s1 + $0xa8] sm:$0xff] (!%p140_p2)  }
   0xd   : > { %984 = vmatpush3.bf16.msra.mxu1 %v1069_v7  ;;  %945 = vmatprep.subr.bf16.mxu0 %v1070_v8  ;;  %s1318_s19 = smov (!%p165_p3, %s874_s19), 15  ;;  %v1086_v24 = vld [vmem:[%s1314_s1 + $0x70] sm:$0xff]   ;;  %v1090_v28 = vld [vmem:[%s1314_s1 + $0x78] sm:$0xff]   ;;  %v1100_v36 = vld [vmem:[%s1314_s1 + $0x100] sm:$0xff]  }
   0xe   : > { %985 = vmatprep.subr.bf16.mxu1 %v1071_v9  ;;  %v1087_v25 = vld [vmem:[%s1314_s1 + $0xf0] sm:$0xff]   ;;  %s1053_s16 = smul.u32 20, %s1318_s19  ;;  %v1091_v29 = vld [vmem:[%s1314_s1 + $0xf8] sm:$0xff]   ;;  %v1107_v39 = vld [vmem:[%s1314_s1 + $0x108] sm:$0xff]   ;;  %s877_s17 = sshll.u32 %s1318_s19, 3 }
   0xf   : > { %v1088_v26 = vld [vmem:[%s1314_s1 + $0x30] sm:$0xff]   ;;  %v1092_v30 = vld [vmem:[%s1314_s1 + $0x38] sm:$0xff]   ;;  %v878_v58 = vld [vmem:[%s1315_s2] ss:$0 sm:$0xff]  ;;  %s175_s21 = scalar_lea.vmem %s1316_s3, %s877_s17 }
  0x10   : > { %946 = vmatpush3.bf16.msra.mxu0 %v1072_v10  ;;  %v1089_v27 = vld [vmem:[%s1314_s1 + $0xb0] sm:$0xff]   ;;  %s1260_s13 = scalar_lea.vmem %s1313_s0, %s1053_s16  ;;  %v1093_v31 = vld [vmem:[%s1314_s1 + $0xb8] sm:$0xff]  }
  0x11   : > { %986 = vmatpush3.bf16.msra.mxu1 %v1073_v11  ;;  %947 = vmatprep.subr.bf16.mxu0 %v1074_v12  ;;  %v1094_v32 = vld [vmem:[%s1260_s13] ss:$20 sps:$4 sm:$0xff]   ;;  %v1096_v33 = vld [vmem:[%s1260_s13 + $0x4] ss:$20 sps:$4 sm:$0xff]   ;;  %v1097_v34 = vld [vmem:[%s1260_s13 + $0x8] ss:$20 sps:$4 sm:$0xff]  }
  0x12   : > { %987 = vmatprep.subr.bf16.mxu1 %v1075_v13  ;;  %v1099_v35 = vld [vmem:[%s1260_s13 + $0xc] ss:$20 sps:$4 sm:$0xff]   ;;  %642 = vmatprep.mubr.bf16.mxu0 %v1096_v33  ;;  %v1103_v38 = vld [vmem:[%s1260_s13 + $0x34] ss:$20 sps:$4 sm:$0xff]   ;;  %v1106_v41 = vld [vmem:[%s1260_s13 + $0x30] ss:$20 sps:$4 sm:$0xff]  }
  0x13   : > { %707 = vmatprep.mubr.bf16.mxu1 %v1099_v35  ;;  %v1101_v37 = vld [vmem:[%s1260_s13 + $0x2c] ss:$20 sps:$4 sm:$0xff]   ;;  %v1105_v40 = vld [vmem:[%s1260_s13 + $0x28] ss:$20 sps:$4 sm:$0xff]   ;;  %v1114_v44 = vld [vmem:[%s1314_s1 + $0x110] sm:$0xff]  }
  0x14   : > { %948 = vmatpush3.bf16.msra.mxu0 %v1076_v14  ;;  %v1108_v42 = vld [vmem:[%s1260_s13 + $0x54] ss:$20 sps:$4 sm:$0xff]   ;;  %v1110_v43 = vld [vmem:[%s1260_s13 + $0x5c] ss:$20 sps:$4 sm:$0xff]   ;;  %v1113_v47 = vld [vmem:[%s1260_s13 + $0x58] ss:$20 sps:$4 sm:$0xff]  }
  0x15   : > { %988 = vmatpush3.bf16.msra.mxu1 %v1077_v15  ;;  %949 = vmatprep.subr.bf16.mxu0 %v1078_v16  ;;  %v1121_v45 = vld [vmem:[%s1314_s1 + $0x118] sm:$0xff]   ;;  %v1112_v46 = vld [vmem:[%s1260_s13 + $0x50] ss:$20 sps:$4 sm:$0xff]   ;;  %v1120_v51 = vld [vmem:[%s1260_s13 + $0x80] ss:$20 sps:$4 sm:$0xff]  }
  0x16   : > { %989 = vmatprep.subr.bf16.mxu1 %v1079_v17  ;;  %v1115_v48 = vld [vmem:[%s1260_s13 + $0x7c] ss:$20 sps:$4 sm:$0xff]   ;;  %v1117_v49 = vld [vmem:[%s1260_s13 + $0x84] ss:$20 sps:$4 sm:$0xff]   ;;  %v1123_v53 = vld [vmem:[%s1260_s13 + $0x60] ss:$20 sps:$4 sm:$0xff]  }
  0x17   : > { %v1119_v50 = vld [vmem:[%s1260_s13 + $0x78] ss:$20 sps:$4 sm:$0xff]   ;;  %v1122_v52 = vld [vmem:[%s1260_s13 + $0x10] ss:$20 sps:$4 sm:$0xff]   ;;  %v1125_v55 = vld [vmem:[%s1260_s13 + $0x88] ss:$20 sps:$4 sm:$0xff]  }
  0x18   : > { %950 = vmatpush3.bf16.msra.mxu0 %v1080_v18  ;;  %v1124_v54 = vld [vmem:[%s1260_s13 + $0x38] ss:$20 sps:$4 sm:$0xff]  }
  0x19   : > { %990 = vmatpush3.bf16.msra.mxu1 %v1081_v19  ;;  %951 = vmatprep.subr.bf16.mxu0 %v1082_v20 }
  0x1a   : > { %991 = vmatprep.subr.bf16.mxu1 %v1083_v21 }
  0x1c   : > { %952 = vmatpush3.bf16.msra.mxu0 %v1084_v22 }
  0x1d   : > { %992 = vmatpush3.bf16.msra.mxu1 %v1085_v23  ;;  %953 = vmatprep.subr.bf16.mxu0 %v1086_v24 }
  0x1e   : > { %993 = vmatprep.subr.bf16.mxu1 %v1087_v25 }
  0x20   : > { %954 = vmatpush3.bf16.msra.mxu0 %v1088_v26 }
  0x21   : > { %994 = vmatpush3.bf16.msra.mxu1 %v1089_v27  ;;  %955 = vmatprep.subr.bf16.mxu0 %v1090_v28 }
  0x22   : > { %995 = vmatprep.subr.bf16.mxu1 %v1091_v29 }
  0x24   : > { %956 = vmatpush3.bf16.msra.mxu0 %v1092_v30 }
  0x25   : > { %996 = vmatpush3.bf16.msra.mxu1 %v1093_v31  ;;  %1029 = vmatprep.subr.bf16.mxu0 %v1100_v36 }
  0x26   : > { %1045 = vmatprep.subr.bf16.mxu1 %v1100_v36 }
  0x27   : > { %643 = vmatmul.mubr.bf16.vlgmr.msra.gmra.mrb[0].mxu0 %v1094_v32 }
  0x28   : > { %708 = vmatmul.mubr.bf16.vlgmr.msra.gmra.mrb[0].mxu1 %v1097_v34  ;;  %1030 = vmatpush3.bf16.msra.mxu0 %v1100_v36 }
  0x29   : > { %1049 = vmatpush3.bf16.msra.mxu1 %v1100_v36  ;;  %650 = vmatprep.mubr.bf16.mxu0 %v1101_v37 }
  0x2a   : > { %715 = vmatprep.mubr.bf16.mxu1 %v1103_v38  ;;  %1031 = vmatprep.subr.bf16.mxu0 %v1107_v39 }
  0x2b   : > { %1046 = vmatprep.subr.bf16.mxu1 %v1107_v39 }
  0x2c   : > { %1032 = vmatpush3.bf16.msra.mxu0 %v1107_v39 }
  0x2d   : > { %1050 = vmatpush3.bf16.msra.mxu1 %v1107_v39  ;;  %1033 = vmatprep.subr.bf16.mxu0 %v1114_v44 }
  0x2e   : > { %1047 = vmatprep.subr.bf16.mxu1 %v1114_v44 }
  0x2f   : > { %651 = vmatmul.mubr.bf16.gmra.mrb[4].mxu0 %v1105_v40 }
  0x30   : > { %716 = vmatmul.mubr.bf16.gmra.mrb[4].mxu1 %v1106_v41  ;;  %658 = vmatprep.mubr.bf16.mxu0 %v1108_v42 }
  0x31   : > { %723 = vmatprep.mubr.bf16.mxu1 %v1110_v43  ;;  %1034 = vmatpush3.bf16.msra.mxu0 %v1114_v44 }
  0x32   : > { %1051 = vmatpush3.bf16.msra.mxu1 %v1114_v44  ;;  %1035 = vmatprep.subr.bf16.mxu0 %v1121_v45 }
  0x33   : > { %1048 = vmatprep.subr.bf16.mxu1 %v1121_v45 }
  0x35   : > { %1036 = vmatpush3.bf16.msra.mxu0 %v1121_v45 }
  0x36   : > { %1052 = vmatpush3.bf16.msra.mxu1 %v1121_v45 }
  0x37   : > { %659 = vmatmul.mubr.bf16.gmra.mrb[8].mxu0 %v1112_v46 }
  0x38   : > { %724 = vmatmul.mubr.bf16.gmra.mrb[8].mxu1 %v1113_v47  ;;  %666 = vmatprep.mubr.bf16.mxu0 %v1115_v48 }
  0x39   : > { %731 = vmatprep.mubr.bf16.mxu1 %v1117_v49 }
  0x3f   : > { %667 = vmatmul.mubr.bf16.gmra.mrb[12].mxu0 %v1119_v50 }
  0x40   : > { %732 = vmatmul.mubr.bf16.gmra.mrb[12].mxu1 %v1120_v51  ;;  %1037 = vmatprep.mubr.msk.bf16.mxu0 %vm597_vm0, %v1122_v52 }
  0x41   : > { %1041 = vmatprep.mubr.msk.bf16.mxu1 %vm597_vm0, %v1123_v53 }
  0x47   : > { %1038 = vmatmul.mubr.msk.bf16.vlgmr.msra.gmra.mrb[16].mxu0 %vm597_vm0, %v1124_v54 }
  0x48   : > { %1042 = vmatmul.mubr.msk.bf16.vlgmr.msra.gmra.mrb[16].mxu1 %vm597_vm0, %v1125_v55 }
  0xfa   : > { %v957_v56 = vpop.f32.mrb[0].mxu0 }
  0xfb   : > { %v997_v57 = vpop.f32.mrb[0].mxu1  ;;  %v958_v59 = vpop.f32.mrb[1].mxu0 }
  0xfc   : > { %v959_v60 = vadd.f32 %v958_v59, %v957_v56  ;;  %v998_v61 = vpop.f32.mrb[1].mxu1  ;;  %v960_v62 = vpop.f32.mrb[2].mxu0 }
  0xfd   : > { %v999_v63 = vadd.f32 %v998_v61, %v997_v57  ;;  %v1000_v0 = vpop.f32.mrb[2].mxu1  ;;  %v961_v1 = vpop.f32.mrb[3].mxu0 }
  0xfe   : > { %v645_v2 = vadd.f32 %v959_v60, %v878_v58  ;;  %v962_v3 = vadd.f32 %v961_v1, %v960_v62  ;;  %v1001_v4 = vpop.f32.mrb[3].mxu1 }
  0xff   : > { %v1002_v5 = vadd.f32 %v1001_v4, %v1000_v0 }
 0x100   : > { %v648_v6 = vadd.f32 %v962_v3, %v878_v58  ;;  %v710_v7 = vadd.f32 %v999_v63, %v645_v2 }
 0x102   : > { %v963_v8 = vpop.f32.mrb[4].mxu0  ;;  %v1303_v9 = vadd.f32 %v1002_v5, %v648_v6 }
 0x103   : > { %v1003_v10 = vpop.f32.mrb[4].mxu1  ;;  %v964_v11 = vpop.f32.mrb[5].mxu0 }
 0x104   : > { %v965_v12 = vadd.f32 %v964_v11, %v963_v8  ;;  %v1004_v13 = vpop.f32.mrb[5].mxu1  ;;  %v966_v14 = vpop.f32.mrb[6].mxu0 }
 0x105   : > { %v1005_v15 = vadd.f32 %v1004_v13, %v1003_v10  ;;  %v1006_v16 = vpop.f32.mrb[6].mxu1  ;;  %v967_v17 = vpop.f32.mrb[7].mxu0 }
 0x106   : > { %v653_v18 = vadd.f32 %v965_v12, %v878_v58  ;;  %v968_v19 = vadd.f32 %v967_v17, %v966_v14  ;;  %v1007_v20 = vpop.f32.mrb[7].mxu1 }
 0x107   : > { %v1008_v21 = vadd.f32 %v1007_v20, %v1006_v16 }
 0x108   : > { %v656_v22 = vadd.f32 %v968_v19, %v878_v58  ;;  %v718_v23 = vadd.f32 %v1005_v15, %v653_v18 }
 0x10a   : > { %v969_v24 = vpop.f32.mrb[8].mxu0  ;;  %v721_v25 = vadd.f32 %v1008_v21, %v656_v22 }
 0x10b   : > { %v1009_v26 = vpop.f32.mrb[8].mxu1  ;;  %v970_v27 = vpop.f32.mrb[9].mxu0 }
 0x10c   : > { %v971_v28 = vadd.f32 %v970_v27, %v969_v24  ;;  %v1010_v29 = vpop.f32.mrb[9].mxu1  ;;  %v972_v30 = vpop.f32.mrb[10].mxu0 }
 0x10d   : > { %v1011_v31 = vadd.f32 %v1010_v29, %v1009_v26  ;;  %v1012_v32 = vpop.f32.mrb[10].mxu1  ;;  %v973_v33 = vpop.f32.mrb[11].mxu0 }
 0x10e   : > { %v661_v34 = vadd.f32 %v971_v28, %v878_v58  ;;  %v974_v35 = vadd.f32 %v973_v33, %v972_v30  ;;  %v1013_v36 = vpop.f32.mrb[11].mxu1 }
 0x10f   : > { %v1014_v37 = vadd.f32 %v1013_v36, %v1012_v32 }
 0x110   : > { %v664_v38 = vadd.f32 %v974_v35, %v878_v58  ;;  %v726_v39 = vadd.f32 %v1011_v31, %v661_v34 }
 0x112   : > { %v975_v40 = vpop.f32.mrb[12].mxu0  ;;  %v729_v41 = vadd.f32 %v1014_v37, %v664_v38 }
 0x113   : > { %v1015_v42 = vpop.f32.mrb[12].mxu1  ;;  %v976_v43 = vpop.f32.mrb[13].mxu0 }
 0x114   : > { %v977_v44 = vadd.f32 %v976_v43, %v975_v40  ;;  %v1016_v45 = vpop.f32.mrb[13].mxu1  ;;  %v978_v46 = vpop.f32.mrb[14].mxu0 }
 0x115   : > { %v1017_v47 = vadd.f32 %v1016_v45, %v1015_v42  ;;  %v1018_v48 = vpop.f32.mrb[14].mxu1  ;;  %v979_v49 = vpop.f32.mrb[15].mxu0 }
 0x116   : > { %v669_v50 = vadd.f32 %v977_v44, %v878_v58  ;;  %v980_v51 = vadd.f32 %v979_v49, %v978_v46  ;;  %v1019_v52 = vpop.f32.mrb[15].mxu1 }
 0x117   : > { %v1020_v53 = vadd.f32 %v1019_v52, %v1018_v48 }
 0x118   : > { %v672_v54 = vadd.f32 %v980_v51, %v878_v58  ;;  %v734_v55 = vadd.f32 %v1017_v47, %v669_v50 }
 0x11a   : > { %v1039_v56 = vpop.f32.mrb[16].mxu0  ;;  %v737_v57 = vadd.f32 %v1020_v53, %v672_v54 }
 0x11b   : > { %v783_v59 = vadd.f32 %v1039_v56, %v718_v23  ;;  %v1043_v60 = vpop.f32.mrb[16].mxu1  ;;  %v774_v61 = vpop.f32.mrb[17].mxu0 }
 0x11c   : > { %v799_v62 = vadd.f32 %v1043_v60, %v734_v55  ;;  %v775_v63 = vadd.f32 %v774_v61, %v710_v7  ;;  %v790_v0 = vpop.f32.mrb[17].mxu1  ;;  %v1040_v1 = vpop.f32.mrb[18].mxu0 }
 0x11d   : > { %807 = vst [vmem:[%s175_s21 + $0x10] sm:$0xff] %v783_v59  ;;  %v791_v2 = vadd.f32 %v790_v0, %v726_v39  ;;  %v786_v3 = vadd.f32 %v1040_v1, %v721_v25  ;;  %v1044_v4 = vpop.f32.mrb[18].mxu1  ;;  %v777_v5 = vpop.f32.mrb[19].mxu0 }
 0x11e   : > { %811 = vst [vmem:[%s175_s21 + $0x30] sm:$0xff] %v799_v62  ;;  %805 = vst [vmem:[%s175_s21] sm:$0xff] %v775_v63  ;;  %v802_v58 = vadd.f32 %v1044_v4, %v737_v57  ;;  %v778_v6 = vadd.f32 %v777_v5, %v1303_v9  ;;  %v793_v8 = vpop.f32.mrb[19].mxu1 }
 0x11f   : > { %809 = vst [vmem:[%s175_s21 + $0x20] sm:$0xff] %v791_v2  ;;  %808 = vst [vmem:[%s175_s21 + $0x18] sm:$0xff] %v786_v3  ;;  %v794_v10 = vadd.f32 %v793_v8, %v729_v41 }
 0x120   : > { %812 = vst [vmem:[%s175_s21 + $0x38] sm:$0xff] %v802_v58  ;;  %806 = vst [vmem:[%s175_s21 + $0x8] sm:$0xff] %v778_v6 }
 0x121   : > { %810 = vst [vmem:[%s175_s21 + $0x28] sm:$0xff] %v794_v10 }
 0x122 PF: > { %s13_s12 = sadd.s32 1, %s1132_s12  }
 0x123   : > { %p10_p4 = scmp.ge.s32.totalorder %s13_s12, 4  }
 0x125   :  { %12 = sbr.rel (!%p10_p4) target bundleno = 1 (0x1), region = 62 }

// kernel: vqvae_forward.12
= control target key start
LH: loop header
LB: loop body
LE: loop exit
PB: predicated region body
PF: predicated region fallthrough
CT: control target
= control target key end

     0   :  { %s1233_s12 = smov 0   ;;  %s1389_s0 = inlined_call_operand.vmem [shape: bf16[128,576], index: 0, kind: input, shape index: {}]   ;;  %s1390_s1 = inlined_call_operand.vmem [shape: bf16[576,128], index: 1, kind: input, shape index: {}]   ;;  %s1391_s2 = inlined_call_operand.vmem [shape: f32[1,128], index: 2, kind: input, shape index: {}]   ;;  %s1392_s3 = inlined_call_operand.vmem [shape: bf16[128,128], index: 3, kind: output, shape index: {}]  }
   0x1 LB: > { %s909_s13 = sadd.s32 4294967295, %s1211_s12   ;;  %p913_p0 = scmp.ge.s32.totalorder %s1211_s12, 1  ;;  %s1211_s12 = sphi %s1233_s12, %s13_s12  }
   0x2   : > { %p139_p1 = scmp.lt.s32.totalorder %s1211_s12, 3 }
   0x4   : > { %p140_p2 = pnand %p913_p0, %p139_p1 }
   0x5   : > { %v1141_v0 = vld [vmem:[%s1390_s1 + $0x40] sm:$0xff] (!%p140_p2)   ;;  %v1145_v4 = vld [vmem:[%s1390_s1 + $0x48] sm:$0xff] (!%p140_p2)   ;;  %v1149_v8 = vld [vmem:[%s1390_s1 + $0x50] sm:$0xff] (!%p140_p2)   ;;  %s914_s19 = sshll.u32 (!%p140_p2), %s909_s13, 3  ;;  %vm597_vm0 = vcmask (!%p140_p2), 523264  }
   0x6   : > { %143 = sbr.rel (%p140_p2) target bundleno = 294 (0x126), region = 32  ;;  %v1142_v1 = vld [vmem:[%s1390_s1 + $0xc0] sm:$0xff] (!%p140_p2)   ;;  %1020 = vmatprep.subr.bf16.mxu0 (!%p140_p2), %v1141_v0  ;;  %v1146_v5 = vld [vmem:[%s1390_s1 + $0xc8] sm:$0xff] (!%p140_p2)   ;;  %v1150_v9 = vld [vmem:[%s1390_s1 + $0xd0] sm:$0xff] (!%p140_p2)   ;;  %p165_p3 = scmp.lt.s32.totalorder (!%p140_p2), %s914_s19, 15 }
   0x7   : > { %v1143_v2 = vld [vmem:[%s1390_s1] sm:$0xff] (!%p140_p2)   ;;  %1060 = vmatprep.subr.bf16.mxu1 (!%p140_p2), %v1142_v1  ;;  %v1147_v6 = vld [vmem:[%s1390_s1 + $0x8] sm:$0xff] (!%p140_p2)   ;;  %v1151_v10 = vld [vmem:[%s1390_s1 + $0x10] sm:$0xff] (!%p140_p2)  }
   0x8   : > { %v1144_v3 = vld [vmem:[%s1390_s1 + $0x80] sm:$0xff] (!%p140_p2)   ;;  %1021 = vmatpush3.bf16.msra.mxu0 (!%p140_p2), %v1143_v2  ;;  %v1148_v7 = vld [vmem:[%s1390_s1 + $0x88] sm:$0xff] (!%p140_p2)   ;;  %v1152_v11 = vld [vmem:[%s1390_s1 + $0x90] sm:$0xff] (!%p140_p2)  }
   0x9   : > { %1061 = vmatpush3.bf16.msra.mxu1 (!%p140_p2), %v1144_v3  ;;  %1022 = vmatprep.subr.bf16.mxu0 (!%p140_p2), %v1145_v4  ;;  %v1153_v12 = vld [vmem:[%s1390_s1 + $0x58] sm:$0xff] (!%p140_p2)   ;;  %v1157_v16 = vld [vmem:[%s1390_s1 + $0x60] sm:$0xff] (!%p140_p2)   ;;  %v1161_v20 = vld [vmem:[%s1390_s1 + $0x68] sm:$0xff] (!%p140_p2)  }
   0xa   : > { %1062 = vmatprep.subr.bf16.mxu1 (!%p140_p2), %v1146_v5  ;;  %v1154_v13 = vld [vmem:[%s1390_s1 + $0xd8] sm:$0xff] (!%p140_p2)   ;;  %v1158_v17 = vld [vmem:[%s1390_s1 + $0xe0] sm:$0xff] (!%p140_p2)   ;;  %v1162_v21 = vld [vmem:[%s1390_s1 + $0xe8] sm:$0xff] (!%p140_p2)  }
   0xb   : > { %v1155_v14 = vld [vmem:[%s1390_s1 + $0x18] sm:$0xff] (!%p140_p2)   ;;  %v1159_v18 = vld [vmem:[%s1390_s1 + $0x20] sm:$0xff] (!%p140_p2)   ;;  %v1163_v22 = vld [vmem:[%s1390_s1 + $0x28] sm:$0xff] (!%p140_p2)  }
   0xc   : > { %1023 = vmatpush3.bf16.msra.mxu0 (!%p140_p2), %v1147_v6  ;;  %v1156_v15 = vld [vmem:[%s1390_s1 + $0x98] sm:$0xff] (!%p140_p2)   ;;  %v1160_v19 = vld [vmem:[%s1390_s1 + $0xa0] sm:$0xff] (!%p140_p2)   ;;  %v1164_v23 = vld [vmem:[%s1390_s1 + $0xa8] sm:$0xff] (!%p140_p2)  }
   0xd   : > { %1063 = vmatpush3.bf16.msra.mxu1 %v1148_v7  ;;  %1024 = vmatprep.subr.bf16.mxu0 %v1149_v8  ;;  %s1394_s19 = smov (!%p165_p3, %s914_s19), 15  ;;  %v1165_v24 = vld [vmem:[%s1390_s1 + $0x70] sm:$0xff]   ;;  %v1169_v28 = vld [vmem:[%s1390_s1 + $0x78] sm:$0xff]   ;;  %v1179_v36 = vld [vmem:[%s1390_s1 + $0x100] sm:$0xff]  }
   0xe   : > { %1064 = vmatprep.subr.bf16.mxu1 %v1150_v9  ;;  %v1166_v25 = vld [vmem:[%s1390_s1 + $0xf0] sm:$0xff]   ;;  %s1132_s16 = smul.u32 20, %s1394_s19  ;;  %v1170_v29 = vld [vmem:[%s1390_s1 + $0xf8] sm:$0xff]   ;;  %v1186_v39 = vld [vmem:[%s1390_s1 + $0x108] sm:$0xff]   ;;  %s917_s17 = sshll.u32 %s1394_s19, 2 }
   0xf   : > { %v1167_v26 = vld [vmem:[%s1390_s1 + $0x30] sm:$0xff]   ;;  %v1171_v30 = vld [vmem:[%s1390_s1 + $0x38] sm:$0xff]   ;;  %v918_v58 = vld [vmem:[%s1391_s2] ss:$0 sm:$0xff]  ;;  %s175_s21 = scalar_lea.vmem %s1392_s3, %s917_s17 }
  0x10   : > { %1025 = vmatpush3.bf16.msra.mxu0 %v1151_v10  ;;  %v1168_v27 = vld [vmem:[%s1390_s1 + $0xb0] sm:$0xff]   ;;  %s1339_s13 = scalar_lea.vmem %s1389_s0, %s1132_s16  ;;  %v1172_v31 = vld [vmem:[%s1390_s1 + $0xb8] sm:$0xff]  }
  0x11   : > { %1065 = vmatpush3.bf16.msra.mxu1 %v1152_v11  ;;  %1026 = vmatprep.subr.bf16.mxu0 %v1153_v12  ;;  %v1173_v32 = vld [vmem:[%s1339_s13] ss:$20 sps:$4 sm:$0xff]   ;;  %v1175_v33 = vld [vmem:[%s1339_s13 + $0x4] ss:$20 sps:$4 sm:$0xff]   ;;  %v1176_v34 = vld [vmem:[%s1339_s13 + $0x8] ss:$20 sps:$4 sm:$0xff]  }
  0x12   : > { %1066 = vmatprep.subr.bf16.mxu1 %v1154_v13  ;;  %v1178_v35 = vld [vmem:[%s1339_s13 + $0xc] ss:$20 sps:$4 sm:$0xff]   ;;  %642 = vmatprep.mubr.bf16.mxu0 %v1175_v33  ;;  %v1182_v38 = vld [vmem:[%s1339_s13 + $0x34] ss:$20 sps:$4 sm:$0xff]   ;;  %v1185_v41 = vld [vmem:[%s1339_s13 + $0x30] ss:$20 sps:$4 sm:$0xff]  }
  0x13   : > { %707 = vmatprep.mubr.bf16.mxu1 %v1178_v35  ;;  %v1180_v37 = vld [vmem:[%s1339_s13 + $0x2c] ss:$20 sps:$4 sm:$0xff]   ;;  %v1184_v40 = vld [vmem:[%s1339_s13 + $0x28] ss:$20 sps:$4 sm:$0xff]   ;;  %v1193_v44 = vld [vmem:[%s1390_s1 + $0x110] sm:$0xff]  }
  0x14   : > { %1027 = vmatpush3.bf16.msra.mxu0 %v1155_v14  ;;  %v1187_v42 = vld [vmem:[%s1339_s13 + $0x54] ss:$20 sps:$4 sm:$0xff]   ;;  %v1189_v43 = vld [vmem:[%s1339_s13 + $0x5c] ss:$20 sps:$4 sm:$0xff]   ;;  %v1192_v47 = vld [vmem:[%s1339_s13 + $0x58] ss:$20 sps:$4 sm:$0xff]  }
  0x15   : > { %1067 = vmatpush3.bf16.msra.mxu1 %v1156_v15  ;;  %1028 = vmatprep.subr.bf16.mxu0 %v1157_v16  ;;  %v1200_v45 = vld [vmem:[%s1390_s1 + $0x118] sm:$0xff]   ;;  %v1191_v46 = vld [vmem:[%s1339_s13 + $0x50] ss:$20 sps:$4 sm:$0xff]   ;;  %v1199_v51 = vld [vmem:[%s1339_s13 + $0x80] ss:$20 sps:$4 sm:$0xff]  }
  0x16   : > { %1068 = vmatprep.subr.bf16.mxu1 %v1158_v17  ;;  %v1194_v48 = vld [vmem:[%s1339_s13 + $0x7c] ss:$20 sps:$4 sm:$0xff]   ;;  %v1196_v49 = vld [vmem:[%s1339_s13 + $0x84] ss:$20 sps:$4 sm:$0xff]   ;;  %v1202_v53 = vld [vmem:[%s1339_s13 + $0x60] ss:$20 sps:$4 sm:$0xff]  }
  0x17   : > { %v1198_v50 = vld [vmem:[%s1339_s13 + $0x78] ss:$20 sps:$4 sm:$0xff]   ;;  %v1201_v52 = vld [vmem:[%s1339_s13 + $0x10] ss:$20 sps:$4 sm:$0xff]   ;;  %v1204_v55 = vld [vmem:[%s1339_s13 + $0x88] ss:$20 sps:$4 sm:$0xff]  }
  0x18   : > { %1029 = vmatpush3.bf16.msra.mxu0 %v1159_v18  ;;  %v1203_v54 = vld [vmem:[%s1339_s13 + $0x38] ss:$20 sps:$4 sm:$0xff]  }
  0x19   : > { %1069 = vmatpush3.bf16.msra.mxu1 %v1160_v19  ;;  %1030 = vmatprep.subr.bf16.mxu0 %v1161_v20 }
  0x1a   : > { %1070 = vmatprep.subr.bf16.mxu1 %v1162_v21 }
  0x1c   : > { %1031 = vmatpush3.bf16.msra.mxu0 %v1163_v22 }
  0x1d   : > { %1071 = vmatpush3.bf16.msra.mxu1 %v1164_v23  ;;  %1032 = vmatprep.subr.bf16.mxu0 %v1165_v24 }
  0x1e   : > { %1072 = vmatprep.subr.bf16.mxu1 %v1166_v25 }
  0x20   : > { %1033 = vmatpush3.bf16.msra.mxu0 %v1167_v26 }
  0x21   : > { %1073 = vmatpush3.bf16.msra.mxu1 %v1168_v27  ;;  %1034 = vmatprep.subr.bf16.mxu0 %v1169_v28 }
  0x22   : > { %1074 = vmatprep.subr.bf16.mxu1 %v1170_v29 }
  0x24   : > { %1035 = vmatpush3.bf16.msra.mxu0 %v1171_v30 }
  0x25   : > { %1075 = vmatpush3.bf16.msra.mxu1 %v1172_v31  ;;  %1108 = vmatprep.subr.bf16.mxu0 %v1179_v36 }
  0x26   : > { %1124 = vmatprep.subr.bf16.mxu1 %v1179_v36 }
  0x27   : > { %643 = vmatmul.mubr.bf16.vlgmr.msra.gmra.mrb[0].mxu0 %v1173_v32 }
  0x28   : > { %708 = vmatmul.mubr.bf16.vlgmr.msra.gmra.mrb[0].mxu1 %v1176_v34  ;;  %1109 = vmatpush3.bf16.msra.mxu0 %v1179_v36 }
  0x29   : > { %1128 = vmatpush3.bf16.msra.mxu1 %v1179_v36  ;;  %650 = vmatprep.mubr.bf16.mxu0 %v1180_v37 }
  0x2a   : > { %715 = vmatprep.mubr.bf16.mxu1 %v1182_v38  ;;  %1110 = vmatprep.subr.bf16.mxu0 %v1186_v39 }
  0x2b   : > { %1125 = vmatprep.subr.bf16.mxu1 %v1186_v39 }
  0x2c   : > { %1111 = vmatpush3.bf16.msra.mxu0 %v1186_v39 }
  0x2d   : > { %1129 = vmatpush3.bf16.msra.mxu1 %v1186_v39  ;;  %1112 = vmatprep.subr.bf16.mxu0 %v1193_v44 }
  0x2e   : > { %1126 = vmatprep.subr.bf16.mxu1 %v1193_v44 }
  0x2f   : > { %651 = vmatmul.mubr.bf16.gmra.mrb[4].mxu0 %v1184_v40 }
  0x30   : > { %716 = vmatmul.mubr.bf16.gmra.mrb[4].mxu1 %v1185_v41  ;;  %658 = vmatprep.mubr.bf16.mxu0 %v1187_v42 }
  0x31   : > { %723 = vmatprep.mubr.bf16.mxu1 %v1189_v43  ;;  %1113 = vmatpush3.bf16.msra.mxu0 %v1193_v44 }
  0x32   : > { %1130 = vmatpush3.bf16.msra.mxu1 %v1193_v44  ;;  %1114 = vmatprep.subr.bf16.mxu0 %v1200_v45 }
  0x33   : > { %1127 = vmatprep.subr.bf16.mxu1 %v1200_v45 }
  0x35   : > { %1115 = vmatpush3.bf16.msra.mxu0 %v1200_v45 }
  0x36   : > { %1131 = vmatpush3.bf16.msra.mxu1 %v1200_v45 }
  0x37   : > { %659 = vmatmul.mubr.bf16.gmra.mrb[8].mxu0 %v1191_v46 }
  0x38   : > { %724 = vmatmul.mubr.bf16.gmra.mrb[8].mxu1 %v1192_v47  ;;  %666 = vmatprep.mubr.bf16.mxu0 %v1194_v48 }
  0x39   : > { %731 = vmatprep.mubr.bf16.mxu1 %v1196_v49 }
  0x3f   : > { %667 = vmatmul.mubr.bf16.gmra.mrb[12].mxu0 %v1198_v50 }
  0x40   : > { %732 = vmatmul.mubr.bf16.gmra.mrb[12].mxu1 %v1199_v51  ;;  %1116 = vmatprep.mubr.msk.bf16.mxu0 %vm597_vm0, %v1201_v52 }
  0x41   : > { %1120 = vmatprep.mubr.msk.bf16.mxu1 %vm597_vm0, %v1202_v53 }
  0x47   : > { %1117 = vmatmul.mubr.msk.bf16.vlgmr.msra.gmra.mrb[16].mxu0 %vm597_vm0, %v1203_v54 }
  0x48   : > { %1121 = vmatmul.mubr.msk.bf16.vlgmr.msra.gmra.mrb[16].mxu1 %vm597_vm0, %v1204_v55 }
  0xfa   : > { %v1036_v56 = vpop.f32.mrb[0].mxu0 }
  0xfb   : > { %v1076_v57 = vpop.f32.mrb[0].mxu1  ;;  %v1037_v59 = vpop.f32.mrb[1].mxu0 }
  0xfc   : > { %v1038_v60 = vadd.f32 %v1037_v59, %v1036_v56  ;;  %v1077_v61 = vpop.f32.mrb[1].mxu1  ;;  %v1039_v62 = vpop.f32.mrb[2].mxu0 }
  0xfd   : > { %v1078_v63 = vadd.f32 %v1077_v61, %v1076_v57  ;;  %v1079_v0 = vpop.f32.mrb[2].mxu1  ;;  %v1040_v1 = vpop.f32.mrb[3].mxu0 }
  0xfe   : > { %v645_v2 = vadd.f32 %v1038_v60, %v918_v58  ;;  %v1041_v3 = vadd.f32 %v1040_v1, %v1039_v62  ;;  %v1080_v4 = vpop.f32.mrb[3].mxu1 }
  0xff   : > { %v1081_v5 = vadd.f32 %v1080_v4, %v1079_v0 }
 0x100   : > { %v648_v6 = vadd.f32 %v1041_v3, %v918_v58  ;;  %v710_v7 = vadd.f32 %v1078_v63, %v645_v2 }
 0x102   : > { %v1042_v8 = vpop.f32.mrb[4].mxu0  ;;  %v713_v9 = vadd.f32 %v1081_v5, %v648_v6 }
 0x103   : > { %v1082_v10 = vpop.f32.mrb[4].mxu1  ;;  %v1043_v11 = vpop.f32.mrb[5].mxu0 }
 0x104   : > { %v1044_v12 = vadd.f32 %v1043_v11, %v1042_v8  ;;  %v1083_v13 = vpop.f32.mrb[5].mxu1  ;;  %v1045_v14 = vpop.f32.mrb[6].mxu0 }
 0x105   : > { %v1084_v15 = vadd.f32 %v1083_v13, %v1082_v10  ;;  %v1085_v16 = vpop.f32.mrb[6].mxu1  ;;  %v1046_v17 = vpop.f32.mrb[7].mxu0 }
 0x106   : > { %v653_v18 = vadd.f32 %v1044_v12, %v918_v58  ;;  %v1047_v19 = vadd.f32 %v1046_v17, %v1045_v14  ;;  %v1086_v20 = vpop.f32.mrb[7].mxu1 }
 0x107   : > { %v1087_v21 = vadd.f32 %v1086_v20, %v1085_v16 }
 0x108   : > { %v656_v22 = vadd.f32 %v1047_v19, %v918_v58  ;;  %v718_v23 = vadd.f32 %v1084_v15, %v653_v18 }
 0x10a   : > { %v1048_v24 = vpop.f32.mrb[8].mxu0  ;;  %v721_v25 = vadd.f32 %v1087_v21, %v656_v22 }
 0x10b   : > { %v1088_v26 = vpop.f32.mrb[8].mxu1  ;;  %v1049_v27 = vpop.f32.mrb[9].mxu0 }
 0x10c   : > { %v1050_v28 = vadd.f32 %v1049_v27, %v1048_v24  ;;  %v1089_v29 = vpop.f32.mrb[9].mxu1  ;;  %v1051_v30 = vpop.f32.mrb[10].mxu0 }
 0x10d   : > { %v1090_v31 = vadd.f32 %v1089_v29, %v1088_v26  ;;  %v1091_v32 = vpop.f32.mrb[10].mxu1  ;;  %v1052_v33 = vpop.f32.mrb[11].mxu0 }
 0x10e   : > { %v661_v34 = vadd.f32 %v1050_v28, %v918_v58  ;;  %v1053_v35 = vadd.f32 %v1052_v33, %v1051_v30  ;;  %v1092_v36 = vpop.f32.mrb[11].mxu1 }
 0x10f   : > { %v1093_v37 = vadd.f32 %v1092_v36, %v1091_v32 }
 0x110   : > { %v664_v38 = vadd.f32 %v1053_v35, %v918_v58  ;;  %v726_v39 = vadd.f32 %v1090_v31, %v661_v34 }
 0x112   : > { %v1054_v40 = vpop.f32.mrb[12].mxu0  ;;  %v729_v41 = vadd.f32 %v1093_v37, %v664_v38 }
 0x113   : > { %v1094_v42 = vpop.f32.mrb[12].mxu1  ;;  %v1055_v43 = vpop.f32.mrb[13].mxu0 }
 0x114   : > { %v1056_v44 = vadd.f32 %v1055_v43, %v1054_v40  ;;  %v1095_v45 = vpop.f32.mrb[13].mxu1  ;;  %v1057_v46 = vpop.f32.mrb[14].mxu0 }
 0x115   : > { %v1096_v47 = vadd.f32 %v1095_v45, %v1094_v42  ;;  %v1097_v48 = vpop.f32.mrb[14].mxu1  ;;  %v1058_v49 = vpop.f32.mrb[15].mxu0 }
 0x116   : > { %v669_v50 = vadd.f32 %v1056_v44, %v918_v58  ;;  %v1059_v51 = vadd.f32 %v1058_v49, %v1057_v46  ;;  %v1098_v52 = vpop.f32.mrb[15].mxu1 }
 0x117   : > { %v1099_v53 = vadd.f32 %v1098_v52, %v1097_v48 }
 0x118   : > { %v672_v54 = vadd.f32 %v1059_v51, %v918_v58  ;;  %v734_v55 = vadd.f32 %v1096_v47, %v669_v50 }
 0x11a   : > { %v1118_v56 = vpop.f32.mrb[16].mxu0  ;;  %v737_v57 = vadd.f32 %v1099_v53, %v672_v54 }
 0x11b   : > { %v783_v59 = vadd.f32 %v1118_v56, %v718_v23  ;;  %v1122_v60 = vpop.f32.mrb[16].mxu1  ;;  %v774_v61 = vpop.f32.mrb[17].mxu0 }
 0x11c   : > { %v799_v62 = vadd.f32 %v1122_v60, %v734_v55  ;;  %v775_v63 = vadd.f32 %v774_v61, %v710_v7  ;;  %v790_v0 = vpop.f32.mrb[17].mxu1  ;;  %v1119_v1 = vpop.f32.mrb[18].mxu0 }
 0x11d   : > { %v791_v2 = vadd.f32 %v790_v0, %v726_v39  ;;  %v786_v3 = vadd.f32 %v1119_v1, %v721_v25  ;;  %v1123_v4 = vpop.f32.mrb[18].mxu1  ;;  %v777_v5 = vpop.f32.mrb[19].mxu0  ;;  %v807_v11 = vmax.f32 %v783_v59, 0.0 }
 0x11e   : > { %v802_v6 = vadd.f32 %v1123_v4, %v737_v57  ;;  %v778_v8 = vadd.f32 %v777_v5, %v713_v9  ;;  %v793_v10 = vpop.f32.mrb[19].mxu1  ;;  %v811_v13 = vmax.f32 %v799_v62, 0.0  ;;  %v805_v14 = vmax.f32 %v775_v63, 0.0 }
 0x11f   : > { %v808_v58 = vmax.f32 %v786_v3, 0.0  ;;  %v794_v12 = vadd.f32 %v793_v10, %v729_v41  ;;  %v809_v16 = vmax.f32 %v791_v2, 0.0 }
 0x120   : > { %v812_v7 = vmax.f32 %v802_v6, 0.0  ;;  %v806_v15 = vmax.f32 %v778_v8, 0.0 }
 0x121   : > { %v1005_v17 = vpack.c.bf16 %v808_v58, %v807_v11  ;;  %v810_v18 = vmax.f32 %v794_v12, 0.0 }
 0x122   : > { %v1015_v19 = vpack.c.bf16 %v812_v7, %v811_v13  ;;  %v1000_v20 = vpack.c.bf16 %v806_v15, %v805_v14 }
 0x123   : > { %1017 = vst [vmem:[%s175_s21 + $0x8] sm:$0xff] %v1005_v17   ;;  %v1010_v21 = vpack.c.bf16 %v810_v18, %v809_v16 }
 0x124   : > { %1019 = vst [vmem:[%s175_s21 + $0x18] sm:$0xff] %v1015_v19   ;;  %1001 = vst [vmem:[%s175_s21] sm:$0xff] %v1000_v20  }
 0x125   : > { %1018 = vst [vmem:[%s175_s21 + $0x10] sm:$0xff] %v1010_v21  }
 0x126 PF: > { %s13_s12 = sadd.s32 1, %s1211_s12  }
 0x127   : > { %p10_p4 = scmp.ge.s32.totalorder %s13_s12, 4  }
 0x129   :  { %12 = sbr.rel (!%p10_p4) target bundleno = 1 (0x1), region = 62 }

// kernel: vqvae_forward.10
= control target key start
LH: loop header
LB: loop body
LE: loop exit
PB: predicated region body
PF: predicated region fallthrough
CT: control target
= control target key end

     0   :  { %s4519_s27 = smov 0   ;;  %s4521_s28 = smov 0   ;;  %s5968_s0 = inlined_call_operand.vmem [shape: f32[128,128], index: 0, kind: input, shape index: {}]   ;;  %s5969_s1 = inlined_call_operand.vmem [shape: bf16[128,512], index: 1, kind: input, shape index: {}]   ;;  %s5970_s2 = inlined_call_operand.vmem [shape: bf16[512,128], index: 2, kind: input, shape index: {}]   ;;  %s5971_s3 = inlined_call_operand.vmem [shape: bf16[512,128], index: 3, kind: input, shape index: {}]   ;;  %s5972_s4 = inlined_call_operand.vmem [shape: bf16[512,128], index: 4, kind: input, shape index: {}]   ;;  %s5973_s5 = inlined_call_operand.vmem [shape: f32[1,512], index: 5, kind: input, shape index: {}]   ;;  %s5974_s6 = inlined_call_operand.vmem [shape: f32[128,128], index: 6, kind: output, shape index: {0}]   ;;  %s5975_s7 = inlined_call_operand.vmem [shape: f32[2,1,128], index: 7, kind: output, shape index: {1}]   ;;  %s5976_s8 = inlined_call_operand.vmem [shape: f32[2,1,512], index: 8, kind: output, shape index: {2}]  }
   0x1   :  { %s4523_s29 = smov 0  }
   0x2 LB: > { %s31_s30 = sadd.s32 1, %s4466_s28  ;;  %p3344_p0 = scmp.ge.s32.totalorder %s4470_s29, 1  ;;  %s4470_s29 = sphi %s4523_s29, %s19_s29   ;;  %s4466_s28 = sphi %s4521_s28, %s6093_s28   ;;  %s4462_s27 = sphi %s4519_s27, %s6092_s27  }
   0x3   : > { %p33_p1 = scmp.ge.s32.totalorder %s31_s30, 2  ;;  %p286_p2 = scmp.lt.s32.totalorder %s4470_s29, 3 }
   0x5   : > { %s6095_s30 = smov (%p33_p1, %s31_s30), 0  ;;  %p287_p3 = pnand %p3344_p0, %p286_p2 }
   0x7   : > { %290 = sbr.rel (%p287_p3) target bundleno = 1395 (0x573), region = 44 }
   0xe   : > { %v4312_v0 = vld [vmem:[%s5969_s1] ss:$16 sps:$4 sm:$0xff]   ;;  %v4313_v1 = vld [vmem:[%s5969_s1 + $0x4] ss:$16 sps:$4 sm:$0xff]   ;;  %s3345_s15 = sshll.u32 %s4462_s27, 3  ;;  %v4330_v30 = vld [vmem:[%s5971_s3 + $0x8] sm:$0xff]  }
   0xf   : > { %3836 = vmatprep.subr.bf16.mxu1 %v4312_v0  ;;  %v4314_v2 = vld [vmem:[%s5969_s1 + $0x20] ss:$16 sps:$4 sm:$0xff]   ;;  %3932 = vmatprep.subr.bf16.mxu0 %v4313_v1  ;;  %v4315_v3 = vld [vmem:[%s5969_s1 + $0x24] ss:$16 sps:$4 sm:$0xff]   ;;  %p331_p4 = scmp.lt.s32.totalorder %s3345_s15, 15  ;;  %v4331_v31 = vld [vmem:[%s5971_s3 + $0x48] sm:$0xff]  }
  0x10   : > { %3837 = vmatpush3.bf16.msra.mxu1 %v4312_v0  ;;  %3933 = vmatpush3.bf16.msra.mxu0 %v4313_v1  ;;  %v4316_v4 = vld [vmem:[%s5969_s1 + $0x40] ss:$16 sps:$4 sm:$0xff]   ;;  %v4317_v5 = vld [vmem:[%s5969_s1 + $0x44] ss:$16 sps:$4 sm:$0xff]   ;;  %v4334_v34 = vld [vmem:[%s5971_s3 + $0x18] sm:$0xff]   ;;  %p345_p5 = scmp.lt.s32.totalorder %s4462_s27, 1 }
  0x11   : > { %3838 = vmatprep.subr.bf16.mxu1 %v4314_v2  ;;  %3934 = vmatprep.subr.bf16.mxu0 %v4315_v3  ;;  %v4318_v6 = vld [vmem:[%s5969_s1 + $0x60] ss:$16 sps:$4 sm:$0xff]   ;;  %v4319_v7 = vld [vmem:[%s5969_s1 + $0x64] ss:$16 sps:$4 sm:$0xff]   ;;  %s6097_s15 = smov (!%p331_p4, %s3345_s15), 15  ;;  %v4335_v35 = vld [vmem:[%s5971_s3 + $0x58] sm:$0xff]  }
  0x12   : > { %v4320_v8 = vld [vmem:[%s5969_s1 + $0x80] ss:$16 sps:$4 sm:$0xff]   ;;  %v4321_v9 = vld [vmem:[%s5969_s1 + $0x84] ss:$16 sps:$4 sm:$0xff]   ;;  %s3346_s20 = sshll.u32 %s6097_s15, 3  ;;  %v4338_v38 = vld [vmem:[%s5971_s3 + $0x28] sm:$0xff]  }
  0x13   : > { %v4322_v10 = vld [vmem:[%s5969_s1 + $0xa0] ss:$16 sps:$4 sm:$0xff]   ;;  %v4323_v11 = vld [vmem:[%s5969_s1 + $0xa4] ss:$16 sps:$4 sm:$0xff]   ;;  %s4590_s23 = scalar_lea.vmem %s5968_s0, %s3346_s20  ;;  %s6099_s27 = smov (!%p345_p5, %s4462_s27), 1 }
  0x14   : > { %3839 = vmatpush3.bf16.msra.mxu1 %v4314_v2  ;;  %3935 = vmatpush3.bf16.msra.mxu0 %v4315_v3  ;;  %v4324_v12 = vld [vmem:[%s5969_s1 + $0xc0] ss:$16 sps:$4 sm:$0xff]   ;;  %v4325_v13 = vld [vmem:[%s5969_s1 + $0xc4] ss:$16 sps:$4 sm:$0xff]   ;;  %v364_v15 = vld [vmem:[%s4590_s23 + $0x8] sm:$0xff]  ;;  %s3349_s18 = sshll.u32 %s6099_s27, 2  ;;  %s5904_s11 = scalar_lea.vmem %s5974_s6, %s3346_s20 }
  0x15   : > { %3840 = vmatprep.subr.bf16.mxu1 %v4316_v4  ;;  %3936 = vmatprep.subr.bf16.mxu0 %v4317_v5  ;;  %v363_v14 = vld [vmem:[%s4590_s23] sm:$0xff]  ;;  %v365_v19 = vld [vmem:[%s4590_s23 + $0x10] sm:$0xff]  ;;  %v366_v20 = vld [vmem:[%s4590_s23 + $0x18] sm:$0xff]  ;;  %s5229_s22 = scalar_lea.vmem %s5976_s8, %s3349_s18  ;;  %s347_s12 = scalar_lea.vmem %s5975_s7, %s6099_s27 }
  0x16   : > { %v4326_v16 = vld [vmem:[%s5969_s1 + $0xe0] ss:$16 sps:$4 sm:$0xff]   ;;  %v4327_v17 = vld [vmem:[%s5969_s1 + $0xe4] ss:$16 sps:$4 sm:$0xff]   ;;  %v4600_v18 = vpack.c.bf16 %v364_v15, %v363_v14  ;;  %v368_v22 = vld [vmem:[%s4590_s23 + $0x28] sm:$0xff]  ;;  %v4608_v23 = vpack.c.bf16 %v366_v20, %v365_v19 }
  0x17   : > { %v367_v21 = vld [vmem:[%s4590_s23 + $0x20] sm:$0xff]  ;;  %v369_v25 = vld [vmem:[%s4590_s23 + $0x30] sm:$0xff]  ;;  %v370_v26 = vld [vmem:[%s4590_s23 + $0x38] sm:$0xff] }
  0x18   : > { %3841 = vmatpush3.bf16.msra.mxu1 %v4316_v4  ;;  %3937 = vmatpush3.bf16.msra.mxu0 %v4317_v5  ;;  %v4610_v24 = vpack.c.bf16 %v368_v22, %v367_v21  ;;  %v4618_v27 = vpack.c.bf16 %v370_v26, %v369_v25  ;;  %v4328_v28 = vld [vmem:[%s5971_s3] sm:$0xff]   ;;  %v4332_v32 = vld [vmem:[%s5971_s3 + $0x10] sm:$0xff]   ;;  %v4339_v15 = vld [vmem:[%s5971_s3 + $0x68] sm:$0xff]  }
  0x19   : > { %3842 = vmatprep.subr.bf16.mxu1 %v4318_v6  ;;  %3938 = vmatprep.subr.bf16.mxu0 %v4319_v7  ;;  %v4329_v29 = vld [vmem:[%s5971_s3 + $0x40] sm:$0xff]   ;;  %v4333_v33 = vld [vmem:[%s5971_s3 + $0x50] sm:$0xff]   ;;  %v4342_v25 = vld [vmem:[%s5971_s3 + $0x38] sm:$0xff]  }
  0x1a   : > { %3852 = vmatprep.mubr.bf16.mxu1 %v4600_v18  ;;  %3948 = vmatprep.mubr.bf16.mxu0 %v4600_v18  ;;  %v4336_v36 = vld [vmem:[%s5971_s3 + $0x20] sm:$0xff]   ;;  %v4341_v22 = vld [vmem:[%s5971_s3 + $0x70] sm:$0xff]  }
  0x1b   : > { %v4337_v37 = vld [vmem:[%s5971_s3 + $0x60] sm:$0xff]  }
  0x1c   : > { %3843 = vmatpush3.bf16.msra.mxu1 %v4318_v6  ;;  %3939 = vmatpush3.bf16.msra.mxu0 %v4319_v7  ;;  %v3358_v40 = vld [vmem:[%s5973_s5] ss:$0 sm:$0xff]  ;;  %v4663_v52 = vld [vmem:[%s5973_s5 + $0x1] ss:$0 sm:$0xff] }
  0x1d   : > { %3844 = vmatprep.subr.bf16.mxu1 %v4320_v8  ;;  %3940 = vmatprep.subr.bf16.mxu0 %v4321_v9 }
  0x20   : > { %3845 = vmatpush3.bf16.msra.mxu1 %v4320_v8  ;;  %3941 = vmatpush3.bf16.msra.mxu0 %v4321_v9 }
  0x21   : > { %3846 = vmatprep.subr.bf16.mxu1 %v4322_v10  ;;  %3942 = vmatprep.subr.bf16.mxu0 %v4323_v11 }
  0x24   : > { %3847 = vmatpush3.bf16.msra.mxu1 %v4322_v10  ;;  %3943 = vmatpush3.bf16.msra.mxu0 %v4323_v11 }
  0x25   : > { %3848 = vmatprep.subr.bf16.mxu1 %v4324_v12  ;;  %3944 = vmatprep.subr.bf16.mxu0 %v4325_v13 }
  0x28   : > { %3849 = vmatpush3.bf16.msra.mxu1 %v4324_v12  ;;  %3945 = vmatpush3.bf16.msra.mxu0 %v4325_v13 }
  0x29   : > { %3850 = vmatprep.subr.bf16.mxu1 %v4326_v16  ;;  %3946 = vmatprep.subr.bf16.mxu0 %v4327_v17 }
  0x2c   : > { %3851 = vmatpush3.bf16.msra.mxu1 %v4326_v16  ;;  %3947 = vmatpush3.bf16.msra.mxu0 %v4327_v17  ;;  %v4340_v16 = vld [vmem:[%s5971_s3 + $0x30] sm:$0xff]  }
  0x2d   : > { %3860 = vmatprep.subr.bf16.mxu1 %v4328_v28  ;;  %3956 = vmatprep.subr.bf16.mxu0 %v4329_v29 }
  0x2f   : > { %3853 = vmatmul.mubr.bf16.vlgmr.msra.gmra.mrb[0].mxu1 %v4608_v23  ;;  %3949 = vmatmul.mubr.bf16.vlgmr.msra.gmra.mrb[0].mxu0 %v4608_v23 }
  0x30   : > { %3856 = vmatprep.mubr.bf16.mxu1 %v4610_v24  ;;  %3952 = vmatprep.mubr.bf16.mxu0 %v4610_v24 }
  0x31   : > { %3861 = vmatpush3.bf16.msra.mxu1 %v4328_v28  ;;  %3957 = vmatpush3.bf16.msra.mxu0 %v4329_v29 }
  0x32   : > { %3862 = vmatprep.subr.bf16.mxu1 %v4330_v30  ;;  %3958 = vmatprep.subr.bf16.mxu0 %v4331_v31 }
  0x35   : > { %3863 = vmatpush3.bf16.msra.mxu1 %v4330_v30  ;;  %3959 = vmatpush3.bf16.msra.mxu0 %v4331_v31  ;;  %v4343_v31 = vld [vmem:[%s5971_s3 + $0x78] sm:$0xff]  }
  0x36   : > { %3864 = vmatprep.subr.bf16.mxu1 %v4332_v32  ;;  %3960 = vmatprep.subr.bf16.mxu0 %v4333_v33 }
  0x37   : > { %3857 = vmatmul.mubr.bf16.gmra.mrb[4].mxu1 %v4618_v27  ;;  %3953 = vmatmul.mubr.bf16.gmra.mrb[4].mxu0 %v4618_v27 }
  0x39   : > { %3865 = vmatpush3.bf16.msra.mxu1 %v4332_v32  ;;  %3961 = vmatpush3.bf16.msra.mxu0 %v4333_v33  ;;  %v4344_v32 = vld [vmem:[%s5970_s2] sm:$0xff]  }
  0x3a   : > { %3866 = vmatprep.subr.bf16.mxu1 %v4334_v34  ;;  %3962 = vmatprep.subr.bf16.mxu0 %v4335_v35 }
  0x3d   : > { %3867 = vmatpush3.bf16.msra.mxu1 %v4334_v34  ;;  %3963 = vmatpush3.bf16.msra.mxu0 %v4335_v35  ;;  %v4345_v35 = vld [vmem:[%s5970_s2 + $0x40] sm:$0xff]  }
  0x3e   : > { %3868 = vmatprep.subr.bf16.mxu1 %v4336_v36  ;;  %3964 = vmatprep.subr.bf16.mxu0 %v4337_v37 }
  0x41   : > { %3869 = vmatpush3.bf16.msra.mxu1 %v4336_v36  ;;  %3965 = vmatpush3.bf16.msra.mxu0 %v4337_v37 }
  0x42   : > { %3870 = vmatprep.subr.bf16.mxu1 %v4338_v38  ;;  %3966 = vmatprep.subr.bf16.mxu0 %v4339_v15 }
  0x45   : > { %3871 = vmatpush3.bf16.msra.mxu1 %v4338_v38  ;;  %3967 = vmatpush3.bf16.msra.mxu0 %v4339_v15  ;;  %v5979_v38 = vlaneseq }
  0x46   : > { %3872 = vmatprep.subr.bf16.mxu1 %v4340_v16  ;;  %3968 = vmatprep.subr.bf16.mxu0 %v4341_v22 }
  0x49   : > { %3873 = vmatpush3.bf16.msra.mxu1 %v4340_v16  ;;  %3969 = vmatpush3.bf16.msra.mxu0 %v4341_v22  ;;  %v4356_v22 = vld [vmem:[%s5970_s2 + $0x30] sm:$0xff]  }
  0x4a   : > { %3874 = vmatprep.subr.bf16.mxu1 %v4342_v25  ;;  %3970 = vmatprep.subr.bf16.mxu0 %v4343_v31 }
  0x4d   : > { %3875 = vmatpush3.bf16.msra.mxu1 %v4342_v25  ;;  %3971 = vmatpush3.bf16.msra.mxu0 %v4343_v31  ;;  %v4357_v25 = vld [vmem:[%s5970_s2 + $0x70] sm:$0xff]   ;;  %v4360_v31 = vld [vmem:[%s5972_s4] sm:$0xff]  }
  0x4e   : > { %3884 = vmatprep.subr.bf16.mxu1 %v4344_v32  ;;  %3980 = vmatprep.subr.bf16.mxu0 %v4345_v35 }
 0x102   : > { %v3854_v39 = vpop.f32.mrb[0].mxu1  ;;  %v3950_v43 = vpop.f32.mrb[0].mxu0 }
 0x103   : > { %v507_v41 = vmul.f32 2.0, %v3854_v39  ;;  %v474_v42 = vpop.f32.mrb[1].mxu1  ;;  %v1123_v46 = vpop.f32.mrb[1].mxu0  ;;  %v1156_v4 = vmul.f32 2.0, %v3950_v43 }
 0x104   : > { %v505_v44 = vmul.f32 2.0, %v474_v42  ;;  %v3855_v45 = vpop.f32.mrb[2].mxu1  ;;  %v1154_v48 = vmul.f32 2.0, %v1123_v46  ;;  %v3951_v50 = vpop.f32.mrb[2].mxu0  ;;  %v5977_v46 = vmov 1.0|1.0  }
 0x105   : > { %v508_v47 = vmul.f32 2.0, %v3855_v45  ;;  %v477_v49 = vpop.f32.mrb[3].mxu1  ;;  %v4658_v51 = vsub.f32 %v3358_v40, %v507_v41  ;;  %v1126_v53 = vpop.f32.mrb[3].mxu0  ;;  %v1157_v0 = vmul.f32 2.0, %v3951_v50  ;;  %v4687_v10 = vsub.f32 %v4663_v52, %v1156_v4  ;;  %v4352_v4 = vld [vmem:[%s5970_s2 + $0x20] sm:$0xff]  }
 0x106   : > { %v4665_v54 = vsub.f32 %v3358_v40, %v505_v44  ;;  %v4670_v55 = vsub.f32 %v4663_v52, %v1154_v48  ;;  %v1155_v56 = vmul.f32 2.0, %v1126_v53  ;;  %v506_v58 = vmul.f32 2.0, %v477_v49  ;;  %v4369_v45 = vld [vmem:[%s5972_s4 + $0x60] sm:$0xff]   ;;  %v4372_v44 = vld [vmem:[%s5972_s4 + $0x30] sm:$0xff]   ;;  %v4382_v48 = vld [vmem:[%s5969_s1 + $0x4c] ss:$16 sps:$4 sm:$0xff]  }
 0x107   : > { %547 = vmin.index.xlane.f32.xlu1 %v4658_v51  ;;  %v4672_v57 = vsub.f32 %v3358_v40, %v508_v47  ;;  %v4684_v9 = vsub.f32 %v4663_v52, %v1157_v0  ;;  %v4749_v41 = vand.u32 127, %v5979_v38  ;;  %v4346_v47 = vld [vmem:[%s5970_s2 + $0x8] sm:$0xff]  }
 0x108   : > { %543 = vmin.index.xlane.f32.xlu0 %v4665_v54  ;;  %v4677_v1 = vsub.f32 %v4663_v52, %v1155_v56  ;;  %v4679_v5 = vsub.f32 %v3358_v40, %v506_v58  ;;  %v4348_v56 = vld [vmem:[%s5970_s2 + $0x10] sm:$0xff]   ;;  %v4384_v53 = vld [vmem:[%s5969_s1 + $0x6c] ss:$16 sps:$4 sm:$0xff]  }
 0x109   : > { %v4386_v0 = vld [vmem:[%s5969_s1 + $0x8c] ss:$16 sps:$4 sm:$0xff]  }
 0x10a   : > { %v3858_v59 = vpop.f32.mrb[4].mxu1  ;;  %v3954_v61 = vpop.f32.mrb[4].mxu0 }
 0x10b   : > { %549 = vmin.index.xlane.f32.xlu1 %v4672_v57  ;;  %v490_v60 = vpop.f32.mrb[5].mxu1  ;;  %v1139_v63 = vpop.f32.mrb[5].mxu0  ;;  %v511_v8 = vmul.f32 2.0, %v3858_v59  ;;  %v1160_v29 = vmul.f32 2.0, %v3954_v61  ;;  %v4350_v61 = vld [vmem:[%s5970_s2 + $0x18] sm:$0xff]  }
 0x10c   : > { %1192 = vmin.index.xlane.f32.xlu0 %v4670_v55  ;;  %v3859_v62 = vpop.f32.mrb[6].mxu1  ;;  %v3955_v3 = vpop.f32.mrb[6].mxu0  ;;  %v509_v13 = vmul.f32 2.0, %v490_v60  ;;  %v1158_v20 = vmul.f32 2.0, %v1139_v63  ;;  %v4349_v60 = vld [vmem:[%s5970_s2 + $0x50] sm:$0xff]  }
 0x10d   : > { %v493_v2 = vpop.f32.mrb[7].mxu1  ;;  %v1142_v6 = vpop.f32.mrb[7].mxu0  ;;  %v512_v7 = vmul.f32 2.0, %v3859_v62  ;;  %v4693_v14 = vsub.f32 %v3358_v40, %v511_v8  ;;  %v1161_v26 = vmul.f32 2.0, %v3955_v3  ;;  %v4733_v34 = vsub.f32 %v4663_v52, %v1160_v29  ;;  %v4351_v3 = vld [vmem:[%s5970_s2 + $0x58] sm:$0xff]   ;;  %v4353_v8 = vld [vmem:[%s5970_s2 + $0x60] sm:$0xff]  }
 0x10e   : > { %v510_v11 = vmul.f32 2.0, %v493_v2  ;;  %v1159_v17 = vmul.f32 2.0, %v1142_v6  ;;  %v4705_v21 = vsub.f32 %v3358_v40, %v509_v13  ;;  %v4719_v30 = vsub.f32 %v4663_v52, %v1158_v20  ;;  %v4354_v13 = vld [vmem:[%s5970_s2 + $0x28] sm:$0xff]   ;;  %v4359_v29 = vld [vmem:[%s5970_s2 + $0x78] sm:$0xff]  }
 0x10f   : > { %1194 = vmin.index.xlane.f32.xlu1 %v4677_v1  ;;  %v4690_v12 = vsub.f32 %v3358_v40, %v512_v7  ;;  %v4729_v33 = vsub.f32 %v4663_v52, %v1161_v26  ;;  %v4358_v26 = vld [vmem:[%s5970_s2 + $0x38] sm:$0xff]  }
 0x110   : > { %545 = vmin.index.xlane.f32.xlu0 %v4679_v5  ;;  %v4702_v19 = vsub.f32 %v3358_v40, %v510_v11  ;;  %v4715_v28 = vsub.f32 %v4663_v52, %v1159_v17  ;;  %v4347_v52 = vld [vmem:[%s5970_s2 + $0x48] sm:$0xff]  }
 0x111   : > { %v4355_v17 = vld [vmem:[%s5970_s2 + $0x68] sm:$0xff]  }
 0x112   : > { %v4381_v2 = vld [vmem:[%s5969_s1 + $0x68] ss:$16 sps:$4 sm:$0xff]   ;;  %v4388_v20 = vld [vmem:[%s5969_s1 + $0xac] ss:$16 sps:$4 sm:$0xff]  }
 0x113   : > { %1198 = vmin.index.xlane.f32.xlu1 %v4684_v9  ;;  %v4383_v11 = vld [vmem:[%s5969_s1 + $0x88] ss:$16 sps:$4 sm:$0xff]  }
 0x114   : > { %1196 = vmin.index.xlane.f32.xlu0 %v4687_v10 }
 0x117   : > { %557 = vmin.index.xlane.f32.xlu1 %v4690_v12 }
 0x118   : > { %555 = vmin.index.xlane.f32.xlu0 %v4693_v14 }
 0x11b   : > { %553 = vmin.index.xlane.f32.xlu1 %v4702_v19 }
 0x11c   : > { %551 = vmin.index.xlane.f32.xlu0 %v4705_v21 }
 0x11f   : > { %1202 = vmin.index.xlane.f32.xlu1 %v4715_v28 }
 0x120   : > { %1200 = vmin.index.xlane.f32.xlu0 %v4719_v30 }
 0x123   : > { %1206 = vmin.index.xlane.f32.xlu1 %v4729_v33 }
 0x124   : > { %1204 = vmin.index.xlane.f32.xlu0 %v4733_v34 }
 0x194   : > { %v4740_v36 = vpop.xlane.xlu1 %547 }
 0x195   : > { %v4742_v37 = vpop.xlane.xlu0 %543  ;;  %vm563_vm6 = vcmp.eq.s32.totalorder %v4740_v36, %v4749_v41 }
 0x196   : > { %vm561_vm3 = vcmp.eq.s32.totalorder %v4742_v37, %v4749_v41 }
 0x198   : > { %v4744_v39 = vpop.xlane.xlu1 %549 }
 0x199   : > { %v4746_v40 = vpop.xlane.xlu0 %1192  ;;  %vm564_vm0 = vcmp.eq.s32.totalorder %v4744_v39, %v4749_v41 }
 0x19a   : > { %vm1208_vm1 = vcmp.eq.s32.totalorder %v4746_v40, %v4749_v41  ;;  %vm4781_vm8 = vmpackc.low %vm564_vm0, %vm563_vm6 }
 0x19c   : > { %v4751_v42 = vpop.xlane.xlu1 %1194 }
 0x19d   : > { %vm1209_vm2 = vcmp.eq.s32.totalorder %v4751_v42, %v4749_v41  ;;  %v4759_v43 = vpop.xlane.xlu0 %545 }
 0x19e   : > { %vm4763_vm4 = vmpackc.low %vm1209_vm2, %vm1208_vm1  ;;  %vm562_vm5 = vcmp.eq.s32.totalorder %v4759_v43, %v4749_v41 }
 0x19f   : > { %vm4771_vm7 = vmpackc.low %vm562_vm5, %vm561_vm3  ;;  %3972 = vmatprep.mubr.msk.bf16.mxu0 %vm4763_vm4, %v5977_v46 }
 0x1a0   : > { %v4785_v49 = vpop.xlane.xlu1 %1198  ;;  %3876 = vmatprep.mubr.msk.bf16.mxu1 %vm4771_vm7, %v5977_v46 }
 0x1a1   : > { %vm1211_vm9 = vcmp.eq.s32.totalorder %v4785_v49, %v4749_v41  ;;  %3877 = vmatmul.mubr.msk.bf16.vlgmr.msra.gmra.mrb[8].mxu1 %vm4781_vm8, %v5977_v46  ;;  %v4795_v50 = vpop.xlane.xlu0 %1196 }
 0x1a2   : > { %3885 = vmatpush3.bf16.msra.mxu1 %v4344_v32  ;;  %vm1210_vm10 = vcmp.eq.s32.totalorder %v4795_v50, %v4749_v41  ;;  %v4361_v32 = vld [vmem:[%s5972_s4 + $0x40] sm:$0xff]  }
 0x1a3   : > { %vm4802_vm11 = vmpackc.low %vm1211_vm9, %vm1210_vm10  ;;  %3886 = vmatprep.subr.bf16.mxu1 %v4346_v47 }
 0x1a4   : > { %3973 = vmatmul.mubr.msk.bf16.vlgmr.msra.gmra.mrb[8].mxu0 %vm4802_vm11, %v5977_v46  ;;  %v4812_v58 = vpop.xlane.xlu1 %557 }
 0x1a5   : > { %6008 = vst [vmem:[#allocation2_spill] sm:$0xff] %v4812_v58  ;;  %3981 = vmatpush3.bf16.msra.mxu0 %v4345_v35  ;;  %v4814_v59 = vpop.xlane.xlu0 %555  ;;  %vm568_vm13 = vcmp.eq.s32.totalorder %v4812_v58, %v4749_v41  ;;  %v4362_v35 = vld [vmem:[%s5972_s4 + $0x8] sm:$0xff]  }
 0x1a6   : > { %6009 = vst [vmem:[#allocation3_spill] sm:$0xff] %v4814_v59  ;;  %3887 = vmatpush3.bf16.msra.mxu1 %v4346_v47  ;;  %3982 = vmatprep.subr.bf16.mxu0 %v4347_v52  ;;  %vm567_vm12 = vcmp.eq.s32.totalorder %v4814_v59, %v4749_v41  ;;  %v4363_v47 = vld [vmem:[%s5972_s4 + $0x48] sm:$0xff]  }
 0x1a7   : > { %3888 = vmatprep.subr.bf16.mxu1 %v4348_v56  ;;  %vm4832_vm15 = vmpackc.low %vm568_vm13, %vm567_vm12 }
 0x1a8   : > { %v4826_v62 = vpop.xlane.xlu1 %553 }
 0x1a9   : > { %6010 = vst [vmem:[#allocation4_spill] sm:$0xff] %v4826_v62  ;;  %3983 = vmatpush3.bf16.msra.mxu0 %v4347_v52  ;;  %v4828_v63 = vpop.xlane.xlu0 %551  ;;  %vm566_vm14 = vcmp.eq.s32.totalorder %v4826_v62, %v4749_v41  ;;  %v4364_v52 = vld [vmem:[%s5972_s4 + $0x10] sm:$0xff]  }
 0x1aa   : > { %3889 = vmatpush3.bf16.msra.mxu1 %v4348_v56  ;;  %vm565_vm0 = vcmp.eq.s32.totalorder %v4828_v63, %v4749_v41  ;;  %3984 = vmatprep.subr.bf16.mxu0 %v4349_v60  ;;  %v4365_v56 = vld [vmem:[%s5972_s4 + $0x50] sm:$0xff]  }
 0x1ab   : > { %vm4838_vm1 = vmpackc.low %vm566_vm14, %vm565_vm0  ;;  %3890 = vmatprep.subr.bf16.mxu1 %v4350_v61 }
 0x1ac   : > { %3880 = vmatprep.mubr.msk.bf16.mxu1 %vm4838_vm1, %v5977_v46  ;;  %v4851_v6 = vpop.xlane.xlu1 %1202 }
 0x1ad   : > { %6015 = vst [vmem:[#allocation5_spill] sm:$0xff] %v4851_v6  ;;  %3985 = vmatpush3.bf16.msra.mxu0 %v4349_v60  ;;  %v4853_v7 = vpop.xlane.xlu0 %1200  ;;  %3881 = vmatmul.mubr.msk.bf16.gmra.mrb[12].mxu1 %vm4832_vm15, %v5977_v46  ;;  %vm1213_vm2 = vcmp.eq.s32.totalorder %v4851_v6, %v4749_v41  ;;  %v4366_v60 = vld [vmem:[%s5972_s4 + $0x18] sm:$0xff]  }
 0x1ae   : > { %3891 = vmatpush3.bf16.msra.mxu1 %v4350_v61  ;;  %vm1212_vm3 = vcmp.eq.s32.totalorder %v4853_v7, %v4749_v41  ;;  %3900 = vmatprep.mubr.msk.bf16.mxu1 %vm4771_vm7, %v5977_v46  ;;  %v4367_v61 = vld [vmem:[%s5972_s4 + $0x58] sm:$0xff]  }
 0x1af   : > { %vm4868_vm5 = vmpackc.low %vm1213_vm2, %vm1212_vm3  ;;  %3986 = vmatprep.subr.bf16.mxu0 %v4351_v3  ;;  %3892 = vmatprep.subr.bf16.mxu1 %v4352_v4 }
 0x1b0   : > { %v4875_v15 = vpop.xlane.xlu1 %1206  ;;  %3976 = vmatprep.mubr.msk.bf16.mxu0 %vm4868_vm5, %v5977_v46 }
 0x1b1   : > { %6018 = vst [vmem:[#allocation6_spill] sm:$0xff] %v4875_v15  ;;  %3987 = vmatpush3.bf16.msra.mxu0 %v4351_v3  ;;  %v4880_v16 = vpop.xlane.xlu0 %1204  ;;  %vm1215_vm6 = vcmp.eq.s32.totalorder %v4875_v15, %v4749_v41  ;;  %v4368_v3 = vld [vmem:[%s5972_s4 + $0x20] sm:$0xff]  }
 0x1b2   : > { %6019 = vst [vmem:[#allocation7_spill] sm:$0xff] %v4880_v16  ;;  %3893 = vmatpush3.bf16.msra.mxu1 %v4352_v4  ;;  %vm1214_vm9 = vcmp.eq.s32.totalorder %v4880_v16, %v4749_v41  ;;  %3988 = vmatprep.subr.bf16.mxu0 %v4353_v8  ;;  %v4370_v4 = vld [vmem:[%s5972_s4 + $0x28] sm:$0xff]  }
 0x1b3   : > { %vm4889_vm10 = vmpackc.low %vm1215_vm6, %vm1214_vm9  ;;  %3894 = vmatprep.subr.bf16.mxu1 %v4354_v13 }
 0x1b4   : > { %3977 = vmatmul.mubr.msk.bf16.gmra.mrb[12].mxu0 %vm4889_vm10, %v5977_v46 }
 0x1b5   : > { %3989 = vmatpush3.bf16.msra.mxu0 %v4353_v8  ;;  %3996 = vmatprep.mubr.msk.bf16.mxu0 %vm4763_vm4, %v5977_v46  ;;  %v4371_v8 = vld [vmem:[%s5972_s4 + $0x68] sm:$0xff]  }
 0x1b6   : > { %3895 = vmatpush3.bf16.msra.mxu1 %v4354_v13  ;;  %3990 = vmatprep.subr.bf16.mxu0 %v4355_v17  ;;  %v4373_v13 = vld [vmem:[%s5972_s4 + $0x70] sm:$0xff]  }
 0x1b7   : > { %3896 = vmatprep.subr.bf16.mxu1 %v4356_v22 }
 0x1b9   : > { %3991 = vmatpush3.bf16.msra.mxu0 %v4355_v17  ;;  %v4374_v17 = vld [vmem:[%s5972_s4 + $0x38] sm:$0xff]  }
 0x1ba   : > { %3897 = vmatpush3.bf16.msra.mxu1 %v4356_v22  ;;  %3992 = vmatprep.subr.bf16.mxu0 %v4357_v25  ;;  %v4375_v22 = vld [vmem:[%s5972_s4 + $0x78] sm:$0xff]  }
 0x1bb   : > { %3898 = vmatprep.subr.bf16.mxu1 %v4358_v26 }
 0x1bd   : > { %3993 = vmatpush3.bf16.msra.mxu0 %v4357_v25  ;;  %v4376_v25 = vld [vmem:[%s5969_s1 + $0x8] ss:$16 sps:$4 sm:$0xff]  }
 0x1be   : > { %3899 = vmatpush3.bf16.msra.mxu1 %v4358_v26  ;;  %3994 = vmatprep.subr.bf16.mxu0 %v4359_v29  ;;  %v4377_v26 = vld [vmem:[%s5969_s1 + $0x28] ss:$16 sps:$4 sm:$0xff]  }
 0x1bf   : > { %3908 = vmatprep.subr.bf16.mxu1 %v4360_v31 }
 0x1c1   : > { %3901 = vmatmul.mubr.msk.bf16.vlgmr.msra.gmra.mrb[8].mxu1 %vm4781_vm8, %v5977_v46  ;;  %3995 = vmatpush3.bf16.msra.mxu0 %v4359_v29  ;;  %v4378_v29 = vld [vmem:[%s5969_s1 + $0xc] ss:$16 sps:$4 sm:$0xff]  }
 0x1c2   : > { %3904 = vmatprep.mubr.msk.bf16.mxu1 %vm4838_vm1, %v5977_v46  ;;  %3909 = vmatpush3.bf16.msra.mxu1 %v4360_v31  ;;  %v4380_v31 = vld [vmem:[%s5969_s1 + $0x2c] ss:$16 sps:$4 sm:$0xff]  }
 0x1c3   : > { %4004 = vmatprep.subr.bf16.mxu0 %v4361_v32  ;;  %3910 = vmatprep.subr.bf16.mxu1 %v4362_v35 }
 0x1c4   : > { %3997 = vmatmul.mubr.msk.bf16.vlgmr.msra.gmra.mrb[8].mxu0 %vm4802_vm11, %v5977_v46 }
 0x1c5   : > { %4000 = vmatprep.mubr.msk.bf16.mxu0 %vm4868_vm5, %v5977_v46  ;;  %4005 = vmatpush3.bf16.msra.mxu0 %v4361_v32  ;;  %v4379_v32 = vld [vmem:[%s5969_s1 + $0x48] ss:$16 sps:$4 sm:$0xff]  }
 0x1c6   : > { %3911 = vmatpush3.bf16.msra.mxu1 %v4362_v35  ;;  %4006 = vmatprep.subr.bf16.mxu0 %v4363_v47  ;;  %v4385_v35 = vld [vmem:[%s5969_s1 + $0xa8] ss:$16 sps:$4 sm:$0xff]  }
 0x1c7   : > { %3912 = vmatprep.subr.bf16.mxu1 %v4364_v52 }
 0x1c9   : > { %3905 = vmatmul.mubr.msk.bf16.gmra.mrb[12].mxu1 %vm4832_vm15, %v5977_v46  ;;  %4007 = vmatpush3.bf16.msra.mxu0 %v4363_v47  ;;  %v4390_v47 = vld [vmem:[%s5969_s1 + $0xcc] ss:$16 sps:$4 sm:$0xff]  }
 0x1ca   : > { %3913 = vmatpush3.bf16.msra.mxu1 %v4364_v52  ;;  %3924 = vmatprep.mubr.msk.bf16.mxu1 %vm4771_vm7, %v5977_v46  ;;  %v4389_v52 = vld [vmem:[%s5969_s1 + $0xe8] ss:$16 sps:$4 sm:$0xff]  }
 0x1cb   : > { %4008 = vmatprep.subr.bf16.mxu0 %v4365_v56  ;;  %3914 = vmatprep.subr.bf16.mxu1 %v4366_v60 }
 0x1cc   : > { %4001 = vmatmul.mubr.msk.bf16.gmra.mrb[12].mxu0 %vm4889_vm10, %v5977_v46 }
 0x1cd   : > { %4009 = vmatpush3.bf16.msra.mxu0 %v4365_v56  ;;  %4020 = vmatprep.mubr.msk.bf16.mxu0 %vm4763_vm4, %v5977_v46  ;;  %v4391_v56 = vld [vmem:[%s5969_s1 + $0xec] ss:$16 sps:$4 sm:$0xff]  }
 0x1ce   : > { %3915 = vmatpush3.bf16.msra.mxu1 %v4366_v60  ;;  %4010 = vmatprep.subr.bf16.mxu0 %v4367_v61 }
 0x1cf   : > { %3916 = vmatprep.subr.bf16.mxu1 %v4368_v3 }
 0x1d1   : > { %4011 = vmatpush3.bf16.msra.mxu0 %v4367_v61 }
 0x1d2   : > { %3917 = vmatpush3.bf16.msra.mxu1 %v4368_v3  ;;  %4012 = vmatprep.subr.bf16.mxu0 %v4369_v45 }
 0x1d3   : > { %3918 = vmatprep.subr.bf16.mxu1 %v4370_v4 }
 0x1d5   : > { %4013 = vmatpush3.bf16.msra.mxu0 %v4369_v45 }
 0x1d6   : > { %3919 = vmatpush3.bf16.msra.mxu1 %v4370_v4  ;;  %4014 = vmatprep.subr.bf16.mxu0 %v4371_v8 }
 0x1d7   : > { %3920 = vmatprep.subr.bf16.mxu1 %v4372_v44 }
 0x1d9   : > { %4015 = vmatpush3.bf16.msra.mxu0 %v4371_v8 }
 0x1da   : > { %3921 = vmatpush3.bf16.msra.mxu1 %v4372_v44  ;;  %4016 = vmatprep.subr.bf16.mxu0 %v4373_v13  ;;  %v4396_v44 = vld [vmem:[%s5971_s3 + $0xc8] sm:$0xff]  }
 0x1db   : > { %3922 = vmatprep.subr.bf16.mxu1 %v4374_v17 }
 0x1dd   : > { %4017 = vmatpush3.bf16.msra.mxu0 %v4373_v13 }
 0x1de   : > { %3923 = vmatpush3.bf16.msra.mxu1 %v4374_v17  ;;  %4018 = vmatprep.subr.bf16.mxu0 %v4375_v22 }
 0x1df   : > { %4028 = vmatprep.subr.bf16.mxu1 %v4376_v25 }
 0x1e1   : > { %3925 = vmatmul.mubr.msk.bf16.vlgmr.msra.gmra.mrb[8].mxu1 %vm4781_vm8, %v5977_v46  ;;  %4019 = vmatpush3.bf16.msra.mxu0 %v4375_v22  ;;  %v4395_v22 = vld [vmem:[%s5971_s3 + $0x90] sm:$0xff]  }
 0x1e2   : > { %3928 = vmatprep.mubr.msk.bf16.mxu1 %vm4838_vm1, %v5977_v46  ;;  %4029 = vmatpush3.bf16.msra.mxu1 %v4376_v25  ;;  %v4398_v25 = vld [vmem:[%s5971_s3 + $0xd0] sm:$0xff]  }
 0x1e3   : > { %4030 = vmatprep.subr.bf16.mxu1 %v4377_v26  ;;  %4124 = vmatprep.subr.bf16.mxu0 %v4378_v29 }
 0x1e4   : > { %4021 = vmatmul.mubr.msk.bf16.vlgmr.msra.gmra.mrb[8].mxu0 %vm4802_vm11, %v5977_v46 }
 0x1e5   : > { %4024 = vmatprep.mubr.msk.bf16.mxu0 %vm4868_vm5, %v5977_v46  ;;  %4125 = vmatpush3.bf16.msra.mxu0 %v4378_v29 }
 0x1e6   : > { %4031 = vmatpush3.bf16.msra.mxu1 %v4377_v26  ;;  %4126 = vmatprep.subr.bf16.mxu0 %v4380_v31 }
 0x1e7   : > { %4032 = vmatprep.subr.bf16.mxu1 %v4379_v32 }
 0x1e9   : > { %3929 = vmatmul.mubr.msk.bf16.gmra.mrb[12].mxu1 %vm4832_vm15, %v5977_v46  ;;  %4127 = vmatpush3.bf16.msra.mxu0 %v4380_v31 }
 0x1ea   : > { %4033 = vmatpush3.bf16.msra.mxu1 %v4379_v32  ;;  %4128 = vmatprep.subr.bf16.mxu0 %v4382_v48 }
 0x1eb   : > { %4034 = vmatprep.subr.bf16.mxu1 %v4381_v2  ;;  %4044 = vmatprep.mubr.bf16.mxu1 %v4600_v18 }
 0x1ec   : > { %4025 = vmatmul.mubr.msk.bf16.gmra.mrb[12].mxu0 %vm4889_vm10, %v5977_v46 }
 0x1ed   : > { %4129 = vmatpush3.bf16.msra.mxu0 %v4382_v48  ;;  %4140 = vmatprep.mubr.bf16.mxu0 %v4600_v18  ;;  %v4387_v18 = vld [vmem:[%s5969_s1 + $0xc8] ss:$16 sps:$4 sm:$0xff]  }
 0x1ee   : > { %4035 = vmatpush3.bf16.msra.mxu1 %v4381_v2  ;;  %4130 = vmatprep.subr.bf16.mxu0 %v4384_v53  ;;  %v4397_v2 = vld [vmem:[%s5971_s3 + $0x98] sm:$0xff]  }
 0x1ef   : > { %4036 = vmatprep.subr.bf16.mxu1 %v4383_v11 }
 0x1f1   : > { %4131 = vmatpush3.bf16.msra.mxu0 %v4384_v53  ;;  %v4400_v53 = vld [vmem:[%s5971_s3 + $0xd8] sm:$0xff]  }
 0x1f2   : > { %4037 = vmatpush3.bf16.msra.mxu1 %v4383_v11  ;;  %4132 = vmatprep.subr.bf16.mxu0 %v4386_v0 }
 0x1f3   : > { %4038 = vmatprep.subr.bf16.mxu1 %v4385_v35 }
 0x1f5   : > { %4133 = vmatpush3.bf16.msra.mxu0 %v4386_v0 }
 0x1f6   : > { %4039 = vmatpush3.bf16.msra.mxu1 %v4385_v35  ;;  %4134 = vmatprep.subr.bf16.mxu0 %v4388_v20 }
 0x1f7   : > { %4040 = vmatprep.subr.bf16.mxu1 %v4387_v18 }
 0x1f9   : > { %4135 = vmatpush3.bf16.msra.mxu0 %v4388_v20  ;;  %v4399_v20 = vld [vmem:[%s5971_s3 + $0xa0] sm:$0xff]  }
 0x1fa   : > { %4041 = vmatpush3.bf16.msra.mxu1 %v4387_v18  ;;  %4136 = vmatprep.subr.bf16.mxu0 %v4390_v47  ;;  %v4401_v18 = vld [vmem:[%s5971_s3 + $0xa8] sm:$0xff]  }
 0x1fb   : > { %4042 = vmatprep.subr.bf16.mxu1 %v4389_v52 }
 0x1fd   : > { %4137 = vmatpush3.bf16.msra.mxu0 %v4390_v47 }
 0x1fe   : > { %4043 = vmatpush3.bf16.msra.mxu1 %v4389_v52  ;;  %4138 = vmatprep.subr.bf16.mxu0 %v4391_v56  ;;  %v3488_v52 = vld [vmem:[%s5973_s5 + $0x2] ss:$0 sm:$0xff] }
 0x201   : > { %4045 = vmatmul.mubr.bf16.vlgmr.msra.gmra.mrb[16].mxu1 %v4608_v23  ;;  %4139 = vmatpush3.bf16.msra.mxu0 %v4391_v56 }
 0x202   : > { %4048 = vmatprep.mubr.bf16.mxu1 %v4610_v24 }
 0x204   : > { %4141 = vmatmul.mubr.bf16.vlgmr.msra.gmra.mrb[16].mxu0 %v4608_v23  ;;  %v4392_v23 = vld [vmem:[%s5971_s3 + $0x80] sm:$0xff]  }
 0x205   : > { %4144 = vmatprep.mubr.bf16.mxu0 %v4610_v24  ;;  %v4393_v24 = vld [vmem:[%s5971_s3 + $0x88] sm:$0xff]   ;;  %4052 = vmatprep.subr.bf16.mxu1 %v4392_v23 }
 0x206   : > { %4053 = vmatpush3.bf16.msra.mxu1 %v4392_v23 }
 0x207   : > { %4054 = vmatprep.subr.bf16.mxu1 %v4393_v24 }
 0x209   : > { %4049 = vmatmul.mubr.bf16.gmra.mrb[20].mxu1 %v4618_v27 }
 0x20a   : > { %4055 = vmatpush3.bf16.msra.mxu1 %v4393_v24 }
 0x20b   : > { %4056 = vmatprep.subr.bf16.mxu1 %v4395_v22 }
 0x20c   : > { %4145 = vmatmul.mubr.bf16.gmra.mrb[20].mxu0 %v4618_v27  ;;  %v4394_v27 = vld [vmem:[%s5971_s3 + $0xc0] sm:$0xff]  }
 0x20d   : > { %4148 = vmatprep.subr.bf16.mxu0 %v4394_v27 }
 0x20e   : > { %4149 = vmatpush3.bf16.msra.mxu0 %v4394_v27  ;;  %4057 = vmatpush3.bf16.msra.mxu1 %v4395_v22 }
 0x20f   : > { %4150 = vmatprep.subr.bf16.mxu0 %v4396_v44  ;;  %4058 = vmatprep.subr.bf16.mxu1 %v4397_v2 }
 0x212   : > { %4151 = vmatpush3.bf16.msra.mxu0 %v4396_v44  ;;  %4059 = vmatpush3.bf16.msra.mxu1 %v4397_v2 }
 0x213   : > { %4152 = vmatprep.subr.bf16.mxu0 %v4398_v25  ;;  %4060 = vmatprep.subr.bf16.mxu1 %v4399_v20 }
 0x216   : > { %4153 = vmatpush3.bf16.msra.mxu0 %v4398_v25  ;;  %4061 = vmatpush3.bf16.msra.mxu1 %v4399_v20 }
 0x217   : > { %4154 = vmatprep.subr.bf16.mxu0 %v4400_v53  ;;  %4062 = vmatprep.subr.bf16.mxu1 %v4401_v18 }
 0x21a   : > { %4155 = vmatpush3.bf16.msra.mxu0 %v4400_v53  ;;  %4063 = vmatpush3.bf16.msra.mxu1 %v4401_v18 }
 0x2b4   : > { %v5057_v60 = vpop.f32.mrb[8].mxu1 }
 0x2b5   : > { %v5059_v61 = vpop.f32.mrb[9].mxu1 }
 0x2b6   : > { %v5061_v3 = vpop.f32.mrb[10].mxu1 }
 0x2b7   : > { %v5063_v45 = vpop.f32.mrb[11].mxu1  ;;  %v5065_v4 = vpop.f32.mrb[8].mxu0 }
 0x2b8   : > { %v5076_v8 = vpop.f32.mrb[9].mxu0 }
 0x2b9   : > { %v5081_v13 = vpop.f32.mrb[10].mxu0 }
 0x2ba   : > { %v5083_v17 = vpop.f32.mrb[11].mxu0 }
 0x2bc   : > { %v5091_v26 = vpop.f32.mrb[12].mxu1 }
 0x2bd   : > { %6022 = vst [vmem:[#allocation8_spill] sm:$0xff] %v5091_v26  ;;  %v5093_v29 = vpop.f32.mrb[13].mxu1 }
 0x2be   : > { %v5095_v31 = vpop.f32.mrb[14].mxu1 }
 0x2bf   : > { %6023 = vst [vmem:[#allocation9_spill] sm:$0xff] %v5095_v31  ;;  %v5097_v32 = vpop.f32.mrb[15].mxu1  ;;  %v5099_v48 = vpop.f32.mrb[12].mxu0  ;;  %v4402_v31 = vld [vmem:[%s5971_s3 + $0xe0] sm:$0xff]  }
 0x2c0   : > { %6024 = vst [vmem:[#allocation10_spill] sm:$0xff] %v5097_v32  ;;  %6025 = vst [vmem:[#allocation11_spill] sm:$0xff] %v5099_v48  ;;  %v5107_v11 = vpop.f32.mrb[13].mxu0  ;;  %4156 = vmatprep.subr.bf16.mxu0 %v4402_v31 }
 0x2c1   : > { %v5109_v0 = vpop.f32.mrb[14].mxu0  ;;  %4157 = vmatpush3.bf16.msra.mxu0 %v4402_v31  ;;  %v4406_v31 = vld [vmem:[%s5971_s3 + $0xf0] sm:$0xff]  }
 0x2c2   : > { %6026 = vst [vmem:[#allocation12_spill] sm:$0xff] %v5109_v0  ;;  %v5111_v35 = vpop.f32.mrb[15].mxu0 }
 0x2c3   : > { %6027 = vst [vmem:[#allocation13_spill] sm:$0xff] %v5111_v35  ;;  %v4405_v35 = vld [vmem:[%s5971_s3 + $0xb8] sm:$0xff]  }
 0x2d4   : > { %v4046_v47 = vpop.f32.mrb[16].mxu1 }
 0x2d5   : > { %v1819_v56 = vmul.f32 2.0, %v4046_v47  ;;  %v1786_v23 = vpop.f32.mrb[17].mxu1  ;;  %v5130_v47 = vld [vmem:[%s5973_s5 + $0x3] ss:$0 sm:$0xff] }
 0x2d6   : > { %v4047_v24 = vpop.f32.mrb[18].mxu1  ;;  %v1817_v27 = vmul.f32 2.0, %v1786_v23 }
 0x2d7   : > { %v1820_v44 = vmul.f32 2.0, %v4047_v24  ;;  %v1789_v22 = vpop.f32.mrb[19].mxu1  ;;  %v4142_v25 = vpop.f32.mrb[16].mxu0  ;;  %v5122_v2 = vsub.f32 %v3488_v52, %v1819_v56 }
 0x2d8   : > { %v2449_v53 = vpop.f32.mrb[17].mxu0  ;;  %v1818_v46 = vmul.f32 2.0, %v1789_v22  ;;  %v5133_v23 = vsub.f32 %v3488_v52, %v1817_v27  ;;  %v2482_v59 = vmul.f32 2.0, %v4142_v25 }
 0x2d9   : > { %1859 = vmin.index.xlane.f32.xlu0 %v5122_v2  ;;  %v2480_v20 = vmul.f32 2.0, %v2449_v53  ;;  %v4143_v18 = vpop.f32.mrb[18].mxu0  ;;  %v5125_v38 = vsub.f32 %v3488_v52, %v1820_v44 }
 0x2da   : > { %v2452_v58 = vpop.f32.mrb[19].mxu0  ;;  %v5136_v22 = vsub.f32 %v3488_v52, %v1818_v46  ;;  %v2483_v6 = vmul.f32 2.0, %v4143_v18 }
 0x2db   : > { %1861 = vmin.index.xlane.f32.xlu1 %v5125_v38  ;;  %v2481_v24 = vmul.f32 2.0, %v2452_v58  ;;  %v5139_v53 = vsub.f32 %v5130_v47, %v2480_v20  ;;  %v5148_v20 = vsub.f32 %v5130_v47, %v2482_v59 }
 0x2dc   : > { %v4050_v56 = vpop.f32.mrb[20].mxu1  ;;  %v5155_v18 = vsub.f32 %v5130_v47, %v2483_v6  ;;  %v4404_v6 = vld [vmem:[%s5971_s3 + $0xe8] sm:$0xff]  }
 0x2dd   : > { %1855 = vmin.index.xlane.f32.xlu0 %v5133_v23  ;;  %v1802_v44 = vpop.f32.mrb[21].mxu1  ;;  %v5144_v58 = vsub.f32 %v5130_v47, %v2481_v24  ;;  %v1823_v27 = vmul.f32 2.0, %v4050_v56  ;;  %v4403_v56 = vld [vmem:[%s5971_s3 + $0xb0] sm:$0xff]   ;;  %4158 = vmatprep.subr.bf16.mxu0 %v4404_v6 }
 0x2de   : > { %v4051_v0 = vpop.f32.mrb[22].mxu1  ;;  %v1821_v26 = vmul.f32 2.0, %v1802_v44  ;;  %4064 = vmatprep.subr.bf16.mxu1 %v4403_v56  ;;  %4159 = vmatpush3.bf16.msra.mxu0 %v4404_v6  ;;  %v4417_v6 = vld [vmem:[%s5970_s2 + $0xa8] sm:$0xff]  }
 0x2df   : > { %1857 = vmin.index.xlane.f32.xlu1 %v5136_v22  ;;  %v1805_v16 = vpop.f32.mrb[23].mxu1  ;;  %v4146_v62 = vpop.f32.mrb[20].mxu0  ;;  %v1824_v25 = vmul.f32 2.0, %v4051_v0  ;;  %v5157_v24 = vsub.f32 %v3488_v52, %v1823_v27  ;;  %4065 = vmatpush3.bf16.msra.mxu1 %v4403_v56 }
 0x2e0   : > { %v2465_v15 = vpop.f32.mrb[21].mxu0  ;;  %v1822_v59 = vmul.f32 2.0, %v1805_v16  ;;  %v1835_v27 = vsub.f32 %v3488_v52, %v1821_v26  ;;  %4066 = vmatprep.subr.bf16.mxu1 %v4405_v35  ;;  %v2486_v56 = vmul.f32 2.0, %v4146_v62  ;;  %v5180_v26 = vld [vmem:[%s5970_s2 + $0x80] sm:$0xff]   ;;  %4160 = vmatprep.subr.bf16.mxu0 %v4406_v31  ;;  %v4408_v62 = vld [vmem:[%s5971_s3 + $0xf8] sm:$0xff]  }
 0x2e1   : > { %2518 = vmin.index.xlane.f32.xlu0 %v5139_v53  ;;  %v4147_v46 = vpop.f32.mrb[22].mxu0  ;;  %v5163_v0 = vsub.f32 %v3488_v52, %v1824_v25  ;;  %v2484_v44 = vmul.f32 2.0, %v2465_v15 }
 0x2e2   : > { %v2468_v48 = vpop.f32.mrb[23].mxu0  ;;  %v1836_v25 = vsub.f32 %v3488_v52, %v1822_v59  ;;  %v2487_v32 = vmul.f32 2.0, %v4147_v46  ;;  %4161 = vmatpush3.bf16.msra.mxu0 %v4406_v31  ;;  %v5192_v46 = vld [vmem:[%s5970_s2 + $0xc0] sm:$0xff]   ;;  %v4419_v31 = vld [vmem:[%s5970_s2 + $0xb0] sm:$0xff]  }
 0x2e3   : > { %2520 = vmin.index.xlane.f32.xlu1 %v5144_v58  ;;  %v2485_v16 = vmul.f32 2.0, %v2468_v48  ;;  %4067 = vmatpush3.bf16.msra.mxu1 %v4405_v35  ;;  %v2498_v15 = vsub.f32 %v5130_v47, %v2484_v44  ;;  %v2500_v35 = vsub.f32 %v5130_v47, %v2486_v56 }
 0x2e4   : > { %4076 = vmatprep.subr.bf16.mxu1 %v5180_v26  ;;  %v2501_v52 = vsub.f32 %v5130_v47, %v2487_v32  ;;  %4162 = vmatprep.subr.bf16.mxu0 %v4408_v62 }
 0x2e5   : > { %2522 = vmin.index.xlane.f32.xlu0 %v5148_v20  ;;  %v2499_v48 = vsub.f32 %v5130_v47, %v2485_v16  ;;  %v4413_v47 = vld [vmem:[%s5970_s2 + $0x98] sm:$0xff]  }
 0x2e6   : > { %4163 = vmatpush3.bf16.msra.mxu0 %v4408_v62 }
 0x2e7   : > { %2524 = vmin.index.xlane.f32.xlu1 %v5155_v18  ;;  %4172 = vmatprep.subr.bf16.mxu0 %v5192_v46 }
 0x2e9   : > { %1867 = vmin.index.xlane.f32.xlu0 %v5157_v24 }
 0x2eb   : > { %1869 = vmin.index.xlane.f32.xlu1 %v5163_v0 }
 0x2ed   : > { %1863 = vmin.index.xlane.f32.xlu0 %v1835_v27 }
 0x2ef   : > { %1865 = vmin.index.xlane.f32.xlu1 %v1836_v25 }
 0x2f1   : > { %2526 = vmin.index.xlane.f32.xlu0 %v2498_v15 }
 0x2f3   : > { %2528 = vmin.index.xlane.f32.xlu1 %v2499_v48 }
 0x2f5   : > { %2530 = vmin.index.xlane.f32.xlu0 %v2500_v35 }
 0x2f7   : > { %2532 = vmin.index.xlane.f32.xlu1 %v2501_v52 }
 0x2f9   : > { %527 = vmin.xlane.f32.xlu0 %v4665_v54  ;;  %v5987_v54 = vmov 0.0  }
 0x2fb   : > { %529 = vmin.xlane.f32.xlu1 %v4679_v5 }
 0x2fd   : > { %1176 = vmin.xlane.f32.xlu0 %v4670_v55 }
 0x2ff   : > { %1178 = vmin.xlane.f32.xlu1 %v4677_v1 }
 0x301   : > { %531 = vmin.xlane.f32.xlu0 %v4658_v51  ;;  %v6028_v51 = vlaneseq }
 0x303   : > { %1180 = vmin.xlane.f32.xlu1 %v4687_v10  ;;  %vm360_vm4 = vcmp.lt.s32.totalorder %v6028_v51, 512 }
 0x304   : > { %362 = vst.msk [vmem:[%s5229_s22] sm:$0xf] %vm360_vm4, %v5987_v54 }
 0x305   : > { %1839 = vmin.xlane.f32.xlu0 %v5133_v23 }
 0x307   : > { %1841 = vmin.xlane.f32.xlu1 %v5136_v22  ;;  %v4414_v22 = vld [vmem:[%s5970_s2 + $0xd0] sm:$0xff]  }
 0x309   : > { %533 = vmin.xlane.f32.xlu0 %v4672_v57 }
 0x30b   : > { %1182 = vmin.xlane.f32.xlu1 %v4684_v9 }
 0x30d   : > { %1843 = vmin.xlane.f32.xlu0 %v5122_v2 }
 0x30f   : > { %2502 = vmin.xlane.f32.xlu1 %v5139_v53 }
 0x311   : > { %2504 = vmin.xlane.f32.xlu0 %v5144_v58  ;;  %v4415_v58 = vld [vmem:[%s5970_s2 + $0xa0] sm:$0xff]  }
 0x313   : > { %535 = vmin.xlane.f32.xlu1 %v4705_v21 }
 0x315   : > { %1184 = vmin.xlane.f32.xlu0 %v4719_v30 }
 0x317   : > { %1845 = vmin.xlane.f32.xlu1 %v5125_v38  ;;  %v4412_v38 = vld [vmem:[%s5970_s2 + $0xc8] sm:$0xff]  }
 0x319   : > { %2506 = vmin.xlane.f32.xlu0 %v5148_v20 }
 0x31b   : > { %537 = vmin.xlane.f32.xlu1 %v4702_v19  ;;  %v6033_v19 = vmov 1.0|1.0  }
 0x31d   : > { %1186 = vmin.xlane.f32.xlu0 %v4715_v28 }
 0x31f   : > { %1847 = vmin.xlane.f32.xlu1 %v1835_v27  ;;  %v4418_v27 = vld [vmem:[%s5970_s2 + $0xe0] sm:$0xff]  }
 0x321   : > { %2508 = vmin.xlane.f32.xlu0 %v5155_v18 }
 0x323   : > { %539 = vmin.xlane.f32.xlu1 %v4693_v14 }
 0x325   : > { %1188 = vmin.xlane.f32.xlu0 %v4733_v34 }
 0x327   : > { %541 = vmin.xlane.f32.xlu1 %v4690_v12  ;;  %v4409_v12 = vld [vmem:[%s5970_s2 + $0x88] sm:$0xff]  }
 0x329   : > { %2510 = vmin.xlane.f32.xlu0 %v2498_v15  ;;  %v4420_v15 = vld [vmem:[%s5970_s2 + $0xe8] sm:$0xff]  }
 0x32b   : > { %1851 = vmin.xlane.f32.xlu1 %v5157_v24 }
 0x32d   : > { %1190 = vmin.xlane.f32.xlu0 %v4729_v33  ;;  %v4411_v33 = vld [vmem:[%s5970_s2 + $0x90] sm:$0xff]  }
 0x32f   : > { %1849 = vmin.xlane.f32.xlu1 %v1836_v25 }
 0x331   : > { %2512 = vmin.xlane.f32.xlu0 %v2499_v48 }
 0x333   : > { %1853 = vmin.xlane.f32.xlu1 %v5163_v0  ;;  %v4416_v0 = vld [vmem:[%s5970_s2 + $0xd8] sm:$0xff]  }
 0x335   : > { %2514 = vmin.xlane.f32.xlu0 %v2500_v35  ;;  %v4421_v35 = vld [vmem:[%s5970_s2 + $0xb8] sm:$0xff]  }
 0x337   : > { %2516 = vmin.xlane.f32.xlu1 %v2501_v52 }
 0x366   : > { %v5234_v55 = vpop.xlane.xlu0 %1859 }
 0x367   : > { %vm1873_vm12 = vcmp.eq.s32.totalorder %v5234_v55, %v4749_v41 }
 0x368   : > { %v5236_v57 = vpop.xlane.xlu1 %1861 }
 0x369   : > { %vm1874_vm7 = vcmp.eq.s32.totalorder %v5236_v57, %v4749_v41 }
 0x36a   : > { %v5238_v1 = vpop.xlane.xlu0 %1855  ;;  %vm5259_vm14 = vmpackc.low %vm1874_vm7, %vm1873_vm12 }
 0x36b   : > { %vm1871_vm8 = vcmp.eq.s32.totalorder %v5238_v1, %v4749_v41 }
 0x36c   : > { %v5242_v5 = vpop.xlane.xlu1 %1857 }
 0x36d   : > { %vm1872_vm11 = vcmp.eq.s32.totalorder %v5242_v5, %v4749_v41 }
 0x36e   : > { %vm5250_vm13 = vmpackc.low %vm1872_vm11, %vm1871_vm8  ;;  %v5254_v10 = vpop.xlane.xlu0 %2518 }
 0x36f   : > { %4068 = vmatprep.mubr.msk.bf16.mxu1 %vm5250_vm13, %v6033_v19  ;;  %vm2534_vm15 = vcmp.eq.s32.totalorder %v5254_v10, %v4749_v41 }
 0x370   : > { %4069 = vmatmul.mubr.msk.bf16.vlgmr.msra.gmra.mrb[24].mxu1 %vm5259_vm14, %v6033_v19  ;;  %v5269_v21 = vpop.xlane.xlu1 %2520 }
 0x371   : > { %4077 = vmatpush3.bf16.msra.mxu1 %v5180_v26  ;;  %vm2535_vm0 = vcmp.eq.s32.totalorder %v5269_v21, %v4749_v41 }
 0x372   : > { %vm5276_vm1 = vmpackc.low %vm2535_vm0, %vm2534_vm15  ;;  %v5280_v30 = vpop.xlane.xlu0 %2522  ;;  %4078 = vmatprep.subr.bf16.mxu1 %v4409_v12 }
 0x373   : > { %4164 = vmatprep.mubr.msk.bf16.mxu0 %vm5276_vm1, %v6033_v19  ;;  %vm2536_vm2 = vcmp.eq.s32.totalorder %v5280_v30, %v4749_v41 }
 0x374   : > { %v5288_v34 = vpop.xlane.xlu1 %2524 }
 0x375   : > { %4079 = vmatpush3.bf16.msra.mxu1 %v4409_v12  ;;  %vm2537_vm3 = vcmp.eq.s32.totalorder %v5288_v34, %v4749_v41 }
 0x376   : > { %vm5297_vm5 = vmpackc.low %vm2537_vm3, %vm2536_vm2  ;;  %v5301_v2 = vpop.xlane.xlu0 %1867  ;;  %4080 = vmatprep.subr.bf16.mxu1 %v4411_v33 }
 0x377   : > { %4165 = vmatmul.mubr.msk.bf16.vlgmr.msra.gmra.mrb[24].mxu0 %vm5297_vm5, %v6033_v19  ;;  %vm1877_vm6 = vcmp.eq.s32.totalorder %v5301_v2, %v4749_v41  ;;  %v2332_v16 = vadd.s32 256, %v5301_v2 }
 0x378   : > { %4173 = vmatpush3.bf16.msra.mxu0 %v5192_v46  ;;  %v5310_v23 = vpop.xlane.xlu1 %1869  ;;  %v4422_v46 = vld [vmem:[%s5970_s2 + $0xf0] sm:$0xff]  }
 0x379   : > { %4081 = vmatpush3.bf16.msra.mxu1 %v4411_v33  ;;  %4174 = vmatprep.subr.bf16.mxu0 %v4412_v38  ;;  %vm1878_vm9 = vcmp.eq.s32.totalorder %v5310_v23, %v4749_v41 }
 0x37a   : > { %v5319_v53 = vpop.xlane.xlu0 %1863  ;;  %4082 = vmatprep.subr.bf16.mxu1 %v4413_v47  ;;  %vm5328_vm4 = vmpackc.low %vm1878_vm9, %vm1877_vm6 }
 0x37b   : > { %vm1875_vm10 = vcmp.eq.s32.totalorder %v5319_v53, %v4749_v41 }
 0x37c   : > { %4175 = vmatpush3.bf16.msra.mxu0 %v4412_v38  ;;  %v5326_v20 = vpop.xlane.xlu1 %1865 }
 0x37d   : > { %4083 = vmatpush3.bf16.msra.mxu1 %v4413_v47  ;;  %vm1876_vm7 = vcmp.eq.s32.totalorder %v5326_v20, %v4749_v41  ;;  %4176 = vmatprep.subr.bf16.mxu0 %v4414_v22 }
 0x37e   : > { %vm5334_vm8 = vmpackc.low %vm1876_vm7, %vm1875_vm10  ;;  %v5338_v59 = vpop.xlane.xlu0 %2526  ;;  %4084 = vmatprep.subr.bf16.mxu1 %v4415_v58 }
 0x37f   : > { %vm2538_vm11 = vcmp.eq.s32.totalorder %v5338_v59, %v4749_v41  ;;  %4072 = vmatprep.mubr.msk.bf16.mxu1 %vm5334_vm8, %v6033_v19 }
 0x380   : > { %4177 = vmatpush3.bf16.msra.mxu0 %v4414_v22  ;;  %4073 = vmatmul.mubr.msk.bf16.gmra.mrb[28].mxu1 %vm5328_vm4, %v6033_v19  ;;  %v5354_v44 = vpop.xlane.xlu1 %2528 }
 0x381   : > { %4085 = vmatpush3.bf16.msra.mxu1 %v4415_v58  ;;  %vm2539_vm12 = vcmp.eq.s32.totalorder %v5354_v44, %v4749_v41  ;;  %4092 = vmatprep.mubr.msk.bf16.mxu1 %vm5250_vm13, %v6033_v19  ;;  %v4425_v58 = vld [vmem:[%s5972_s4 + $0x88] sm:$0xff]  }
 0x382   : > { %vm5364_vm15 = vmpackc.low %vm2539_vm12, %vm2538_vm11  ;;  %v5368_v25 = vpop.xlane.xlu0 %2530  ;;  %4178 = vmatprep.subr.bf16.mxu0 %v4416_v0  ;;  %4086 = vmatprep.subr.bf16.mxu1 %v4417_v6 }
 0x383   : > { %vm2540_vm0 = vcmp.eq.s32.totalorder %v5368_v25, %v4749_v41  ;;  %4168 = vmatprep.mubr.msk.bf16.mxu0 %vm5364_vm15, %v6033_v19 }
 0x384   : > { %4179 = vmatpush3.bf16.msra.mxu0 %v4416_v0  ;;  %v5378_v56 = vpop.xlane.xlu1 %2532 }
 0x385   : > { %4087 = vmatpush3.bf16.msra.mxu1 %v4417_v6  ;;  %vm2541_vm2 = vcmp.eq.s32.totalorder %v5378_v56, %v4749_v41  ;;  %4180 = vmatprep.subr.bf16.mxu0 %v4418_v27 }
 0x386   : > { %vm5385_vm3 = vmpackc.low %vm2541_vm2, %vm2540_vm0  ;;  %v528_v48 = vpop.xlane.xlu0 %527  ;;  %4088 = vmatprep.subr.bf16.mxu1 %v4419_v31 }
 0x387   : > { %vm984_vm6 = vcmp.lt.f32.partialorder %v528_v48, inf  ;;  %4169 = vmatmul.mubr.msk.bf16.gmra.mrb[28].mxu0 %vm5385_vm3, %v6033_v19 }
 0x388   : > { %v1008_v62 = vsel %vm984_vm6, %v5059_v61, 0.0  ;;  %4181 = vmatpush3.bf16.msra.mxu0 %v4418_v27  ;;  %4188 = vmatprep.mubr.msk.bf16.mxu0 %vm5276_vm1, %v6033_v19  ;;  %v530_v52 = vpop.xlane.xlu1 %529  ;;  %v4423_v61 = vld [vmem:[%s5972_s4 + $0x80] sm:$0xff]   ;;  %v1663_v27 = vadd.s32 128, %v4746_v40  ;;  %v4427_v40 = vld [vmem:[%s5972_s4 + $0x90] sm:$0xff]  }
 0x389   : > { %4089 = vmatpush3.bf16.msra.mxu1 %v4419_v31  ;;  %vm985_vm9 = vcmp.lt.f32.partialorder %v530_v52, inf  ;;  %4182 = vmatprep.subr.bf16.mxu0 %v4420_v15 }
 0x38a   : > { %v1009_v12 = vsel %vm985_vm9, %v5063_v45, 0.0  ;;  %v1177_v33 = vpop.xlane.xlu0 %1176  ;;  %4090 = vmatprep.subr.bf16.mxu1 %v4421_v35  ;;  %v4424_v45 = vld [vmem:[%s5970_s2 + $0xf8] sm:$0xff]  }
 0x38b   : > { %vm1631_vm10 = vcmp.lt.f32.partialorder %v1177_v33, %v528_v48  ;;  %v5432_v31 = vmin.f32 %v528_v48, %v1177_v33  ;;  %v4428_v48 = vld [vmem:[%s5972_s4 + $0xc8] sm:$0xff]  }
 0x38c   : > { %4183 = vmatpush3.bf16.msra.mxu0 %v4420_v15  ;;  %v1179_v38 = vpop.xlane.xlu1 %1178  ;;  %v5410_v47 = vsel %vm1631_vm10, %v5076_v8, %v1008_v62  ;;  %v1016_v15 = vsel %vm984_vm6, %v4742_v37, 0  ;;  %v2327_v37 = vadd.s32 256, %v5242_v5 }
 0x38d   : > { %4091 = vmatpush3.bf16.msra.mxu1 %v4421_v35  ;;  %vm1632_vm7 = vcmp.lt.f32.partialorder %v1179_v38, %v530_v52  ;;  %4184 = vmatprep.subr.bf16.mxu0 %v4422_v46 }
 0x38e   : > { %v5412_v22 = vpop.xlane.xlu0 %531  ;;  %4100 = vmatprep.subr.bf16.mxu1 %v4423_v61  ;;  %v5422_v0 = vsel %vm1632_vm7, %v5083_v17, %v1009_v12  ;;  %v2326_v17 = vadd.s32 256, %v5238_v1  ;;  %v1671_v1 = vsel %vm1631_vm10, %v1663_v27, %v1016_v15  ;;  %v5456_v12 = vmin.f32 %v530_v52, %v1179_v38  ;;  %v4429_v52 = vld [vmem:[%s5972_s4 + $0x98] sm:$0xff]  }
 0x38f   : > { %6046 = vst [vmem:[#allocation14_spill] sm:$0xff] %v5422_v0  ;;  %vm986_vm11 = vcmp.lt.f32.partialorder %v5412_v22, inf  ;;  %v5515_v27 = vadd.s32 128, %v4749_v41 }
 0x390   : > { %v1010_v8 = vsel %vm986_vm11, %v5057_v60, 0.0  ;;  %4093 = vmatmul.mubr.msk.bf16.vlgmr.msra.gmra.mrb[24].mxu1 %vm5259_vm14, %v6033_v19  ;;  %4185 = vmatpush3.bf16.msra.mxu0 %v4422_v46  ;;  %v1181_v6 = vpop.xlane.xlu1 %1180  ;;  %v4426_v60 = vld [vmem:[%s5972_s4 + $0xc0] sm:$0xff]   ;;  %v1664_v46 = vadd.s32 128, %v4751_v42  ;;  %6047 = vst [vmem:[#allocation15_spill] sm:$0xff] %v5456_v12  ;;  %v1018_v33 = vsel %vm986_vm11, %v4740_v36, 0  ;;  %v2328_v36 = vadd.s32 256, %v5234_v55 }
 0x391   : > { %4096 = vmatprep.mubr.msk.bf16.mxu1 %vm5334_vm8, %v6033_v19  ;;  %4101 = vmatpush3.bf16.msra.mxu1 %v4423_v61  ;;  %vm1633_vm12 = vcmp.lt.f32.partialorder %v1181_v6, %v5412_v22  ;;  %v1017_v61 = vsel %vm985_vm9, %v4759_v43, 0  ;;  %v4431_v55 = vld [vmem:[%s5972_s4 + $0xa0] sm:$0xff]  }
 0x392   : > { %v5444_v35 = vpop.xlane.xlu0 %1839  ;;  %4186 = vmatprep.subr.bf16.mxu0 %v4424_v45  ;;  %4102 = vmatprep.subr.bf16.mxu1 %v4425_v58  ;;  %v5452_v62 = vsel %vm1633_vm12, %v5065_v4, %v1010_v8  ;;  %v1672_v42 = vsel %vm1632_vm7, %v1664_v46, %v1017_v61  ;;  %v5504_v8 = vmin.f32 %v5412_v22, %v1181_v6  ;;  %v2989_v46 = vadd.s32 384, %v5254_v10 }
 0x393   : > { %vm5990_vm0 = vcmp.lt.f32.partialorder %v5444_v35, %v5432_v31  ;;  %v2342_v15 = vmin.f32 %v5432_v31, %v5444_v35  ;;  %v6049_v22 = vmov 0  ;;  %v1666_v6 = vadd.s32 128, %v4785_v49 }
 0x394   : > { %v2334_v54 = vsel %vm5990_vm0, %v2326_v17, %v1671_v1  ;;  %4187 = vmatpush3.bf16.msra.mxu0 %v4424_v45  ;;  %v5466_v4 = vpop.xlane.xlu1 %1841  ;;  %v2990_v49 = vadd.s32 384, %v5269_v21 }
 0x395   : > { %6048 = vst [vmem:[#allocation16_spill] sm:$0xff] %v5466_v4  ;;  %4103 = vmatpush3.bf16.msra.mxu1 %v4425_v58  ;;  %vm5989_vm2 = vcmp.lt.f32.partialorder %v5466_v4, %v5456_v12  ;;  %4196 = vmatprep.subr.bf16.mxu0 %v4426_v60  ;;  %v1665_v58 = vadd.s32 128, %v4795_v50  ;;  %v5518_v50 = vadd.s32 256, %v4749_v41  ;;  %v2343_v61 = vmin.f32 %v5456_v12, %v5466_v4 }
 0x396   : > { %v5474_v5 = vsel %vm5989_vm2, %v2327_v37, %v1672_v42  ;;  %v5476_v43 = vpop.xlane.xlu0 %533  ;;  %4104 = vmatprep.subr.bf16.mxu1 %v4427_v40  ;;  %v2329_v37 = vadd.s32 256, %v5236_v57  ;;  %v2991_v12 = vadd.s32 384, %v5280_v30 }
 0x397   : > { %vm987_vm6 = vcmp.lt.f32.partialorder %v5476_v43, inf  ;;  %4189 = vmatmul.mubr.msk.bf16.vlgmr.msra.gmra.mrb[24].mxu0 %vm5297_vm5, %v6033_v19  ;;  %v1673_v17 = vsel %vm1633_vm12, %v1665_v58, %v1018_v33  ;;  %v6052_v58 = vmov 0.0  }
 0x398   : > { %v1011_v38 = vsel %vm987_vm6, %v5061_v3, 0.0  ;;  %4097 = vmatmul.mubr.msk.bf16.gmra.mrb[28].mxu1 %vm5328_vm4, %v6033_v19  ;;  %4192 = vmatprep.mubr.msk.bf16.mxu0 %vm5364_vm15, %v6033_v19  ;;  %v5500_v45 = vpop.xlane.xlu1 %1182  ;;  %357 = vst [vmem:[%s347_s12] sm:$0x1] %v6052_v58 }
 0x399   : > { %4197 = vmatpush3.bf16.msra.mxu0 %v4426_v60  ;;  %4105 = vmatpush3.bf16.msra.mxu1 %v4427_v40  ;;  %vm1634_vm9 = vcmp.lt.f32.partialorder %v5500_v45, %v5476_v43  ;;  %v4430_v60 = vld [vmem:[%s5972_s4 + $0xd0] sm:$0xff]   ;;  %v5539_v40 = vadd.s32 384, %v4749_v41  ;;  %v5576_v57 = vmin.f32 %v5476_v43, %v5500_v45  ;;  %v4437_v45 = vld [vmem:[%s5972_s4 + $0xb8] sm:$0xff]   ;;  %v4440_v43 = vld [vmem:[%s4590_s23] sm:$0xff] }
 0x39a   : > { %4116 = vmatprep.mubr.msk.bf16.mxu1 %vm5250_vm13, %v6033_v19  ;;  %v5512_v3 = vpop.xlane.xlu0 %1843  ;;  %4198 = vmatprep.subr.bf16.mxu0 %v4428_v48  ;;  %v5530_v9 = vsel %vm1634_vm9, %v5081_v13, %v1011_v38 }
 0x39b   : > { %vm5997_vm13 = vcmp.lt.f32.partialorder %v5512_v3, %v5504_v8  ;;  %4106 = vmatprep.subr.bf16.mxu1 %v4429_v52  ;;  %v2344_v33 = vmin.f32 %v5504_v8, %v5512_v3 }
 0x39c   : > { %v5545_v13 = vsel %vm5997_vm13, %v2328_v36, %v1673_v17  ;;  %v2503_v1 = vpop.xlane.xlu1 %2502  ;;  %v6053_v17 = vmov 0 }
 0x39d   : > { %4199 = vmatpush3.bf16.msra.mxu0 %v4428_v48  ;;  %4107 = vmatpush3.bf16.msra.mxu1 %v4429_v52  ;;  %vm5547_vm10 = vcmp.lt.f32.partialorder %v2503_v1, %v2342_v15  ;;  %v4432_v48 = vld [vmem:[%s5972_s4 + $0xd8] sm:$0xff]   ;;  %v4433_v52 = vld [vmem:[%s5972_s4 + $0xa8] sm:$0xff]  }
 0x39e   : > { %v6050_v22 = vsel %vm5547_vm10, 4294967295, %v6049_v22  ;;  %v2997_v10 = vsel %vm5547_vm10, %v2989_v46, %v2334_v54  ;;  %v2505_v42 = vpop.xlane.xlu0 %2504  ;;  %4200 = vmatprep.subr.bf16.mxu0 %v4430_v60  ;;  %4108 = vmatprep.subr.bf16.mxu1 %v4431_v55  ;;  %v1019_v54 = vsel %vm987_vm6, %v4744_v39, 0 }
 0x39f   : > { %6051 = vst [vmem:[#allocation17_spill] sm:$0xff] %v6050_v22  ;;  %vm3049_vm7 = vcmp.eq.s32.totalorder %v2997_v10, %v4749_v41  ;;  %vm3094_vm11 = vcmp.eq.s32.totalorder %v2997_v10, %v5515_v27  ;;  %vm3135_vm12 = vcmp.eq.s32.totalorder %v2997_v10, %v5518_v50  ;;  %vm3176_vm2 = vcmp.eq.s32.totalorder %v2997_v10, %v5539_v40 }
 0x3a0   : > { %4193 = vmatmul.mubr.msk.bf16.gmra.mrb[28].mxu0 %vm5385_vm3, %v6033_v19  ;;  %v5583_v38 = vpop.xlane.xlu1 %535  ;;  %v3610_v36 = vsel %vm3049_vm7, 1.0, %v6052_v58  ;;  %v3618_v21 = vsel %vm3094_vm11, 1.0, %v6052_v58  ;;  %vm5587_vm0 = vcmp.lt.f32.partialorder %v2505_v42, %v2343_v61  ;;  %v3626_v39 = vsel %vm3135_vm12, 1.0, %v6052_v58 }
 0x3a1   : > { %4212 = vmatprep.mubr.msk.bf16.mxu0 %vm5276_vm1, %v6033_v19  ;;  %v6054_v17 = vsel %vm5587_vm0, 4294967295, %v6053_v17  ;;  %4201 = vmatpush3.bf16.msra.mxu0 %v4430_v60  ;;  %vm988_vm6 = vcmp.lt.f32.partialorder %v5583_v38, inf  ;;  %v3634_v15 = vsel %vm3176_vm2, 1.0, %v6052_v58  ;;  %v2998_v28 = vsel %vm5587_vm0, %v2990_v49, %v5474_v5  ;;  %v4434_v60 = vld [vmem:[%s5972_s4 + $0xe0] sm:$0xff]   ;;  %v4435_v5 = vld [vmem:[%s5972_s4 + $0xb0] sm:$0xff]  }
 0x3a2   : > { %6055 = vst [vmem:[#allocation18_spill] sm:$0xff] %v6054_v17  ;;  %4109 = vmatpush3.bf16.msra.mxu1 %v4431_v55  ;;  %v1012_v46 = vsel %vm988_vm6, %v5093_v29, 0.0  ;;  %v1185_v1 = vpop.xlane.xlu0 %1184  ;;  %4202 = vmatprep.subr.bf16.mxu0 %v4432_v48  ;;  %vm3050_vm1 = vcmp.eq.s32.totalorder %v2998_v28, %v4749_v41  ;;  %vm3095_vm7 = vcmp.eq.s32.totalorder %v2998_v28, %v5515_v27 }
 0x3a3   : > { %4110 = vmatprep.subr.bf16.mxu1 %v4433_v52  ;;  %vm3136_vm11 = vcmp.eq.s32.totalorder %v2998_v28, %v5518_v50  ;;  %vm3177_vm12 = vcmp.eq.s32.totalorder %v2998_v28, %v5539_v40  ;;  %v3611_v29 = vsel %vm3050_vm1, 1.0, %v6052_v58  ;;  %v3619_v55 = vsel %vm3095_vm7, 1.0, %v6052_v58 }
 0x3a4   : > { %v3627_v61 = vsel %vm3136_vm11, 1.0, %v6052_v58  ;;  %v3635_v10 = vsel %vm3177_vm12, 1.0, %v6052_v58  ;;  %v5614_v42 = vpop.xlane.xlu1 %1845  ;;  %v3073_v49 = vadd.f32 %v3611_v29, %v3610_v36  ;;  %v3118_v28 = vadd.f32 %v3619_v55, %v3618_v21  ;;  %v4436_v36 = vld [vmem:[%s5972_s4 + $0xe8] sm:$0xff]   ;;  %v6058_v55 = vld [vmem:[#allocation10_spill] sm:$0xff] }
 0x3a5   : > { %v3159_v17 = vadd.f32 %v3627_v61, %v3626_v39  ;;  %v3200_v22 = vadd.f32 %v3635_v10, %v3634_v15  ;;  %4203 = vmatpush3.bf16.msra.mxu0 %v4432_v48  ;;  %v1674_v4 = vsel %vm1634_vm9, %v1666_v6, %v1019_v54  ;;  %vm1635_vm2 = vcmp.lt.f32.partialorder %v1185_v1, %v5583_v38 }
 0x3a6   : > { %4111 = vmatpush3.bf16.msra.mxu1 %v4433_v52  ;;  %vm5996_vm1 = vcmp.lt.f32.partialorder %v5614_v42, %v5576_v57  ;;  %v2507_v0 = vpop.xlane.xlu0 %2506  ;;  %v1667_v21 = vadd.s32 128, %v4853_v7  ;;  %4204 = vmatprep.subr.bf16.mxu0 %v4434_v60  ;;  %v1020_v6 = vsel %vm988_vm6, %v4828_v63, 0  ;;  %v5641_v7 = vmin.f32 %v5583_v38, %v1185_v1  ;;  %v4438_v52 = vld [vmem:[%s5972_s4 + $0xf0] sm:$0xff]   ;;  %v6059_v1 = vld [vmem:[#allocation13_spill] sm:$0xff] }
 0x3a7   : > { %v2337_v30 = vsel %vm5996_vm1, %v2329_v37, %v1674_v4  ;;  %vm5630_vm7 = vcmp.lt.f32.partialorder %v2507_v0, %v2344_v33  ;;  %4112 = vmatprep.subr.bf16.mxu1 %v4435_v5  ;;  %v5651_v37 = vsel %vm1635_vm2, %v5107_v11, %v1012_v46  ;;  %v2330_v46 = vadd.s32 256, %v5319_v53 }
 0x3a8   : > { %v2999_v0 = vsel %vm5630_vm7, %v2991_v12, %v5545_v13  ;;  %v5646_v4 = vpop.xlane.xlu1 %537  ;;  %v2345_v29 = vmin.f32 %v5576_v57, %v5614_v42  ;;  %v2992_v53 = vadd.s32 384, %v5288_v34  ;;  %v4439_v34 = vld [vmem:[%s5972_s4 + $0xf8] sm:$0xff]  }
 0x3a9   : > { %vm3051_vm9 = vcmp.eq.s32.totalorder %v2999_v0, %v4749_v41  ;;  %vm3096_vm11 = vcmp.eq.s32.totalorder %v2999_v0, %v5515_v27  ;;  %vm3137_vm6 = vcmp.eq.s32.totalorder %v2999_v0, %v5518_v50  ;;  %vm3178_vm12 = vcmp.eq.s32.totalorder %v2999_v0, %v5539_v40  ;;  %4205 = vmatpush3.bf16.msra.mxu0 %v4434_v60 }
 0x3aa   : > { %v3612_v63 = vsel %vm3051_vm9, 1.0, %v6052_v58  ;;  %v3620_v12 = vsel %vm3096_vm11, 1.0, %v6052_v58  ;;  %v3628_v13 = vsel %vm3137_vm6, 1.0, %v6052_v58  ;;  %v3636_v48 = vsel %vm3178_vm12, 1.0, %v6052_v58  ;;  %4113 = vmatpush3.bf16.msra.mxu1 %v4435_v5  ;;  %v5661_v11 = vpop.xlane.xlu0 %1186  ;;  %4206 = vmatprep.subr.bf16.mxu0 %v4436_v36 }
 0x3ab   : > { %v3074_v54 = vadd.f32 %v3612_v63, %v3073_v49  ;;  %v3119_v33 = vadd.f32 %v3620_v12, %v3118_v28  ;;  %v3160_v39 = vadd.f32 %v3628_v13, %v3159_v17  ;;  %v3201_v15 = vadd.f32 %v3636_v48, %v3200_v22  ;;  %4114 = vmatprep.subr.bf16.mxu1 %v4437_v45 }
 0x3ac   : > { %vm989_vm9 = vcmp.lt.f32.partialorder %v5646_v4, inf  ;;  %vm1636_vm11 = vcmp.lt.f32.partialorder %v5661_v11, %v5646_v4  ;;  %v5670_v60 = vpop.xlane.xlu1 %1847  ;;  %v1675_v5 = vsel %vm1635_vm2, %v1667_v21, %v1020_v6 }
 0x3ad   : > { %v1013_v22 = vsel %vm989_vm9, %v6058_v55, 0.0  ;;  %4207 = vmatpush3.bf16.msra.mxu0 %v4436_v36  ;;  %vm5995_vm6 = vcmp.lt.f32.partialorder %v5670_v60, %v5641_v7  ;;  %v2346_v48 = vmin.f32 %v5641_v7, %v5670_v60 }
 0x3ae   : > { %4115 = vmatpush3.bf16.msra.mxu1 %v4437_v45  ;;  %v2338_v17 = vsel %vm5995_vm6, %v2330_v46, %v1675_v5  ;;  %v2509_v38 = vpop.xlane.xlu0 %2508  ;;  %4208 = vmatprep.subr.bf16.mxu0 %v4438_v52  ;;  %v5689_v61 = vsel %vm1636_vm11, %v6059_v1, %v1013_v22  ;;  %v6064_v46 = vld [vmem:[#allocation11_spill] sm:$0xff] }
 0x3af   : > { %vm5691_vm2 = vcmp.lt.f32.partialorder %v2509_v38, %v2345_v29  ;;  %v6065_v29 = vld [vmem:[#allocation5_spill] sm:$0xff] }
 0x3b0   : > { %v3000_v49 = vsel %vm5691_vm2, %v2992_v53, %v2337_v30  ;;  %v5700_v28 = vpop.xlane.xlu1 %539  ;;  %v1668_v55 = vadd.s32 128, %v6065_v29  ;;  %v6068_v53 = vld [vmem:[#allocation6_spill] sm:$0xff]  ;;  %v6071_v29 = vld [vmem:[#allocation3_spill] sm:$0xff] }
 0x3b1   : > { %vm3052_vm12 = vcmp.eq.s32.totalorder %v3000_v49, %v4749_v41  ;;  %vm3097_vm6 = vcmp.eq.s32.totalorder %v3000_v49, %v5515_v27  ;;  %vm3138_vm1 = vcmp.eq.s32.totalorder %v3000_v49, %v5518_v50  ;;  %vm3179_vm13 = vcmp.eq.s32.totalorder %v3000_v49, %v5539_v40  ;;  %4117 = vmatmul.mubr.msk.bf16.vlgmr.msra.gmra.mrb[24].mxu1 %vm5259_vm14, %v6033_v19 }
 0x3b2   : > { %v3613_v36 = vsel %vm3052_vm12, 1.0, %v6052_v58  ;;  %v3621_v21 = vsel %vm3097_vm6, 1.0, %v6052_v58  ;;  %v3629_v30 = vsel %vm3138_vm1, 1.0, %v6052_v58  ;;  %v3637_v45 = vsel %vm3179_vm13, 1.0, %v6052_v58  ;;  %4209 = vmatpush3.bf16.msra.mxu0 %v4438_v52  ;;  %4120 = vmatprep.mubr.msk.bf16.mxu1 %vm5334_vm8, %v6033_v19  ;;  %v1189_v6 = vpop.xlane.xlu0 %1188  ;;  %v6062_v52 = vld [vmem:[#allocation8_spill] sm:$0xff] }
 0x3b3   : > { %v3075_v0 = vadd.f32 %v3613_v36, %v3074_v54  ;;  %v3120_v63 = vadd.f32 %v3621_v21, %v3119_v33  ;;  %v3161_v12 = vadd.f32 %v3629_v30, %v3160_v39  ;;  %v3202_v13 = vadd.f32 %v3637_v45, %v3201_v15  ;;  %4210 = vmatprep.subr.bf16.mxu0 %v4439_v34  ;;  %v6063_v33 = vld [vmem:[#allocation9_spill] sm:$0xff] }
 0x3b4   : > { %vm990_vm14 = vcmp.lt.f32.partialorder %v5700_v28, inf  ;;  %vm5999_vm12 = vcmp.lt.f32.partialorder %v1189_v6, %v5700_v28  ;;  %v5718_v14 = vpop.xlane.xlu1 %541  ;;  %v2993_v54 = vadd.s32 384, %v5338_v59  ;;  %v5741_v38 = vadd.s32 128, %v6068_v53  ;;  %v6069_v59 = vld [vmem:[#allocation4_spill] sm:$0xff] }
 0x3b5   : > { %v1014_v24 = vsel %vm990_vm14, %v6062_v52, 0.0  ;;  %vm5998_vm8 = vcmp.lt.f32.partialorder %v5718_v14, inf  ;;  %v1021_v1 = vsel %vm989_vm9, %v6069_v59, 0  ;;  %v1022_v53 = vsel %vm990_vm14, %v6071_v29, 0  ;;  %v6072_v59 = vld [vmem:[#allocation12_spill] sm:$0xff] }
 0x3b6   : > { %4211 = vmatpush3.bf16.msra.mxu0 %v4439_v34  ;;  %v1015_v39 = vsel %vm5998_vm8, %v6063_v33, 0.0  ;;  %v2511_v15 = vpop.xlane.xlu0 %2510  ;;  %v5733_v5 = vsel %vm5999_vm12, %v6064_v46, %v1014_v24  ;;  %v5748_v34 = vmin.f32 %v5646_v4, %v5661_v11  ;;  %v6070_v33 = vld [vmem:[#allocation7_spill] sm:$0xff]  ;;  %v2331_v46 = vadd.s32 256, %v5326_v20 }
 0x3b7   : > { %vm5736_vm13 = vcmp.lt.f32.partialorder %v2511_v15, %v2346_v48  ;;  %v1669_v15 = vadd.s32 128, %v6070_v33  ;;  %v2333_v11 = vadd.s32 256, %v5310_v23  ;;  %v2996_v29 = vadd.s32 384, %v5378_v56 }
 0x3b8   : > { %v3001_v49 = vsel %vm5736_vm13, %v2993_v54, %v2338_v17  ;;  %v5752_v36 = vpop.xlane.xlu1 %1851 }
 0x3b9   : > { %vm3053_vm1 = vcmp.eq.s32.totalorder %v3001_v49, %v4749_v41  ;;  %vm3098_vm6 = vcmp.eq.s32.totalorder %v3001_v49, %v5515_v27  ;;  %vm3139_vm8 = vcmp.eq.s32.totalorder %v3001_v49, %v5518_v50  ;;  %vm3180_vm12 = vcmp.eq.s32.totalorder %v3001_v49, %v5539_v40  ;;  %4213 = vmatmul.mubr.msk.bf16.vlgmr.msra.gmra.mrb[24].mxu0 %vm5297_vm5, %v6033_v19 }
 0x3ba   : > { %v3614_v21 = vsel %vm3053_vm1, 1.0, %v6052_v58  ;;  %v3622_v30 = vsel %vm3098_vm6, 1.0, %v6052_v58  ;;  %v3630_v17 = vsel %vm3139_vm8, 1.0, %v6052_v58  ;;  %v3638_v45 = vsel %vm3180_vm12, 1.0, %v6052_v58  ;;  %4121 = vmatmul.mubr.msk.bf16.gmra.mrb[28].mxu1 %vm5328_vm4, %v6033_v19  ;;  %4216 = vmatprep.mubr.msk.bf16.mxu0 %vm5364_vm15, %v6033_v19  ;;  %v1191_v48 = vpop.xlane.xlu0 %1190 }
 0x3bb   : > { %v3076_v52 = vadd.f32 %v3614_v21, %v3075_v0  ;;  %v3121_v32 = vadd.f32 %v3622_v30, %v3120_v63  ;;  %v3162_v24 = vadd.f32 %v3630_v17, %v3161_v12  ;;  %v3203_v54 = vadd.f32 %v3638_v45, %v3202_v13 }
 0x3bc   : > { %vm1638_vm5 = vcmp.lt.f32.partialorder %v1191_v48, %v5718_v14  ;;  %v5777_v18 = vpop.xlane.xlu1 %1849  ;;  %v1676_v0 = vsel %vm1636_vm11, %v1668_v55, %v1021_v1  ;;  %v2994_v63 = vadd.s32 384, %v5354_v44  ;;  %v5789_v12 = vmin.f32 %v5700_v28, %v1189_v6 }
 0x3bd   : > { %vm2299_vm4 = vcmp.lt.f32.partialorder %v5777_v18, %v5748_v34  ;;  %v2347_v20 = vmin.f32 %v5748_v34, %v5777_v18  ;;  %v5797_v4 = vsel %vm1638_vm5, %v6072_v59, %v1015_v39  ;;  %v2995_v55 = vadd.s32 384, %v5368_v25 }
 0x3be   : > { %v2339_v13 = vsel %vm2299_vm4, %v2331_v46, %v1676_v0  ;;  %v2513_v2 = vpop.xlane.xlu0 %2512  ;;  %vm6073_vm15 = vcmp.lt.f32.partialorder %v1189_v6, %v5700_v28  ;;  %vm2300_vm11 = vcmp.lt.f32.partialorder %v5752_v36, %v5789_v12  ;;  %v2348_v49 = vmin.f32 %v5789_v12, %v5752_v36 }
 0x3bf   : > { %v1677_v44 = vsel %vm6073_vm15, %v1669_v15, %v1022_v53  ;;  %vm5803_vm9 = vcmp.lt.f32.partialorder %v2513_v2, %v2347_v20  ;;  %v5812_v39 = vmin.f32 %v5718_v14, %v1191_v48  ;;  %v6076_v53 = vld [vmem:[#allocation2_spill] sm:$0xff]  ;;  %vm6077_vm6 = vcmp.lt.f32.partialorder %v5718_v14, inf }
 0x3c0   : > { %v3002_v23 = vsel %vm5803_vm9, %v2994_v63, %v2339_v13  ;;  %v5816_v25 = vpop.xlane.xlu1 %1853  ;;  %v1023_v26 = vsel %vm6077_vm6, %v6076_v53, 0 }
 0x3c1   : > { %vm3054_vm14 = vcmp.eq.s32.totalorder %v3002_v23, %v4749_v41  ;;  %vm3099_vm12 = vcmp.eq.s32.totalorder %v3002_v23, %v5515_v27  ;;  %vm3140_vm8 = vcmp.eq.s32.totalorder %v3002_v23, %v5518_v50  ;;  %vm3181_vm1 = vcmp.eq.s32.totalorder %v3002_v23, %v5539_v40  ;;  %4217 = vmatmul.mubr.msk.bf16.gmra.mrb[28].mxu0 %vm5385_vm3, %v6033_v19 }
 0x3c2   : > { %v3615_v28 = vsel %vm3054_vm14, 1.0, %v6052_v58  ;;  %v3623_v6 = vsel %vm3099_vm12, 1.0, %v6052_v58  ;;  %v3631_v21 = vsel %vm3140_vm8, 1.0, %v6052_v58  ;;  %v3639_v30 = vsel %vm3181_vm1, 1.0, %v6052_v58  ;;  %v2515_v17 = vpop.xlane.xlu0 %2514 }
 0x3c3   : > { %v3077_v45 = vadd.f32 %v3615_v28, %v3076_v52  ;;  %v3122_v33 = vadd.f32 %v3623_v6, %v3121_v32  ;;  %v3163_v15 = vadd.f32 %v3631_v21, %v3162_v24  ;;  %v3204_v46 = vadd.f32 %v3639_v30, %v3203_v54 }
 0x3c4   : > { %v2340_v19 = vsel %vm2300_vm11, %v2332_v16, %v1677_v44  ;;  %vm5836_vm3 = vcmp.lt.f32.partialorder %v2515_v17, %v2348_v49  ;;  %v1678_v52 = vsel %vm1638_vm5, %v5741_v38, %v1023_v26  ;;  %vm2301_vm15 = vcmp.lt.f32.partialorder %v5816_v25, %v5812_v39  ;;  %v2517_v24 = vpop.xlane.xlu1 %2516 }
 0x3c5   : > { %v2349_v56 = vmin.f32 %v5812_v39, %v5816_v25  ;;  %v3003_v32 = vsel %vm5836_vm3, %v2995_v55, %v2340_v19  ;;  %v2341_v2 = vsel %vm2301_vm15, %v2333_v11, %v1678_v52  ;;  %v4443_v39 = vld [vmem:[%s4590_s23 + $0x18] sm:$0xff] }
 0x3c6   : > { %vm3055_vm14 = vcmp.eq.s32.totalorder %v3003_v32, %v4749_v41  ;;  %vm3100_vm12 = vcmp.eq.s32.totalorder %v3003_v32, %v5515_v27  ;;  %vm3141_vm8 = vcmp.eq.s32.totalorder %v3003_v32, %v5518_v50  ;;  %vm3182_vm1 = vcmp.eq.s32.totalorder %v3003_v32, %v5539_v40 }
 0x3c7   : > { %v3616_v14 = vsel %vm3055_vm14, 1.0, %v6052_v58  ;;  %v3624_v38 = vsel %vm3100_vm12, 1.0, %v6052_v58  ;;  %v3632_v48 = vsel %vm3141_vm8, 1.0, %v6052_v58  ;;  %v3640_v54 = vsel %vm3182_vm1, 1.0, %v6052_v58 }
 0x3c8   : > { %v3078_v16 = vadd.f32 %v3616_v14, %v3077_v45  ;;  %v3123_v20 = vadd.f32 %v3624_v38, %v3122_v33  ;;  %v3164_v63 = vadd.f32 %v3632_v48, %v3163_v15  ;;  %v3205_v13 = vadd.f32 %v3640_v54, %v3204_v46  ;;  %v3086_v54 = vld [vmem:[%s5229_s22] sm:$0x1] }
 0x3c9   : > { %vm5860_vm5 = vcmp.lt.f32.partialorder %v2517_v24, %v2349_v56  ;;  %vm3090_vm1 = vcmp.lt.s32.totalorder %v6028_v51, 128 }
 0x3ca   : > { %v3004_v55 = vsel %vm5860_vm5, %v2996_v29, %v2341_v2 }
 0x3cb   : > { %vm3056_vm6 = vcmp.eq.s32.totalorder %v3004_v55, %v4749_v41  ;;  %vm3101_vm14 = vcmp.eq.s32.totalorder %v3004_v55, %v5515_v27  ;;  %vm3142_vm12 = vcmp.eq.s32.totalorder %v3004_v55, %v5518_v50  ;;  %vm3183_vm8 = vcmp.eq.s32.totalorder %v3004_v55, %v5539_v40 }
 0x3cc   : > { %v3617_v44 = vsel %vm3056_vm6, 1.0, %v6052_v58  ;;  %v3625_v49 = vsel %vm3101_vm14, 1.0, %v6052_v58  ;;  %v3633_v11 = vsel %vm3142_vm12, 1.0, %v6052_v58  ;;  %v3641_v23 = vsel %vm3183_vm8, 1.0, %v6052_v58 }
 0x3cd   : > { %v3079_v28 = vadd.f32 %v3617_v44, %v3078_v16  ;;  %v3124_v6 = vadd.f32 %v3625_v49, %v3123_v20  ;;  %v3165_v21 = vadd.f32 %v3633_v11, %v3164_v63  ;;  %v3206_v30 = vadd.f32 %v3641_v23, %v3205_v13  ;;  %v3131_v16 = vld [vmem:[%s5229_s22 + $0x1] sm:$0x1]  ;;  %v3172_v20 = vld [vmem:[%s5229_s22 + $0x2] sm:$0x1]  ;;  %v3213_v63 = vld [vmem:[%s5229_s22 + $0x3] sm:$0x1] }
 0x3ce   : > { %vm6082_vm6 = vcmp.lt.f32.partialorder %v5512_v3, %v5504_v8  ;;  %vm6083_vm14 = vcmp.lt.f32.partialorder %v5444_v35, %v5432_v31  ;;  %vm6084_vm12 = vcmp.lt.f32.partialorder %v5614_v42, %v5576_v57 }
 0x3cf   : > { %v3080_v17 = vrot.slane %v3079_v28, 4  ;;  %v3125_v41 = vrot.slane %v3124_v6, 4  ;;  %v3166_v45 = vrot.slane %v3165_v21, 4  ;;  %v3207_v27 = vrot.slane %v3206_v30, 4 }
 0x3d1   : > { %v3081_v33 = vadd.f32 %v3080_v17, %v3079_v28  ;;  %v3126_v50 = vadd.f32 %v3125_v41, %v3124_v6  ;;  %v3167_v40 = vadd.f32 %v3166_v45, %v3165_v21  ;;  %v3208_v15 = vadd.f32 %v3207_v27, %v3206_v30  ;;  %v6085_v27 = vld [vmem:[#allocation14_spill] sm:$0xff] }
 0x3d3   : > { %v3082_v46 = vrot.slane %v3081_v33, 2  ;;  %v3127_v29 = vrot.slane %v3126_v50, 2  ;;  %v3168_v53 = vrot.slane %v3167_v40, 2  ;;  %v3209_v26 = vrot.slane %v3208_v15, 2 }
 0x3d5   : > { %v3083_v19 = vadd.f32 %v3082_v46, %v3081_v33  ;;  %v3128_v52 = vadd.f32 %v3127_v29, %v3126_v50  ;;  %v3169_v56 = vadd.f32 %v3168_v53, %v3167_v40  ;;  %v3210_v32 = vadd.f32 %v3209_v26, %v3208_v15  ;;  %v6086_v33 = vld [vmem:[#allocation16_spill] sm:$0xff]  ;;  %v6087_v50 = vld [vmem:[#allocation15_spill] sm:$0xff] }
 0x3d6   : > { %vm6088_vm8 = vcmp.lt.f32.partialorder %v6086_v33, %v6087_v50 }
 0x3d7   : > { %v3084_v24 = vrot.slane %v3083_v19, 1  ;;  %v3129_v14 = vrot.slane %v3128_v52, 1  ;;  %v3170_v38 = vrot.slane %v3169_v56, 1  ;;  %v3211_v48 = vrot.slane %v3210_v32, 1 }
 0x3d9   : > { %v3085_v13 = vadd.f32 %v3084_v24, %v3083_v19  ;;  %v3130_v2 = vadd.f32 %v3129_v14, %v3128_v52  ;;  %v3171_v55 = vadd.f32 %v3170_v38, %v3169_v56  ;;  %v3212_v44 = vadd.f32 %v3211_v48, %v3210_v32  ;;  %v4441_v52 = vld [vmem:[%s4590_s23 + $0x10] sm:$0xff] }
 0x3db   : > { %v3087_v49 = vadd.f32 %v3086_v54, %v3085_v13  ;;  %v3132_v11 = vadd.f32 %v3131_v16, %v3130_v2  ;;  %v3173_v23 = vadd.f32 %v3172_v20, %v3171_v55  ;;  %v3214_v28 = vadd.f32 %v3213_v63, %v3212_v44  ;;  %v4444_v16 = vld [vmem:[%s4590_s23 + $0x20] sm:$0xff]  ;;  %v4445_v2 = vld [vmem:[%s4590_s23 + $0x30] sm:$0xff] }
 0x3dd   : > { %3092 = vst.msk [vmem:[%s5229_s22] sm:$0x1] %vm3090_vm1, %v3087_v49  ;;  %3133 = vst.msk [vmem:[%s5229_s22 + $0x1] sm:$0x1] %vm3090_vm1, %v3132_v11  ;;  %v4446_v49 = vld [vmem:[%s4590_s23 + $0x28] sm:$0xff] }
 0x3de   : > { %3174 = vst.msk [vmem:[%s5229_s22 + $0x2] sm:$0x1] %vm3090_vm1, %v3173_v23  ;;  %3215 = vst.msk [vmem:[%s5229_s22 + $0x3] sm:$0x1] %vm3090_vm1, %v3214_v28  ;;  %v4447_v28 = vld [vmem:[%s4590_s23 + $0x38] sm:$0xff] }
 0x484   : > { %v4118_v6 = vpop.f32.mrb[24].mxu1 }
 0x485   : > { %v2320_v21 = vsel %vm6082_vm6, %v4118_v6, %v5452_v62  ;;  %v2255_v30 = vpop.f32.mrb[25].mxu1 }
 0x486   : > { %v2318_v51 = vsel %vm6083_vm14, %v2255_v30, %v5410_v47  ;;  %v4119_v17 = vpop.f32.mrb[26].mxu1 }
 0x487   : > { %v2321_v41 = vsel %vm6084_vm12, %v4119_v17, %v5530_v9  ;;  %v2258_v45 = vpop.f32.mrb[27].mxu1 }
 0x488   : > { %v2319_v8 = vsel %vm6088_vm8, %v2258_v45, %v6085_v27 }
 0x48c   : > { %v4214_v47 = vpop.f32.mrb[24].mxu0 }
 0x48d   : > { %v2983_v31 = vsel %vm5630_vm7, %v4214_v47, %v2320_v21  ;;  %v4122_v35 = vpop.f32.mrb[28].mxu1  ;;  %v2918_v62 = vpop.f32.mrb[25].mxu0  ;;  %vm6090_vm7 = vcmp.lt.f32.partialorder %v5670_v60, %v5641_v7 }
 0x48e   : > { %3007 = vst [vmem:[%s5904_s11 + $0x10] sm:$0xff] %v2983_v31  ;;  %v2324_v3 = vsel %vm2300_vm11, %v4122_v35, %v5733_v5  ;;  %v2981_v57 = vsel %vm5547_vm10, %v2918_v62, %v2318_v51  ;;  %v2271_v42 = vpop.f32.mrb[29].mxu1  ;;  %v4215_v40 = vpop.f32.mrb[26].mxu0  ;;  %v3015_v7 = vsub.f32 %v2983_v31, %v4441_v52  ;;  %v3021_v31 = vld [vmem:[%s347_s12] sm:$0x1] }
 0x48f   : > { %3005 = vst [vmem:[%s5904_s11] sm:$0xff] %v2981_v57  ;;  %v3013_v15 = vsub.f32 %v2981_v57, %v4440_v43  ;;  %v2322_v46 = vsel %vm6090_vm7, %v2271_v42, %v5651_v37  ;;  %v2984_v36 = vsel %vm5691_vm2, %v4215_v40, %v2321_v41  ;;  %v4123_v5 = vpop.f32.mrb[30].mxu1  ;;  %v2921_v12 = vpop.f32.mrb[27].mxu0  ;;  %v4442_v37 = vld [vmem:[%s4590_s23 + $0x8] sm:$0xff] }
 0x490   : > { %3008 = vst [vmem:[%s5904_s11 + $0x18] sm:$0xff] %v2984_v36  ;;  %v2325_v29 = vsel %vm2301_vm15, %v4123_v5, %v5797_v4  ;;  %v2982_v26 = vsel %vm5587_vm0, %v2921_v12, %v2319_v8  ;;  %v2274_v19 = vpop.f32.mrb[31].mxu1  ;;  %v3016_v4 = vsub.f32 %v2984_v36, %v4443_v39  ;;  %v3024_v24 = vmul.f32 %v3015_v7, %v3015_v7 }
 0x491   : > { %3006 = vst [vmem:[%s5904_s11 + $0x8] sm:$0xff] %v2982_v26  ;;  %v3014_v60 = vsub.f32 %v2982_v26, %v4442_v37  ;;  %v2323_v10 = vsel %vm2299_vm4, %v2274_v19, %v5689_v61  ;;  %v3022_v56 = vmul.f32 %v3013_v15, %v3013_v15 }
 0x492   : > { %v3025_v18 = vmul.f32 %v3016_v4, %v3016_v4 }
 0x493   : > { %v3023_v25 = vmul.f32 %v3014_v60, %v3014_v60 }
 0x494   : > { %v4218_v32 = vpop.f32.mrb[28].mxu0 }
 0x495   : > { %v3030_v14 = vadd.f32 %v3023_v25, %v3022_v56  ;;  %v2987_v38 = vsel %vm5836_vm3, %v4218_v32, %v2324_v3  ;;  %v2934_v48 = vpop.f32.mrb[29].mxu0 }
 0x496   : > { %3011 = vst [vmem:[%s5904_s11 + $0x30] sm:$0xff] %v2987_v38  ;;  %v2985_v34 = vsel %vm5736_vm13, %v2934_v48, %v2322_v46  ;;  %v4219_v61 = vpop.f32.mrb[30].mxu0  ;;  %v3019_v22 = vsub.f32 %v2987_v38, %v4445_v2 }
 0x497   : > { %v3031_v54 = vadd.f32 %v3030_v14, %v3024_v24  ;;  %3009 = vst [vmem:[%s5904_s11 + $0x20] sm:$0xff] %v2985_v34  ;;  %v3017_v20 = vsub.f32 %v2985_v34, %v4444_v16  ;;  %v2988_v63 = vsel %vm5860_vm5, %v4219_v61, %v2325_v29  ;;  %v2937_v13 = vpop.f32.mrb[31].mxu0 }
 0x498   : > { %3012 = vst [vmem:[%s5904_s11 + $0x38] sm:$0xff] %v2988_v63  ;;  %v2986_v0 = vsel %vm5803_vm9, %v2937_v13, %v2323_v10  ;;  %v3020_v6 = vsub.f32 %v2988_v63, %v4447_v28  ;;  %v3028_v30 = vmul.f32 %v3019_v22, %v3019_v22 }
 0x499   : > { %v3026_v55 = vmul.f32 %v3017_v20, %v3017_v20  ;;  %v3032_v44 = vadd.f32 %v3031_v54, %v3025_v18  ;;  %3010 = vst [vmem:[%s5904_s11 + $0x28] sm:$0xff] %v2986_v0  ;;  %v3018_v11 = vsub.f32 %v2986_v0, %v4446_v49 }
 0x49a   : > { %v3029_v51 = vmul.f32 %v3020_v6, %v3020_v6 }
 0x49b   : > { %v3033_v23 = vadd.f32 %v3032_v44, %v3026_v55  ;;  %v3027_v21 = vmul.f32 %v3018_v11, %v3018_v11 }
 0x49d   : > { %v3034_v59 = vadd.f32 %v3033_v23, %v3027_v21 }
 0x49f   : > { %v3035_v17 = vadd.f32 %v3034_v59, %v3028_v30 }
 0x4a1   : > { %v3036_v41 = vadd.f32 %v3035_v17, %v3029_v51 }
 0x4a3   : > { %3037 = vadd.xlane.f32.xlu0 %v3036_v41 }
 0x530   : > { %v3038_v1 = vpop.xlane.xlu0 %3037 }
 0x531   : > { %v3039_v45 = vrot.slane %v3038_v1, 4 }
 0x533   : > { %v3040_v27 = vadd.f32 %v3039_v45, %v3038_v1 }
 0x535   : > { %v3041_v33 = vrot.slane %v3040_v27, 2 }
 0x537   : > { %v3042_v50 = vadd.f32 %v3041_v33, %v3040_v27 }
 0x539   : > { %v3043_v8 = vrot.slane %v3042_v50, 1 }
 0x53b   : > { %v3044_v47 = vadd.f32 %v3043_v8, %v3042_v50 }
 0x53d   : > { %4284 = vpush %v3044_v47 }
 0x56e   : > { %s4285_s23 = spop %4284 }
 0x56f   : > { %v3046_v35 = vstv %s4285_s23 }
 0x570   : > { %v3047_v62 = vadd.f32 %v3046_v35, %v3021_v31 }
 0x572   : > { %3048 = vst [vmem:[%s347_s12] sm:$0x1] %v3047_v62 }
 0x573 PF: > { %s19_s29 = sadd.s32 1, %s4470_s29   ;;  %s6092_s27 = smov %s4466_s28 }
 0x574   : > { %p16_p6 = scmp.ge.s32.totalorder %s19_s29, 4   ;;  %s6093_s28 = smov %s6095_s30 }
 0x576   :  { %18 = sbr.rel (!%p16_p6) target bundleno = 2 (0x2), region = 102 }

// kernel: vqvae_forward.13
= control target key start
LH: loop header
LB: loop body
LE: loop exit
PB: predicated region body
PF: predicated region fallthrough
CT: control target
= control target key end

     0   :  { %s2218_s12 = smov 0   ;;  %s2618_s0 = inlined_call_operand.vmem [shape: bf16[512,576], index: 0, kind: input, shape index: {}]   ;;  %s2619_s1 = inlined_call_operand.vmem [shape: bf16[576,128], index: 1, kind: input, shape index: {}]   ;;  %s2620_s2 = inlined_call_operand.vmem [shape: f32[1,128], index: 2, kind: input, shape index: {}]   ;;  %s2621_s3 = inlined_call_operand.vmem [shape: f32[512,128], index: 3, kind: output, shape index: {}]  }
   0x1 LB: > { %s1589_s13 = sadd.s32 4294967295, %s2196_s12   ;;  %p1593_p0 = scmp.ge.s32.totalorder %s2196_s12, 1  ;;  %s2196_s12 = sphi %s2218_s12, %s13_s12  }
   0x2   : > { %p139_p1 = scmp.lt.s32.totalorder %s2196_s12, 3 }
   0x4   : > { %p140_p2 = pnand %p1593_p0, %p139_p1 }
   0x5   : > { %v2042_v0 = vld [vmem:[%s2619_s1 + $0x40] sm:$0xff] (!%p140_p2)   ;;  %s1594_s16 = sshll.u32 (!%p140_p2), %s1589_s13, 5  ;;  %v2044_v2 = vld [vmem:[%s2619_s1 + $0x48] sm:$0xff] (!%p140_p2)   ;;  %v2046_v4 = vld [vmem:[%s2619_s1 + $0x50] sm:$0xff] (!%p140_p2)   ;;  %vm969_vm0 = vcmask (!%p140_p2), 523264  }
   0x6   : > { %143 = sbr.rel (%p140_p2) target bundleno = 412 (0x19c), region = 32  ;;  %v2043_v1 = vld [vmem:[%s2619_s1] sm:$0xff] (!%p140_p2)   ;;  %1733 = vmatprep.subr.bf16.mxu0 (!%p140_p2), %v2042_v0  ;;  %2017 = vmatprep.subr.bf16.mxu1 (!%p140_p2), %v2042_v0  ;;  %p165_p3 = scmp.lt.s32.totalorder (!%p140_p2), %s1594_s16, 63  ;;  %v2045_v3 = vld [vmem:[%s2619_s1 + $0x8] sm:$0xff] (!%p140_p2)   ;;  %v2047_v5 = vld [vmem:[%s2619_s1 + $0x10] sm:$0xff] (!%p140_p2)  }
   0x7   : > { %1734 = vmatpush3.bf16.msra.mxu0 (!%p140_p2), %v2043_v1  ;;  %2025 = vmatpush3.bf16.msra.mxu1 (!%p140_p2), %v2043_v1  ;;  %v2048_v6 = vld [vmem:[%s2619_s1 + $0x58] sm:$0xff] (!%p140_p2)   ;;  %v2050_v8 = vld [vmem:[%s2619_s1 + $0x60] sm:$0xff] (!%p140_p2)   ;;  %v2052_v10 = vld [vmem:[%s2619_s1 + $0x68] sm:$0xff] (!%p140_p2)  }
   0x8   : > { %1735 = vmatprep.subr.bf16.mxu0 (!%p140_p2), %v2044_v2  ;;  %2018 = vmatprep.subr.bf16.mxu1 (!%p140_p2), %v2044_v2  ;;  %v2049_v7 = vld [vmem:[%s2619_s1 + $0x18] sm:$0xff] (!%p140_p2)   ;;  %v2051_v9 = vld [vmem:[%s2619_s1 + $0x20] sm:$0xff] (!%p140_p2)   ;;  %v2053_v13 = vld [vmem:[%s2619_s1 + $0x28] sm:$0xff] (!%p140_p2)  }
   0x9   : > { %v2054_v14 = vld [vmem:[%s2619_s1 + $0x70] sm:$0xff] (!%p140_p2)   ;;  %v2056_v16 = vld [vmem:[%s2619_s1 + $0x78] sm:$0xff] (!%p140_p2)   ;;  %v2064_v18 = vld [vmem:[%s2619_s1 + $0xc0] sm:$0xff] (!%p140_p2)  }
   0xa   : > { %v2055_v15 = vld [vmem:[%s2619_s1 + $0x30] sm:$0xff] (!%p140_p2)   ;;  %v2057_v17 = vld [vmem:[%s2619_s1 + $0x38] sm:$0xff] (!%p140_p2)   ;;  %v2067_v19 = vld [vmem:[%s2619_s1 + $0x100] sm:$0xff] (!%p140_p2)  }
   0xb   : > { %1736 = vmatpush3.bf16.msra.mxu0 (!%p140_p2), %v2045_v3  ;;  %2026 = vmatpush3.bf16.msra.mxu1 (!%p140_p2), %v2045_v3  ;;  %v2065_v22 = vld [vmem:[%s2619_s1 + $0x80] sm:$0xff] (!%p140_p2)   ;;  %v2066_v23 = vld [vmem:[%s2619_s1 + $0xc8] sm:$0xff] (!%p140_p2)   ;;  %v2075_v28 = vld [vmem:[%s2619_s1 + $0xd0] sm:$0xff] (!%p140_p2)  }
   0xc   : > { %1737 = vmatprep.subr.bf16.mxu0 (!%p140_p2), %v2046_v4  ;;  %2019 = vmatprep.subr.bf16.mxu1 (!%p140_p2), %v2046_v4  ;;  %v2068_v26 = vld [vmem:[%s2619_s1 + $0x88] sm:$0xff] (!%p140_p2)   ;;  %v2076_v30 = vld [vmem:[%s2619_s1 + $0x90] sm:$0xff] (!%p140_p2)   ;;  %v2077_v31 = vld [vmem:[%s2619_s1 + $0xd8] sm:$0xff] (!%p140_p2)  }
   0xd   : > { %s2623_s16 = smov (!%p165_p3, %s1594_s16), 63  ;;  %v2078_v34 = vld [vmem:[%s2619_s1 + $0x98] sm:$0xff]   ;;  %v2098_v35 = vld [vmem:[%s2619_s1 + $0x108] sm:$0xff]   ;;  %v2085_v37 = vld [vmem:[%s2619_s1 + $0xe0] sm:$0xff]  }
   0xe   : > { %s2033_s29 = smul.u32 20, %s2623_s16  ;;  %v2086_v39 = vld [vmem:[%s2619_s1 + $0xa0] sm:$0xff]   ;;  %v2087_v40 = vld [vmem:[%s2619_s1 + $0xe8] sm:$0xff]   ;;  %v2095_v46 = vld [vmem:[%s2619_s1 + $0xf0] sm:$0xff]   ;;  %s1597_s19 = sshll.u32 %s2623_s16, 3 }
   0xf   : > { %1738 = vmatpush3.bf16.msra.mxu0 %v2047_v5  ;;  %2027 = vmatpush3.bf16.msra.mxu1 %v2047_v5  ;;  %v2088_v43 = vld [vmem:[%s2619_s1 + $0xa8] sm:$0xff]   ;;  %v2118_v47 = vld [vmem:[%s2619_s1 + $0x110] sm:$0xff]   ;;  %v2097_v49 = vld [vmem:[%s2619_s1 + $0xf8] sm:$0xff]   ;;  %s2527_s22 = scalar_lea.vmem %s2621_s3, %s1597_s19 }
  0x10   : > { %1739 = vmatprep.subr.bf16.mxu0 %v2048_v6  ;;  %2020 = vmatprep.subr.bf16.mxu1 %v2048_v6  ;;  %s2259_s9 = scalar_lea.vmem %s2618_s0, %s2033_s29  ;;  %v2096_v48 = vld [vmem:[%s2619_s1 + $0xb0] sm:$0xff]   ;;  %v2099_v52 = vld [vmem:[%s2619_s1 + $0xb8] sm:$0xff]  }
  0x11   : > { %v2060_v11 = vld [vmem:[%s2259_s9 + $0x4] ss:$20 sps:$4 sm:$0xff]   ;;  %v2058_v20 = vld [vmem:[%s2259_s9] ss:$20 sps:$4 sm:$0xff]   ;;  %v2073_v27 = vld [vmem:[%s2259_s9 + $0x28] ss:$20 sps:$4 sm:$0xff]  }
  0x12   : > { %v2063_v12 = vld [vmem:[%s2259_s9 + $0x1e4] ss:$20 sps:$4 sm:$0xff]   ;;  %1050 = vmatprep.mubr.bf16.mxu0 %v2060_v11  ;;  %v2061_v21 = vld [vmem:[%s2259_s9 + $0x1e0] ss:$20 sps:$4 sm:$0xff]   ;;  %v2074_v29 = vld [vmem:[%s2259_s9 + $0x208] ss:$20 sps:$4 sm:$0xff]  }
  0x13   : > { %1740 = vmatpush3.bf16.msra.mxu0 %v2049_v7  ;;  %2028 = vmatpush3.bf16.msra.mxu1 %v2049_v7  ;;  %v2069_v24 = vld [vmem:[%s2259_s9 + $0x2c] ss:$20 sps:$4 sm:$0xff]   ;;  %v2079_v32 = vld [vmem:[%s2259_s9 + $0x54] ss:$20 sps:$4 sm:$0xff]   ;;  %v2083_v36 = vld [vmem:[%s2259_s9 + $0x50] ss:$20 sps:$4 sm:$0xff]  }
  0x14   : > { %1741 = vmatprep.subr.bf16.mxu0 %v2050_v8  ;;  %2021 = vmatprep.subr.bf16.mxu1 %v2050_v8  ;;  %v2071_v25 = vld [vmem:[%s2259_s9 + $0x20c] ss:$20 sps:$4 sm:$0xff]   ;;  %v2081_v33 = vld [vmem:[%s2259_s9 + $0x234] ss:$20 sps:$4 sm:$0xff]   ;;  %v2084_v38 = vld [vmem:[%s2259_s9 + $0x230] ss:$20 sps:$4 sm:$0xff]  }
  0x15   : > { %1146 = vmatprep.mubr.bf16.mxu1 %v2063_v12  ;;  %v2089_v41 = vld [vmem:[%s2259_s9 + $0x7c] ss:$20 sps:$4 sm:$0xff]   ;;  %v2093_v44 = vld [vmem:[%s2259_s9 + $0x78] ss:$20 sps:$4 sm:$0xff]   ;;  %v2105_v54 = vld [vmem:[%s2259_s9 + $0xa0] ss:$20 sps:$4 sm:$0xff]  }
  0x16   : > { %v2091_v42 = vld [vmem:[%s2259_s9 + $0x25c] ss:$20 sps:$4 sm:$0xff]   ;;  %v2094_v45 = vld [vmem:[%s2259_s9 + $0x258] ss:$20 sps:$4 sm:$0xff]   ;;  %v2108_v57 = vld [vmem:[%s2259_s9 + $0x34] ss:$20 sps:$4 sm:$0xff]  }
  0x17   : > { %1742 = vmatpush3.bf16.msra.mxu0 %v2051_v9  ;;  %2029 = vmatpush3.bf16.msra.mxu1 %v2051_v9  ;;  %v2100_v50 = vld [vmem:[%s2259_s9 + $0xa4] ss:$20 sps:$4 sm:$0xff]   ;;  %v2104_v51 = vld [vmem:[%s2259_s9 + $0xc] ss:$20 sps:$4 sm:$0xff]   ;;  %v2102_v53 = vld [vmem:[%s2259_s9 + $0x8] ss:$20 sps:$4 sm:$0xff]  }
  0x18   : > { %1743 = vmatprep.subr.bf16.mxu0 %v2052_v10  ;;  %2022 = vmatprep.subr.bf16.mxu1 %v2052_v10  ;;  %v2106_v55 = vld [vmem:[%s2259_s9 + $0xcc] ss:$20 sps:$4 sm:$0xff]   ;;  %v2137_v56 = vld [vmem:[%s2619_s1 + $0x118] sm:$0xff]   ;;  %v2111_v59 = vld [vmem:[%s2259_s9 + $0x30] ss:$20 sps:$4 sm:$0xff]  }
  0x19   : > { %v2110_v58 = vld [vmem:[%s2259_s9 + $0xc8] ss:$20 sps:$4 sm:$0xff]   ;;  %v2116_v62 = vld [vmem:[%s2259_s9 + $0xf0] ss:$20 sps:$4 sm:$0xff]   ;;  %v2117_v63 = vld [vmem:[%s2259_s9 + $0x58] ss:$20 sps:$4 sm:$0xff]  }
  0x1a   : > { %v2112_v60 = vld [vmem:[%s2259_s9 + $0xf4] ss:$20 sps:$4 sm:$0xff]   ;;  %v2114_v61 = vld [vmem:[%s2259_s9 + $0x5c] ss:$20 sps:$4 sm:$0xff]   ;;  %v2121_v1 = vld [vmem:[%s2259_s9 + $0x84] ss:$20 sps:$4 sm:$0xff]  }
  0x1b   : > { %1744 = vmatpush3.bf16.msra.mxu0 %v2053_v13  ;;  %2030 = vmatpush3.bf16.msra.mxu1 %v2053_v13  ;;  %v2119_v0 = vld [vmem:[%s2259_s9 + $0x11c] ss:$20 sps:$4 sm:$0xff]   ;;  %v2123_v2 = vld [vmem:[%s2259_s9 + $0x118] ss:$20 sps:$4 sm:$0xff]   ;;  %v2124_v3 = vld [vmem:[%s2259_s9 + $0x80] ss:$20 sps:$4 sm:$0xff]  }
  0x1c   : > { %1745 = vmatprep.subr.bf16.mxu0 %v2054_v14  ;;  %2023 = vmatprep.subr.bf16.mxu1 %v2054_v14  ;;  %v2125_v4 = vld [vmem:[%s2259_s9 + $0x144] ss:$20 sps:$4 sm:$0xff]   ;;  %v2127_v5 = vld [vmem:[%s2259_s9 + $0xac] ss:$20 sps:$4 sm:$0xff]   ;;  %v2130_v7 = vld [vmem:[%s2259_s9 + $0xa8] ss:$20 sps:$4 sm:$0xff]  }
  0x1d   : > { %v2129_v6 = vld [vmem:[%s2259_s9 + $0x140] ss:$20 sps:$4 sm:$0xff]   ;;  %v2135_v10 = vld [vmem:[%s2259_s9 + $0x168] ss:$20 sps:$4 sm:$0xff]   ;;  %v2136_v11 = vld [vmem:[%s2259_s9 + $0xd0] ss:$20 sps:$4 sm:$0xff]  }
  0x1e   : > { %v2131_v8 = vld [vmem:[%s2259_s9 + $0x16c] ss:$20 sps:$4 sm:$0xff]   ;;  %v2133_v9 = vld [vmem:[%s2259_s9 + $0xd4] ss:$20 sps:$4 sm:$0xff]   ;;  %v2140_v13 = vld [vmem:[%s2259_s9 + $0xfc] ss:$20 sps:$4 sm:$0xff]  }
  0x1f   : > { %1746 = vmatpush3.bf16.msra.mxu0 %v2055_v15  ;;  %2031 = vmatpush3.bf16.msra.mxu1 %v2055_v15  ;;  %v2138_v12 = vld [vmem:[%s2259_s9 + $0x194] ss:$20 sps:$4 sm:$0xff]   ;;  %v2142_v14 = vld [vmem:[%s2259_s9 + $0x190] ss:$20 sps:$4 sm:$0xff]   ;;  %v2143_v15 = vld [vmem:[%s2259_s9 + $0xf8] ss:$20 sps:$4 sm:$0xff]  }
  0x20   : > { %1747 = vmatprep.subr.bf16.mxu0 %v2056_v16  ;;  %2024 = vmatprep.subr.bf16.mxu1 %v2056_v16  ;;  %v2144_v16 = vld [vmem:[%s2259_s9 + $0x1bc] ss:$20 sps:$4 sm:$0xff]  }
  0x23   : > { %1748 = vmatpush3.bf16.msra.mxu0 %v2057_v17  ;;  %2032 = vmatpush3.bf16.msra.mxu1 %v2057_v17  ;;  %v2146_v17 = vld [vmem:[%s2259_s9 + $0x124] ss:$20 sps:$4 sm:$0xff]  }
  0x24   : > { %1845 = vmatprep.subr.bf16.mxu1 %v2064_v18  ;;  %1977 = vmatprep.subr.bf16.mxu0 %v2067_v19  ;;  %v2148_v18 = vld [vmem:[%s2259_s9 + $0x1b8] ss:$20 sps:$4 sm:$0xff]  }
  0x26   : > { %1051 = vmatmul.mubr.bf16.vlgmr.msra.gmra.mrb[0].mxu0 %v2058_v20  ;;  %1147 = vmatmul.mubr.bf16.vlgmr.msra.gmra.mrb[0].mxu1 %v2061_v21  ;;  %v2150_v20 = vld [vmem:[%s2259_s9 + $0x14c] ss:$20 sps:$4 sm:$0xff]   ;;  %v2152_v21 = vld [vmem:[%s2259_s9 + $0x10] ss:$20 sps:$4 sm:$0xff]  }
  0x27   : > { %1846 = vmatpush3.bf16.msra.mxu1 %v2065_v22  ;;  %1978 = vmatpush3.bf16.msra.mxu0 %v2067_v19  ;;  %v2149_v19 = vld [vmem:[%s2259_s9 + $0x120] ss:$20 sps:$4 sm:$0xff]   ;;  %v2153_v22 = vld [vmem:[%s2259_s9 + $0x148] ss:$20 sps:$4 sm:$0xff]  }
  0x28   : > { %1847 = vmatprep.subr.bf16.mxu1 %v2066_v23  ;;  %1058 = vmatprep.mubr.bf16.mxu0 %v2069_v24  ;;  %v2154_v23 = vld [vmem:[%s2259_s9 + $0x38] ss:$20 sps:$4 sm:$0xff]   ;;  %v2155_v24 = vld [vmem:[%s2259_s9 + $0x174] ss:$20 sps:$4 sm:$0xff]  }
  0x29   : > { %1154 = vmatprep.mubr.bf16.mxu1 %v2071_v25  ;;  %1979 = vmatprep.subr.bf16.mxu0 %v2098_v35  ;;  %v2157_v25 = vld [vmem:[%s2259_s9 + $0x60] ss:$20 sps:$4 sm:$0xff]  }
  0x2b   : > { %1848 = vmatpush3.bf16.msra.mxu1 %v2068_v26  ;;  %1980 = vmatpush3.bf16.msra.mxu0 %v2098_v35  ;;  %v2158_v26 = vld [vmem:[%s2259_s9 + $0x170] ss:$20 sps:$4 sm:$0xff]   ;;  %v2169_v35 = vld [vmem:[%s2259_s9 + $0x128] ss:$20 sps:$4 sm:$0xff]  }
  0x2c   : > { %1849 = vmatprep.subr.bf16.mxu1 %v2075_v28  ;;  %1981 = vmatprep.subr.bf16.mxu0 %v2118_v47  ;;  %v2160_v28 = vld [vmem:[%s2259_s9 + $0x19c] ss:$20 sps:$4 sm:$0xff]  }
  0x2e   : > { %1059 = vmatmul.mubr.bf16.gmra.mrb[4].mxu0 %v2073_v27  ;;  %1155 = vmatmul.mubr.bf16.gmra.mrb[4].mxu1 %v2074_v29  ;;  %v2159_v27 = vld [vmem:[%s2259_s9 + $0x88] ss:$20 sps:$4 sm:$0xff]   ;;  %v2162_v29 = vld [vmem:[%s2259_s9 + $0xb0] ss:$20 sps:$4 sm:$0xff]  }
  0x2f   : > { %1850 = vmatpush3.bf16.msra.mxu1 %v2076_v30  ;;  %1066 = vmatprep.mubr.bf16.mxu0 %v2079_v32  ;;  %v2163_v30 = vld [vmem:[%s2259_s9 + $0x198] ss:$20 sps:$4 sm:$0xff]  }
  0x30   : > { %1851 = vmatprep.subr.bf16.mxu1 %v2077_v31  ;;  %1162 = vmatprep.mubr.bf16.mxu1 %v2081_v33  ;;  %v2164_v31 = vld [vmem:[%s2259_s9 + $0xd8] ss:$20 sps:$4 sm:$0xff]   ;;  %v2167_v33 = vld [vmem:[%s2259_s9 + $0x100] ss:$20 sps:$4 sm:$0xff]  }
  0x31   : > { %1982 = vmatpush3.bf16.msra.mxu0 %v2118_v47  ;;  %v2165_v32 = vld [vmem:[%s2259_s9 + $0x1c4] ss:$20 sps:$4 sm:$0xff]  }
  0x32   : > { %1983 = vmatprep.subr.bf16.mxu0 %v2137_v56  ;;  %v2184_v47 = vld [vmem:[%s2259_s9 + $0x218] ss:$20 sps:$4 sm:$0xff]  }
  0x33   : > { %1852 = vmatpush3.bf16.msra.mxu1 %v2078_v34  ;;  %v2168_v34 = vld [vmem:[%s2259_s9 + $0x1c0] ss:$20 sps:$4 sm:$0xff]  }
  0x34   : > { %1853 = vmatprep.subr.bf16.mxu1 %v2085_v37  ;;  %v2172_v37 = vld [vmem:[%s2259_s9 + $0x150] ss:$20 sps:$4 sm:$0xff]  }
  0x35   : > { %1984 = vmatpush3.bf16.msra.mxu0 %v2137_v56 }
  0x36   : > { %1067 = vmatmul.mubr.bf16.gmra.mrb[8].mxu0 %v2083_v36  ;;  %1163 = vmatmul.mubr.bf16.gmra.mrb[8].mxu1 %v2084_v38  ;;  %v2170_v36 = vld [vmem:[%s2259_s9 + $0x1ec] ss:$20 sps:$4 sm:$0xff]   ;;  %v2173_v38 = vld [vmem:[%s2259_s9 + $0x1e8] ss:$20 sps:$4 sm:$0xff]  }
  0x37   : > { %1854 = vmatpush3.bf16.msra.mxu1 %v2086_v39  ;;  %1074 = vmatprep.mubr.bf16.mxu0 %v2089_v41  ;;  %v2174_v39 = vld [vmem:[%s2259_s9 + $0x178] ss:$20 sps:$4 sm:$0xff]   ;;  %v2177_v41 = vld [vmem:[%s2259_s9 + $0x1a0] ss:$20 sps:$4 sm:$0xff]  }
  0x38   : > { %1855 = vmatprep.subr.bf16.mxu1 %v2087_v40  ;;  %1170 = vmatprep.mubr.bf16.mxu1 %v2091_v42  ;;  %v2175_v40 = vld [vmem:[%s2259_s9 + $0x214] ss:$20 sps:$4 sm:$0xff]   ;;  %v2178_v42 = vld [vmem:[%s2259_s9 + $0x210] ss:$20 sps:$4 sm:$0xff]  }
  0x3b   : > { %1856 = vmatpush3.bf16.msra.mxu1 %v2088_v43  ;;  %v2179_v43 = vld [vmem:[%s2259_s9 + $0x1c8] ss:$20 sps:$4 sm:$0xff]  }
  0x3c   : > { %1857 = vmatprep.subr.bf16.mxu1 %v2095_v46  ;;  %v2183_v46 = vld [vmem:[%s2259_s9 + $0x238] ss:$20 sps:$4 sm:$0xff]  }
  0x3e   : > { %1075 = vmatmul.mubr.bf16.gmra.mrb[12].mxu0 %v2093_v44  ;;  %1171 = vmatmul.mubr.bf16.gmra.mrb[12].mxu1 %v2094_v45  ;;  %v2180_v44 = vld [vmem:[%s2259_s9 + $0x23c] ss:$20 sps:$4 sm:$0xff]  }
  0x3f   : > { %1858 = vmatpush3.bf16.msra.mxu1 %v2096_v48  ;;  %1082 = vmatprep.mubr.bf16.mxu0 %v2100_v50  ;;  %v2182_v45 = vld [vmem:[%s2259_s9 + $0x1f0] ss:$20 sps:$4 sm:$0xff]   ;;  %v2188_v50 = vld [vmem:[%s2259_s9 + $0x260] ss:$20 sps:$4 sm:$0xff]  }
  0x40   : > { %1859 = vmatprep.subr.bf16.mxu1 %v2097_v49  ;;  %1211 = vmatprep.mubr.bf16.mxu1 %v2104_v51  ;;  %v2185_v48 = vld [vmem:[%s2259_s9 + $0x264] ss:$20 sps:$4 sm:$0xff]   ;;  %v2187_v49 = vld [vmem:[%s2259_s9 + $0x240] ss:$20 sps:$4 sm:$0xff]   ;;  %v2189_v51 = vld [vmem:[%s2259_s9 + $0x268] ss:$20 sps:$4 sm:$0xff]  }
  0x43   : > { %1860 = vmatpush3.bf16.msra.mxu1 %v2099_v52 }
  0x46   : > { %1083 = vmatmul.mubr.bf16.gmra.mrb[16].mxu0 %v2105_v54  ;;  %1212 = vmatmul.mubr.bf16.vlgmr.msra.gmra.mrb[16].mxu1 %v2102_v53 }
  0x47   : > { %1090 = vmatprep.mubr.bf16.mxu0 %v2106_v55  ;;  %1219 = vmatprep.mubr.bf16.mxu1 %v2108_v57 }
  0x4e   : > { %1091 = vmatmul.mubr.bf16.gmra.mrb[20].mxu0 %v2110_v58  ;;  %1220 = vmatmul.mubr.bf16.gmra.mrb[20].mxu1 %v2111_v59 }
  0x4f   : > { %1098 = vmatprep.mubr.bf16.mxu0 %v2112_v60  ;;  %1227 = vmatprep.mubr.bf16.mxu1 %v2114_v61 }
  0x56   : > { %1099 = vmatmul.mubr.bf16.gmra.mrb[24].mxu0 %v2116_v62  ;;  %1228 = vmatmul.mubr.bf16.gmra.mrb[24].mxu1 %v2117_v63 }
  0x57   : > { %1106 = vmatprep.mubr.bf16.mxu0 %v2119_v0  ;;  %1235 = vmatprep.mubr.bf16.mxu1 %v2121_v1 }
  0x5e   : > { %1107 = vmatmul.mubr.bf16.gmra.mrb[28].mxu0 %v2123_v2  ;;  %1236 = vmatmul.mubr.bf16.gmra.mrb[28].mxu1 %v2124_v3 }
  0x5f   : > { %1114 = vmatprep.mubr.bf16.mxu0 %v2125_v4  ;;  %1243 = vmatprep.mubr.bf16.mxu1 %v2127_v5 }
  0x66   : > { %1115 = vmatmul.mubr.bf16.gmra.mrb[32].mxu0 %v2129_v6  ;;  %1244 = vmatmul.mubr.bf16.gmra.mrb[32].mxu1 %v2130_v7 }
  0x67   : > { %1122 = vmatprep.mubr.bf16.mxu0 %v2131_v8  ;;  %1251 = vmatprep.mubr.bf16.mxu1 %v2133_v9 }
  0x6e   : > { %1123 = vmatmul.mubr.bf16.gmra.mrb[36].mxu0 %v2135_v10  ;;  %1252 = vmatmul.mubr.bf16.gmra.mrb[36].mxu1 %v2136_v11 }
  0x6f   : > { %1130 = vmatprep.mubr.bf16.mxu0 %v2138_v12  ;;  %1259 = vmatprep.mubr.bf16.mxu1 %v2140_v13 }
  0x76   : > { %1131 = vmatmul.mubr.bf16.gmra.mrb[40].mxu0 %v2142_v14  ;;  %1260 = vmatmul.mubr.bf16.gmra.mrb[40].mxu1 %v2143_v15 }
  0x77   : > { %1138 = vmatprep.mubr.bf16.mxu0 %v2144_v16  ;;  %1267 = vmatprep.mubr.bf16.mxu1 %v2146_v17 }
  0x7e   : > { %1139 = vmatmul.mubr.bf16.gmra.mrb[44].mxu0 %v2148_v18  ;;  %1268 = vmatmul.mubr.bf16.gmra.mrb[44].mxu1 %v2149_v19 }
  0x7f   : > { %1275 = vmatprep.mubr.bf16.mxu1 %v2150_v20  ;;  %1985 = vmatprep.mubr.msk.bf16.mxu0 %vm969_vm0, %v2152_v21 }
  0x86   : > { %1276 = vmatmul.mubr.bf16.gmra.mrb[48].mxu1 %v2153_v22  ;;  %1986 = vmatmul.mubr.msk.bf16.vlgmr.msra.gmra.mrb[48].mxu0 %vm969_vm0, %v2154_v23 }
  0x87   : > { %1283 = vmatprep.mubr.bf16.mxu1 %v2155_v24  ;;  %1989 = vmatprep.mubr.msk.bf16.mxu0 %vm969_vm0, %v2157_v25 }
  0x8e   : > { %1284 = vmatmul.mubr.bf16.gmra.mrb[52].mxu1 %v2158_v26  ;;  %1990 = vmatmul.mubr.msk.bf16.gmra.mrb[52].mxu0 %vm969_vm0, %v2159_v27 }
  0x8f   : > { %1291 = vmatprep.mubr.bf16.mxu1 %v2160_v28  ;;  %1993 = vmatprep.mubr.msk.bf16.mxu0 %vm969_vm0, %v2162_v29 }
  0x96   : > { %1292 = vmatmul.mubr.bf16.gmra.mrb[56].mxu1 %v2163_v30  ;;  %1994 = vmatmul.mubr.msk.bf16.gmra.mrb[56].mxu0 %vm969_vm0, %v2164_v31 }
  0x97   : > { %1299 = vmatprep.mubr.bf16.mxu1 %v2165_v32  ;;  %1997 = vmatprep.mubr.msk.bf16.mxu0 %vm969_vm0, %v2167_v33 }
  0x9e   : > { %1300 = vmatmul.mubr.bf16.gmra.mrb[60].mxu1 %v2168_v34  ;;  %1998 = vmatmul.mubr.msk.bf16.gmra.mrb[60].mxu0 %vm969_vm0, %v2169_v35 }
  0x9f   : > { %1307 = vmatprep.mubr.bf16.mxu1 %v2170_v36  ;;  %2001 = vmatprep.mubr.msk.bf16.mxu0 %vm969_vm0, %v2172_v37 }
  0xa6   : > { %1308 = vmatmul.mubr.bf16.gmra.mrb[64].mxu1 %v2173_v38  ;;  %2002 = vmatmul.mubr.msk.bf16.gmra.mrb[64].mxu0 %vm969_vm0, %v2174_v39  ;;  %v2457_v38 = vld [vmem:[%s2620_s2] ss:$0 sm:$0xff] }
  0xa7   : > { %1315 = vmatprep.mubr.bf16.mxu1 %v2175_v40  ;;  %2005 = vmatprep.mubr.msk.bf16.mxu0 %vm969_vm0, %v2177_v41 }
  0xae   : > { %1316 = vmatmul.mubr.bf16.gmra.mrb[68].mxu1 %v2178_v42  ;;  %2006 = vmatmul.mubr.msk.bf16.gmra.mrb[68].mxu0 %vm969_vm0, %v2179_v43 }
  0xaf   : > { %1323 = vmatprep.mubr.bf16.mxu1 %v2180_v44  ;;  %2009 = vmatprep.mubr.msk.bf16.mxu0 %vm969_vm0, %v2182_v45 }
  0xb6   : > { %1324 = vmatmul.mubr.bf16.gmra.mrb[72].mxu1 %v2183_v46  ;;  %2010 = vmatmul.mubr.msk.bf16.gmra.mrb[72].mxu0 %vm969_vm0, %v2184_v47 }
  0xb7   : > { %1331 = vmatprep.mubr.bf16.mxu1 %v2185_v48  ;;  %2013 = vmatprep.mubr.msk.bf16.mxu0 %vm969_vm0, %v2187_v49 }
  0xbe   : > { %1332 = vmatmul.mubr.bf16.gmra.mrb[76].mxu1 %v2188_v50  ;;  %2014 = vmatmul.mubr.msk.bf16.gmra.mrb[76].mxu0 %vm969_vm0, %v2189_v51 }
  0xf9   : > { %v1821_v52 = vpop.f32.mrb[0].mxu1  ;;  %v1749_v53 = vpop.f32.mrb[0].mxu0 }
  0xfa   : > { %v1822_v54 = vpop.f32.mrb[1].mxu1  ;;  %v1750_v55 = vpop.f32.mrb[1].mxu0 }
  0xfb   : > { %v2438_v56 = vadd.f32 %v1822_v54, %v1821_v52  ;;  %v1824_v57 = vpop.f32.mrb[2].mxu1  ;;  %v1751_v58 = vadd.f32 %v1750_v55, %v1749_v53  ;;  %v1752_v59 = vpop.f32.mrb[2].mxu0 }
  0xfc   : > { %v1825_v60 = vpop.f32.mrb[3].mxu1  ;;  %v1753_v61 = vpop.f32.mrb[3].mxu0 }
  0xfd   : > { %v2440_v62 = vadd.f32 %v1825_v60, %v1824_v57  ;;  %v1754_v63 = vadd.f32 %v1753_v61, %v1752_v59  ;;  %v1053_v41 = vadd.f32 %v1751_v58, %v2457_v38 }
  0xff   : > { %v1056_v48 = vadd.f32 %v1754_v63, %v2457_v38 }
 0x101   : > { %v1827_v0 = vpop.f32.mrb[4].mxu1  ;;  %v1755_v1 = vpop.f32.mrb[4].mxu0 }
 0x102   : > { %v1828_v2 = vpop.f32.mrb[5].mxu1  ;;  %v1756_v3 = vpop.f32.mrb[5].mxu0 }
 0x103   : > { %v2442_v4 = vadd.f32 %v1828_v2, %v1827_v0  ;;  %v1830_v5 = vpop.f32.mrb[6].mxu1  ;;  %v1757_v6 = vadd.f32 %v1756_v3, %v1755_v1  ;;  %v1758_v7 = vpop.f32.mrb[6].mxu0 }
 0x104   : > { %v1831_v8 = vpop.f32.mrb[7].mxu1  ;;  %v1759_v9 = vpop.f32.mrb[7].mxu0 }
 0x105   : > { %v2444_v10 = vadd.f32 %v1831_v8, %v1830_v5  ;;  %v1760_v11 = vadd.f32 %v1759_v9, %v1758_v7  ;;  %v1061_v58 = vadd.f32 %v1757_v6, %v2457_v38 }
 0x107   : > { %v1064_v63 = vadd.f32 %v1760_v11, %v2457_v38 }
 0x109   : > { %v1833_v12 = vpop.f32.mrb[8].mxu1  ;;  %v1761_v13 = vpop.f32.mrb[8].mxu0 }
 0x10a   : > { %v1834_v14 = vpop.f32.mrb[9].mxu1  ;;  %v1762_v15 = vpop.f32.mrb[9].mxu0 }
 0x10b   : > { %v2446_v16 = vadd.f32 %v1834_v14, %v1833_v12  ;;  %v1836_v17 = vpop.f32.mrb[10].mxu1  ;;  %v1763_v18 = vadd.f32 %v1762_v15, %v1761_v13  ;;  %v1764_v19 = vpop.f32.mrb[10].mxu0 }
 0x10c   : > { %v1837_v20 = vpop.f32.mrb[11].mxu1  ;;  %v1765_v21 = vpop.f32.mrb[11].mxu0 }
 0x10d   : > { %v2448_v22 = vadd.f32 %v1837_v20, %v1836_v17  ;;  %v1766_v23 = vadd.f32 %v1765_v21, %v1764_v19  ;;  %v1069_v6 = vadd.f32 %v1763_v18, %v2457_v38 }
 0x10f   : > { %v1072_v11 = vadd.f32 %v1766_v23, %v2457_v38 }
 0x111   : > { %v1839_v24 = vpop.f32.mrb[12].mxu1  ;;  %v1767_v25 = vpop.f32.mrb[12].mxu0 }
 0x112   : > { %v1840_v26 = vpop.f32.mrb[13].mxu1  ;;  %v1768_v27 = vpop.f32.mrb[13].mxu0 }
 0x113   : > { %v2450_v28 = vadd.f32 %v1840_v26, %v1839_v24  ;;  %v1842_v29 = vpop.f32.mrb[14].mxu1  ;;  %v1769_v30 = vadd.f32 %v1768_v27, %v1767_v25  ;;  %v1770_v31 = vpop.f32.mrb[14].mxu0 }
 0x114   : > { %v1843_v32 = vpop.f32.mrb[15].mxu1  ;;  %v1771_v33 = vpop.f32.mrb[15].mxu0 }
 0x115   : > { %v2452_v34 = vadd.f32 %v1843_v32, %v1842_v29  ;;  %v1772_v35 = vadd.f32 %v1771_v33, %v1770_v31  ;;  %v1077_v18 = vadd.f32 %v1769_v30, %v2457_v38 }
 0x117   : > { %v1080_v23 = vadd.f32 %v1772_v35, %v2457_v38 }
 0x119   : > { %v1861_v36 = vpop.f32.mrb[16].mxu1  ;;  %v1773_v37 = vpop.f32.mrb[16].mxu0 }
 0x11a   : > { %v1862_v39 = vpop.f32.mrb[17].mxu1  ;;  %v1774_v40 = vpop.f32.mrb[17].mxu0 }
 0x11b   : > { %v1863_v42 = vadd.f32 %v1862_v39, %v1861_v36  ;;  %v1864_v43 = vpop.f32.mrb[18].mxu1  ;;  %v1775_v44 = vadd.f32 %v1774_v40, %v1773_v37  ;;  %v1776_v45 = vpop.f32.mrb[18].mxu0 }
 0x11c   : > { %v1865_v46 = vpop.f32.mrb[19].mxu1  ;;  %v1777_v47 = vpop.f32.mrb[19].mxu0 }
 0x11d   : > { %v1866_v49 = vadd.f32 %v1865_v46, %v1864_v43  ;;  %v1778_v50 = vadd.f32 %v1777_v47, %v1776_v45  ;;  %v2461_v51 = vadd.f32 %v1863_v42, %v1053_v41  ;;  %v1085_v30 = vadd.f32 %v1775_v44, %v2457_v38 }
 0x11f   : > { %v2463_v52 = vadd.f32 %v1866_v49, %v1056_v48  ;;  %v1088_v35 = vadd.f32 %v1778_v50, %v2457_v38 }
 0x121   : > { %v1867_v53 = vpop.f32.mrb[20].mxu1  ;;  %v1779_v54 = vpop.f32.mrb[20].mxu0 }
 0x122   : > { %v1868_v55 = vpop.f32.mrb[21].mxu1  ;;  %v1780_v57 = vpop.f32.mrb[21].mxu0 }
 0x123   : > { %v1869_v59 = vadd.f32 %v1868_v55, %v1867_v53  ;;  %v1870_v60 = vpop.f32.mrb[22].mxu1  ;;  %v1781_v61 = vadd.f32 %v1780_v57, %v1779_v54  ;;  %v1782_v0 = vpop.f32.mrb[22].mxu0 }
 0x124   : > { %v1871_v1 = vpop.f32.mrb[23].mxu1  ;;  %v1783_v2 = vpop.f32.mrb[23].mxu0 }
 0x125   : > { %v1872_v3 = vadd.f32 %v1871_v1, %v1870_v60  ;;  %v1784_v5 = vadd.f32 %v1783_v2, %v1782_v0  ;;  %v2467_v7 = vadd.f32 %v1869_v59, %v1061_v58 }
 0x127   : > { %v2469_v8 = vadd.f32 %v1872_v3, %v1064_v63 }
 0x129   : > { %v1873_v9 = vpop.f32.mrb[24].mxu1  ;;  %v1785_v12 = vpop.f32.mrb[24].mxu0 }
 0x12a   : > { %v1874_v13 = vpop.f32.mrb[25].mxu1  ;;  %v1786_v14 = vpop.f32.mrb[25].mxu0 }
 0x12b   : > { %v1875_v15 = vadd.f32 %v1874_v13, %v1873_v9  ;;  %v1876_v17 = vpop.f32.mrb[26].mxu1  ;;  %v1787_v19 = vadd.f32 %v1786_v14, %v1785_v12  ;;  %v1788_v20 = vpop.f32.mrb[26].mxu0 }
 0x12c   : > { %v1877_v21 = vpop.f32.mrb[27].mxu1  ;;  %v1789_v24 = vpop.f32.mrb[27].mxu0 }
 0x12d   : > { %v1878_v25 = vadd.f32 %v1877_v21, %v1876_v17  ;;  %v1790_v26 = vadd.f32 %v1789_v24, %v1788_v20  ;;  %v2473_v27 = vadd.f32 %v1875_v15, %v1069_v6  ;;  %v1093_v6 = vadd.f32 %v1781_v61, %v2457_v38 }
 0x12f   : > { %v2475_v29 = vadd.f32 %v1878_v25, %v1072_v11  ;;  %v1096_v11 = vadd.f32 %v1784_v5, %v2457_v38 }
 0x131   : > { %v1879_v31 = vpop.f32.mrb[28].mxu1  ;;  %v1791_v32 = vpop.f32.mrb[28].mxu0 }
 0x132   : > { %v1880_v33 = vpop.f32.mrb[29].mxu1  ;;  %v1792_v36 = vpop.f32.mrb[29].mxu0 }
 0x133   : > { %v1881_v37 = vadd.f32 %v1880_v33, %v1879_v31  ;;  %v1882_v39 = vpop.f32.mrb[30].mxu1  ;;  %v1793_v40 = vadd.f32 %v1792_v36, %v1791_v32  ;;  %v1794_v41 = vpop.f32.mrb[30].mxu0 }
 0x134   : > { %v1883_v42 = vpop.f32.mrb[31].mxu1  ;;  %v1795_v43 = vpop.f32.mrb[31].mxu0 }
 0x135   : > { %v1884_v45 = vadd.f32 %v1883_v42, %v1882_v39  ;;  %v1796_v46 = vadd.f32 %v1795_v43, %v1794_v41  ;;  %v2479_v47 = vadd.f32 %v1881_v37, %v1077_v18  ;;  %v1101_v39 = vadd.f32 %v1787_v19, %v2457_v38 }
 0x137   : > { %v2481_v48 = vadd.f32 %v1884_v45, %v1080_v23 }
 0x139   : > { %v1885_v49 = vpop.f32.mrb[32].mxu1  ;;  %v1797_v53 = vpop.f32.mrb[32].mxu0 }
 0x13a   : > { %v1886_v54 = vpop.f32.mrb[33].mxu1  ;;  %v1798_v55 = vpop.f32.mrb[33].mxu0 }
 0x13b   : > { %v1887_v57 = vadd.f32 %v1886_v54, %v1885_v49  ;;  %v1888_v58 = vpop.f32.mrb[34].mxu1  ;;  %v2484_v59 = vadd.f32 %v1798_v55, %v1797_v53  ;;  %v1800_v60 = vpop.f32.mrb[34].mxu0  ;;  %v1104_v49 = vadd.f32 %v1790_v26, %v2457_v38 }
 0x13c   : > { %v1889_v0 = vpop.f32.mrb[35].mxu1  ;;  %v1801_v1 = vpop.f32.mrb[35].mxu0 }
 0x13d   : > { %v1890_v2 = vadd.f32 %v1889_v0, %v1888_v58  ;;  %v2487_v63 = vadd.f32 %v1801_v1, %v1800_v60  ;;  %v2489_v3 = vadd.f32 %v1887_v57, %v1085_v30  ;;  %v1109_v0 = vadd.f32 %v1793_v40, %v2457_v38 }
 0x13f   : > { %v2491_v9 = vadd.f32 %v1890_v2, %v1088_v35 }
 0x141   : > { %v1891_v12 = vpop.f32.mrb[36].mxu1  ;;  %v1803_v13 = vpop.f32.mrb[36].mxu0 }
 0x142   : > { %v1892_v14 = vpop.f32.mrb[37].mxu1  ;;  %v1804_v44 = vpop.f32.mrb[37].mxu0 }
 0x143   : > { %v1893_v15 = vadd.f32 %v1892_v14, %v1891_v12  ;;  %v1894_v17 = vpop.f32.mrb[38].mxu1  ;;  %v2494_v20 = vadd.f32 %v1804_v44, %v1803_v13  ;;  %v1806_v21 = vpop.f32.mrb[38].mxu0  ;;  %v1112_v14 = vadd.f32 %v1796_v46, %v2457_v38 }
 0x144   : > { %v1895_v24 = vpop.f32.mrb[39].mxu1  ;;  %v1807_v50 = vpop.f32.mrb[39].mxu0 }
 0x145   : > { %v1896_v25 = vadd.f32 %v1895_v24, %v1894_v17  ;;  %v2497_v31 = vadd.f32 %v1807_v50, %v1806_v21  ;;  %v2499_v32 = vadd.f32 %v1893_v15, %v1093_v6 }
 0x147   : > { %v2501_v33 = vadd.f32 %v1896_v25, %v1096_v11  ;;  %v1117_v11 = vadd.f32 %v2484_v59, %v2457_v38 }
 0x149   : > { %v1897_v36 = vpop.f32.mrb[40].mxu1  ;;  %v1809_v18 = vpop.f32.mrb[40].mxu0 }
 0x14a   : > { %v1898_v37 = vpop.f32.mrb[41].mxu1  ;;  %v1810_v61 = vpop.f32.mrb[41].mxu0 }
 0x14b   : > { %v1899_v41 = vadd.f32 %v1898_v37, %v1897_v36  ;;  %v1900_v42 = vpop.f32.mrb[42].mxu1  ;;  %v2504_v43 = vadd.f32 %v1810_v61, %v1809_v18  ;;  %v1812_v23 = vpop.f32.mrb[42].mxu0 }
 0x14c   : > { %v1901_v45 = vpop.f32.mrb[43].mxu1  ;;  %v1813_v5 = vpop.f32.mrb[43].mxu0 }
 0x14d   : > { %v1902_v53 = vadd.f32 %v1901_v45, %v1900_v42  ;;  %v2507_v54 = vadd.f32 %v1813_v5, %v1812_v23  ;;  %v2509_v55 = vadd.f32 %v1899_v41, %v1101_v39 }
 0x14f   : > { %v2511_v30 = vadd.f32 %v1902_v53, %v1104_v49 }
 0x151   : > { %v1903_v57 = vpop.f32.mrb[44].mxu1  ;;  %v1815_v58 = vpop.f32.mrb[44].mxu0 }
 0x152   : > { %v1904_v19 = vpop.f32.mrb[45].mxu1  ;;  %v1816_v60 = vpop.f32.mrb[45].mxu0 }
 0x153   : > { %v1905_v1 = vadd.f32 %v1904_v19, %v1903_v57  ;;  %v1906_v35 = vpop.f32.mrb[46].mxu1  ;;  %v2514_v2 = vadd.f32 %v1816_v60, %v1815_v58  ;;  %v1818_v12 = vpop.f32.mrb[46].mxu0 }
 0x154   : > { %v1907_v26 = vpop.f32.mrb[47].mxu1  ;;  %v1819_v13 = vpop.f32.mrb[47].mxu0 }
 0x155   : > { %v1908_v44 = vadd.f32 %v1907_v26, %v1906_v35  ;;  %v2517_v6 = vadd.f32 %v1819_v13, %v1818_v12  ;;  %v2519_v15 = vadd.f32 %v1905_v1, %v1109_v0 }
 0x157   : > { %v2522_v17 = vadd.f32 %v1908_v44, %v1112_v14 }
 0x159   : > { %v1909_v21 = vpop.f32.mrb[48].mxu1  ;;  %v1987_v40 = vpop.f32.mrb[48].mxu0 }
 0x15a   : > { %v1383_v24 = vadd.f32 %v1987_v40, %v2467_v7  ;;  %v1910_v46 = vpop.f32.mrb[49].mxu1  ;;  %v1374_v50 = vpop.f32.mrb[49].mxu0  ;;  %v1120_v7 = vadd.f32 %v2487_v63, %v2457_v38  ;;  %v1125_v63 = vadd.f32 %v2494_v20, %v2457_v38 }
 0x15b   : > { %v1911_v25 = vadd.f32 %v1910_v46, %v1909_v21  ;;  %v1375_v36 = vadd.f32 %v1374_v50, %v2461_v51  ;;  %v1912_v18 = vpop.f32.mrb[50].mxu1  ;;  %v1988_v37 = vpop.f32.mrb[50].mxu0 }
 0x15c   : > { %1503 = vst [vmem:[%s2527_s22 + $0x10] sm:$0xff] %v1383_v24  ;;  %v1386_v61 = vadd.f32 %v1988_v37, %v2469_v8  ;;  %v1913_v39 = vpop.f32.mrb[51].mxu1  ;;  %v1377_v41 = vpop.f32.mrb[51].mxu0 }
 0x15d   : > { %1501 = vst [vmem:[%s2527_s22] sm:$0xff] %v1375_v36  ;;  %v1914_v42 = vadd.f32 %v1913_v39, %v1912_v18  ;;  %v1378_v23 = vadd.f32 %v1377_v41, %v2463_v52  ;;  %v2539_v45 = vadd.f32 %v1911_v25, %v1117_v11 }
 0x15e   : > { %1504 = vst [vmem:[%s2527_s22 + $0x18] sm:$0xff] %v1386_v61 }
 0x15f   : > { %1502 = vst [vmem:[%s2527_s22 + $0x8] sm:$0xff] %v1378_v23  ;;  %v2543_v51 = vadd.f32 %v1914_v42, %v1120_v7 }
 0x161   : > { %v1915_v59 = vpop.f32.mrb[52].mxu1  ;;  %v1991_v5 = vpop.f32.mrb[52].mxu0 }
 0x162   : > { %v1399_v8 = vadd.f32 %v1991_v5, %v2479_v47  ;;  %v1916_v49 = vpop.f32.mrb[53].mxu1  ;;  %v1390_v53 = vpop.f32.mrb[53].mxu0  ;;  %v1128_v47 = vadd.f32 %v2497_v31, %v2457_v38  ;;  %v1133_v31 = vadd.f32 %v2504_v43, %v2457_v38 }
 0x163   : > { %v1917_v57 = vadd.f32 %v1916_v49, %v1915_v59  ;;  %v1391_v52 = vadd.f32 %v1390_v53, %v2473_v27  ;;  %v1918_v58 = vpop.f32.mrb[54].mxu1  ;;  %v1992_v19 = vpop.f32.mrb[54].mxu0 }
 0x164   : > { %1507 = vst [vmem:[%s2527_s22 + $0x30] sm:$0xff] %v1399_v8  ;;  %v1402_v60 = vadd.f32 %v1992_v19, %v2481_v48  ;;  %v1919_v0 = vpop.f32.mrb[55].mxu1  ;;  %v1393_v1 = vpop.f32.mrb[55].mxu0 }
 0x165   : > { %1505 = vst [vmem:[%s2527_s22 + $0x20] sm:$0xff] %v1391_v52  ;;  %v1920_v35 = vadd.f32 %v1919_v0, %v1918_v58  ;;  %v1394_v12 = vadd.f32 %v1393_v1, %v2475_v29  ;;  %v1286_v26 = vadd.f32 %v1917_v57, %v1125_v63 }
 0x166   : > { %1508 = vst [vmem:[%s2527_s22 + $0x38] sm:$0xff] %v1402_v60 }
 0x167   : > { %1506 = vst [vmem:[%s2527_s22 + $0x28] sm:$0xff] %v1394_v12  ;;  %v1289_v20 = vadd.f32 %v1920_v35, %v1128_v47  ;;  %v1152_v35 = vadd.f32 %v2440_v62, %v2457_v38  ;;  %v1157_v62 = vadd.f32 %v2442_v4, %v2457_v38 }
 0x169   : > { %v1921_v27 = vpop.f32.mrb[56].mxu1  ;;  %v1995_v13 = vpop.f32.mrb[56].mxu0 }
 0x16a   : > { %v1415_v14 = vadd.f32 %v1995_v13, %v2499_v32  ;;  %v1922_v48 = vpop.f32.mrb[57].mxu1  ;;  %v1406_v44 = vpop.f32.mrb[57].mxu0  ;;  %v1136_v32 = vadd.f32 %v2507_v54, %v2457_v38  ;;  %v1141_v54 = vadd.f32 %v2514_v2, %v2457_v38 }
 0x16b   : > { %v1923_v21 = vadd.f32 %v1922_v48, %v1921_v27  ;;  %v1407_v40 = vadd.f32 %v1406_v44, %v2489_v3  ;;  %v1924_v29 = vpop.f32.mrb[58].mxu1  ;;  %v1996_v24 = vpop.f32.mrb[58].mxu0 }
 0x16c   : > { %1511 = vst [vmem:[%s2527_s22 + $0x50] sm:$0xff] %v1415_v14  ;;  %v1418_v46 = vadd.f32 %v1996_v24, %v2501_v33  ;;  %v1925_v50 = vpop.f32.mrb[59].mxu1  ;;  %v1409_v11 = vpop.f32.mrb[59].mxu0 }
 0x16d   : > { %1509 = vst [vmem:[%s2527_s22 + $0x40] sm:$0xff] %v1407_v40  ;;  %v1926_v25 = vadd.f32 %v1925_v50, %v1924_v29  ;;  %v1410_v36 = vadd.f32 %v1409_v11, %v2491_v9  ;;  %v1294_v18 = vadd.f32 %v1923_v21, %v1133_v31 }
 0x16e   : > { %1512 = vst [vmem:[%s2527_s22 + $0x58] sm:$0xff] %v1418_v46  ;;  %v1160_v46 = vadd.f32 %v2444_v10, %v2457_v38 }
 0x16f   : > { %1510 = vst [vmem:[%s2527_s22 + $0x48] sm:$0xff] %v1410_v36  ;;  %v1297_v43 = vadd.f32 %v1926_v25, %v1136_v32 }
 0x171   : > { %v1927_v3 = vpop.f32.mrb[60].mxu1  ;;  %v1999_v37 = vpop.f32.mrb[60].mxu0 }
 0x172   : > { %v1431_v61 = vadd.f32 %v1999_v37, %v2519_v15  ;;  %v1928_v33 = vpop.f32.mrb[61].mxu1  ;;  %v1422_v39 = vpop.f32.mrb[61].mxu0  ;;  %v1144_v15 = vadd.f32 %v2517_v6, %v2457_v38  ;;  %v1149_v6 = vadd.f32 %v2438_v56, %v2457_v38 }
 0x173   : > { %v1929_v41 = vadd.f32 %v1928_v33, %v1927_v3  ;;  %v1423_v7 = vadd.f32 %v1422_v39, %v2509_v55  ;;  %v1930_v9 = vpop.f32.mrb[62].mxu1  ;;  %v2000_v42 = vpop.f32.mrb[62].mxu0 }
 0x174   : > { %1515 = vst [vmem:[%s2527_s22 + $0x70] sm:$0xff] %v1431_v61  ;;  %v1434_v23 = vadd.f32 %v2000_v42, %v2522_v17  ;;  %v1931_v59 = vpop.f32.mrb[63].mxu1  ;;  %v1425_v5 = vpop.f32.mrb[63].mxu0  ;;  %v1165_v61 = vadd.f32 %v2446_v16, %v2457_v38 }
 0x175   : > { %1513 = vst [vmem:[%s2527_s22 + $0x60] sm:$0xff] %v1423_v7  ;;  %v1932_v8 = vadd.f32 %v1931_v59, %v1930_v9  ;;  %v1426_v49 = vadd.f32 %v1425_v5, %v2511_v30  ;;  %v1302_v53 = vadd.f32 %v1929_v41, %v1141_v54  ;;  %v1168_v9 = vadd.f32 %v2448_v22, %v2457_v38 }
 0x176   : > { %1516 = vst [vmem:[%s2527_s22 + $0x78] sm:$0xff] %v1434_v23 }
 0x177   : > { %1514 = vst [vmem:[%s2527_s22 + $0x68] sm:$0xff] %v1426_v49  ;;  %v1305_v2 = vadd.f32 %v1932_v8, %v1144_v15 }
 0x179   : > { %v1933_v55 = vpop.f32.mrb[64].mxu1  ;;  %v2003_v63 = vpop.f32.mrb[64].mxu0 }
 0x17a   : > { %v1447_v57 = vadd.f32 %v2003_v63, %v1286_v26  ;;  %v1934_v52 = vpop.f32.mrb[65].mxu1  ;;  %v1438_v17 = vpop.f32.mrb[65].mxu0 }
 0x17b   : > { %v1935_v58 = vadd.f32 %v1934_v52, %v1933_v55  ;;  %v1439_v19 = vadd.f32 %v1438_v17, %v2539_v45  ;;  %v1936_v60 = vpop.f32.mrb[66].mxu1  ;;  %v2004_v30 = vpop.f32.mrb[66].mxu0  ;;  %v1176_v17 = vadd.f32 %v2452_v34, %v2457_v38 }
 0x17c   : > { %1519 = vst [vmem:[%s2527_s22 + $0x90] sm:$0xff] %v1447_v57  ;;  %v1450_v0 = vadd.f32 %v2004_v30, %v1289_v20  ;;  %v1937_v1 = vpop.f32.mrb[67].mxu1  ;;  %v1441_v47 = vpop.f32.mrb[67].mxu0 }
 0x17d   : > { %1517 = vst [vmem:[%s2527_s22 + $0x80] sm:$0xff] %v1439_v19  ;;  %v1938_v12 = vadd.f32 %v1937_v1, %v1936_v60  ;;  %v1442_v26 = vadd.f32 %v1441_v47, %v2543_v51  ;;  %v1310_v27 = vadd.f32 %v1935_v58, %v1149_v6 }
 0x17e   : > { %1520 = vst [vmem:[%s2527_s22 + $0x98] sm:$0xff] %v1450_v0 }
 0x17f   : > { %1518 = vst [vmem:[%s2527_s22 + $0x88] sm:$0xff] %v1442_v26  ;;  %v1313_v56 = vadd.f32 %v1938_v12, %v1152_v35 }
 0x181   : > { %v1939_v45 = vpop.f32.mrb[68].mxu1  ;;  %v2007_v13 = vpop.f32.mrb[68].mxu0 }
 0x182   : > { %v1463_v14 = vadd.f32 %v2007_v13, %v1302_v53  ;;  %v1940_v48 = vpop.f32.mrb[69].mxu1  ;;  %v1454_v20 = vpop.f32.mrb[69].mxu0  ;;  %v1173_v53 = vadd.f32 %v2450_v28, %v2457_v38 }
 0x183   : > { %v1941_v44 = vadd.f32 %v1940_v48, %v1939_v45  ;;  %v1455_v31 = vadd.f32 %v1454_v20, %v1294_v18  ;;  %v1942_v21 = vpop.f32.mrb[70].mxu1  ;;  %v2008_v40 = vpop.f32.mrb[70].mxu0 }
 0x184   : > { %1523 = vst [vmem:[%s2527_s22 + $0xb0] sm:$0xff] %v1463_v14  ;;  %v1466_v51 = vadd.f32 %v2008_v40, %v1305_v2  ;;  %v1943_v29 = vpop.f32.mrb[71].mxu1  ;;  %v1457_v24 = vpop.f32.mrb[71].mxu0 }
 0x185   : > { %1521 = vst [vmem:[%s2527_s22 + $0xa0] sm:$0xff] %v1455_v31  ;;  %v1944_v50 = vadd.f32 %v1943_v29, %v1942_v21  ;;  %v1458_v11 = vadd.f32 %v1457_v24, %v1297_v43  ;;  %v1318_v32 = vadd.f32 %v1941_v44, %v1157_v62 }
 0x186   : > { %1524 = vst [vmem:[%s2527_s22 + $0xb8] sm:$0xff] %v1466_v51 }
 0x187   : > { %1522 = vst [vmem:[%s2527_s22 + $0xa8] sm:$0xff] %v1458_v11  ;;  %v1321_v25 = vadd.f32 %v1944_v50, %v1160_v46 }
 0x189   : > { %v1945_v4 = vpop.f32.mrb[72].mxu1  ;;  %v2011_v36 = vpop.f32.mrb[72].mxu0 }
 0x18a   : > { %v1479_v18 = vadd.f32 %v2011_v36, %v1318_v32  ;;  %v1946_v3 = vpop.f32.mrb[73].mxu1  ;;  %v1470_v37 = vpop.f32.mrb[73].mxu0 }
 0x18b   : > { %v1947_v10 = vadd.f32 %v1946_v3, %v1945_v4  ;;  %v1471_v33 = vadd.f32 %v1470_v37, %v1310_v27  ;;  %v1948_v39 = vpop.f32.mrb[74].mxu1  ;;  %v2012_v54 = vpop.f32.mrb[74].mxu0 }
 0x18c   : > { %1527 = vst [vmem:[%s2527_s22 + $0xd0] sm:$0xff] %v1479_v18  ;;  %v1482_v43 = vadd.f32 %v2012_v54, %v1321_v25  ;;  %v1949_v41 = vpop.f32.mrb[75].mxu1  ;;  %v1473_v7 = vpop.f32.mrb[75].mxu0 }
 0x18d   : > { %1525 = vst [vmem:[%s2527_s22 + $0xc0] sm:$0xff] %v1471_v33  ;;  %v1950_v42 = vadd.f32 %v1949_v41, %v1948_v39  ;;  %v1474_v23 = vadd.f32 %v1473_v7, %v1313_v56  ;;  %v1326_v59 = vadd.f32 %v1947_v10, %v1165_v61 }
 0x18e   : > { %1528 = vst [vmem:[%s2527_s22 + $0xd8] sm:$0xff] %v1482_v43 }
 0x18f   : > { %1526 = vst [vmem:[%s2527_s22 + $0xc8] sm:$0xff] %v1474_v23  ;;  %v1329_v5 = vadd.f32 %v1950_v42, %v1168_v9 }
 0x191   : > { %v1951_v16 = vpop.f32.mrb[76].mxu1  ;;  %v2015_v15 = vpop.f32.mrb[76].mxu0 }
 0x192   : > { %v1952_v8 = vpop.f32.mrb[77].mxu1  ;;  %v1486_v49 = vpop.f32.mrb[77].mxu0 }
 0x193   : > { %v1953_v2 = vadd.f32 %v1952_v8, %v1951_v16  ;;  %v1487_v22 = vadd.f32 %v1486_v49, %v1326_v59  ;;  %v1954_v55 = vpop.f32.mrb[78].mxu1  ;;  %v2016_v63 = vpop.f32.mrb[78].mxu0 }
 0x194   : > { %v1955_v57 = vpop.f32.mrb[79].mxu1  ;;  %v1489_v52 = vpop.f32.mrb[79].mxu0 }
 0x195   : > { %v1334_v6 = vadd.f32 %v1953_v2, %v1173_v53  ;;  %1529 = vst [vmem:[%s2527_s22 + $0xe0] sm:$0xff] %v1487_v22  ;;  %v1956_v58 = vadd.f32 %v1955_v57, %v1954_v55  ;;  %v1490_v19 = vadd.f32 %v1489_v52, %v1329_v5 }
 0x197   : > { %v1495_v60 = vadd.f32 %v2015_v15, %v1334_v6  ;;  %v1337_v30 = vadd.f32 %v1956_v58, %v1176_v17  ;;  %1530 = vst [vmem:[%s2527_s22 + $0xe8] sm:$0xff] %v1490_v19 }
 0x199   : > { %1531 = vst [vmem:[%s2527_s22 + $0xf0] sm:$0xff] %v1495_v60  ;;  %v1498_v0 = vadd.f32 %v2016_v63, %v1337_v30 }
 0x19b   : > { %1532 = vst [vmem:[%s2527_s22 + $0xf8] sm:$0xff] %v1498_v0 }
 0x19c PF: > { %s13_s12 = sadd.s32 1, %s2196_s12  }
 0x19d   : > { %p10_p4 = scmp.ge.s32.totalorder %s13_s12, 4  }
 0x19f   :  { %12 = sbr.rel (!%p10_p4) target bundleno = 1 (0x1), region = 62 }

</bundles_post_ra>
